<compile_context>
chip_gen: v6e
topology: v6e:2x2x1
jax: 0.10.0
libtpu: 0.0.40
codegen_flags: <defaults>
</compile_context>

<pallas_src>
import functools
import math

import jax
import jax.numpy as jnp
import numpy as np
from jax import lax
from jax.experimental import pallas as pl
from jax.experimental.pallas import tpu as pltpu

# ----------------------------- configuration --------------------------------
TABLE_NUM = 4            # L: number of hash-table levels
TABLE_SIZE_LOG2 = 8      # T = 2**8 = 256 entries per table
Z_DIM = 32
RES_MIN = 4
RES_MAX = 16
IMG_SIZE = 16            # N = 256 sampled coords
MLP_HIDDEN = 32
MLP_OUT_DIM = 3
STYLE_DIM = 64
FEAT_PER_LEVEL = 2       # mini_linear input = table_num * 2
BATCH = 2

TABLE_SIZE = 2 ** TABLE_SIZE_LOG2
NUM_COORDS = IMG_SIZE * IMG_SIZE
HASH_PRIME = 2654435761  # instant-NGP spatial-hash prime (mod 2**32 arithmetic)


# ----------------------- host-side constant folding -------------------------
def compute_resolutions(levels, res_min, res_max):
    if levels == 1:
        return (res_min,)
    growth = math.exp((math.log(res_max) - math.log(res_min)) / (levels - 1))
    return tuple(int(math.floor(res_min * (growth ** l) + 1e-6)) for l in range(levels))


@functools.lru_cache(maxsize=None)
def _gather_matrix_np():
    """Constant-folded HashTableRetrieve.

    Returns W with shape (L*T, N) such that
        feat[n, f] = sum_t W[l*T + t, n] * table_l[t, f]
    equals bilinear interpolation of the spatially-hashed corner entries at the
    fixed pixel-centre coordinate grid (hash = (ix ^ iy*prime) & (T-1), identical
    low bits to the int32-wrap formulation of the previous kernel).
    """
    res = compute_resolutions(TABLE_NUM, RES_MIN, RES_MAX)
    w = np.zeros((TABLE_NUM * TABLE_SIZE, NUM_COORDS), np.float32)
    for n in range(NUM_COORDS):
        row, col = divmod(n, IMG_SIZE)
        x = (col + 0.5) / IMG_SIZE
        y = (row + 0.5) / IMG_SIZE
        for l, r in enumerate(res):
            px, py = x * r, y * r
            ix0, iy0 = int(math.floor(px)), int(math.floor(py))
            fx, fy = px - ix0, py - iy0
            for dx, wx in ((0, 1.0 - fx), (1, fx)):
                for dy, wy in ((0, 1.0 - fy), (1, fy)):
                    ix, iy = ix0 + dx, iy0 + dy
                    h = (ix ^ ((iy * HASH_PRIME) & 0xFFFFFFFF)) & (TABLE_SIZE - 1)
                    w[l * TABLE_SIZE + h, n] += wx * wy
    return w


# ------------------------------ fused kernel ---------------------------------
def _hash_generator_kernel(
        z_ref, mw1_ref, mb1_ref, mw2_ref, mb2_ref, mw3_ref, mb3_ref,
        tabw_ref, wgt_ref,
        a1_ref, w1t_ref, a2_ref, w2t_ref, a3_ref, w3t_ref,
        b1_ref, b2_ref, b3_ref,
        out_ref, mt_ref):
    B = z_ref.shape[0]
    L, H, F = w1t_ref.shape                 # levels, mlp hidden, features/level
    T = wgt_ref.shape[0] // L               # table entries per level
    z_dim = z_ref.shape[1]
    style_dim = mw1_ref.shape[1]
    eps = 1e-8
    inv_ss = 1.0 / math.sqrt(style_dim)

    def lrelu(v):
        return jnp.maximum(v, 0.2 * v) * math.sqrt(2.0)

    def fc(x, w_ref, b_ref, fan_in):
        y = jnp.dot(x, w_ref[...], preferred_element_type=jnp.float32)
        return lrelu(y * (1.0 / math.sqrt(fan_in)) + b_ref[...])

    # ---- A) mapping MLP: s = s_mapping(z)  -> (B, style_dim) ----------------
    s = fc(z_ref[...], mw1_ref, mb1_ref, z_dim)
    s = fc(s, mw2_ref, mb2_ref, style_dim)
    s = fc(s, mw3_ref, mb3_ref, style_dim)
    # The reference repeats s (L+2) times; all copies are identical, so we just
    # reuse `s` for both table generation and mini-MLP modulation.

    # ---- B) hash-table generation: one wide matmul --------------------------
    # tab: (B, L*F*T), columns ordered (level, feature, entry)
    tab = jnp.dot(s, tabw_ref[...], preferred_element_type=jnp.float32)
    tab = tab * (1.0 / math.sqrt(style_dim))

    # ---- modulation styles (all batch rows at once) --------------------------
    st1 = [jnp.dot(s, a1_ref[l], preferred_element_type=jnp.float32) * inv_ss + 1.0
           for l in range(L)]                                              # L x (B, F)
    st2 = jnp.dot(s, a2_ref[...], preferred_element_type=jnp.float32) * inv_ss + 1.0  # (B, H)
    st3 = jnp.dot(s, a3_ref[...], preferred_element_type=jnp.float32) * inv_ss + 1.0  # (B, H)

    # ---- fold modulated W1 into the generated tables -------------------------
    # MT[b*H:(b+1)*H, l*T:(l+1)*T] = (w1m_b[l])^T @ table_{b,l}^T   (H, T)
    inv_in1 = 1.0 / math.sqrt(L * F)
    for b in range(B):
        wm = []
        sq = jnp.zeros((H, 1), jnp.float32)
        for l in range(L):
            w = w1t_ref[l] * inv_in1 * st1[l][b:b + 1, :]                  # (H, F)
            wm.append(w)
            sq = sq + jnp.sum(w * w, axis=1, keepdims=True)
        demod1 = lax.rsqrt(sq + eps)                                       # (H, 1)
        for l in range(L):
            w1m = wm[l] * demod1                                           # (H, F)
            base = l * F * T
            t0 = tab[b:b + 1, base:base + T]                               # (1, T), feature 0
            t1 = tab[b:b + 1, base + T:base + 2 * T]                       # (1, T), feature 1
            mt = w1m[:, 0:1] * t0 + w1m[:, 1:2] * t1                       # (H, T)
            mt_ref[b * H:(b + 1) * H, l * T:(l + 1) * T] = mt.astype(mt_ref.dtype)

    # ---- C) constant-folded hash retrieval: one wide MXU matmul --------------
    # acc^T (B*H, N) = MT (B*H, L*T) @ W_gather^T (L*T, N); bf16 in, f32 acc.
    acc_t = jnp.dot(mt_ref[...], wgt_ref[...], preferred_element_type=jnp.float32)

    # ---- modulated mini-MLP, transposed layout; lane-dense (3, N) output ------
    inv_in2 = 1.0 / math.sqrt(H)

    def modulate_t(w_t, style_row):                      # w_t: (out, in)
        w = w_t * inv_in2 * style_row                    # style over input (lane) dim
        demod = lax.rsqrt(jnp.sum(w * w, axis=1, keepdims=True) + eps)
        return w * demod

    for b in range(B):
        w2m = modulate_t(w2t_ref[...], st2[b:b + 1, :])                    # (H, H)
        w3m = modulate_t(w3t_ref[...], st3[b:b + 1, :])                    # (OUT, H)
        h1 = lrelu(acc_t[b * H:(b + 1) * H, :] + b1_ref[...])              # (H, N)
        h2 = lrelu(jnp.dot(w2m, h1, preferred_element_type=jnp.float32) + b2_ref[...])
        out_ref[b] = jnp.dot(w3m, h2, preferred_element_type=jnp.float32) + b3_ref[...]


# --------------------------------- wrapper -----------------------------------
def _full_spec(shape):
    n = len(shape)
    return pl.BlockSpec(tuple(shape), lambda i: (0,) * n)


def hash_generator_forward(params, z, wgather_t):
    B = z.shape[0]
    L, T, F, H = TABLE_NUM, TABLE_SIZE, FEAT_PER_LEVEL, MLP_HIDDEN
    N = NUM_COORDS
    args = (
        z,
        params["map_w1"], params["map_b1"],
        params["map_w2"], params["map_b2"],
        params["map_w3"], params["map_b3"],
        params["table_w"], wgather_t,
        params["mlp_a1"], params["mlp_w1T"],
        params["mlp_a2"], params["mlp_w2T"],
        params["mlp_a3"], params["mlp_w3T"],
        params["mlp_b1"], params["mlp_b2"], params["mlp_b3"],
    )
    out = pl.pallas_call(
        _hash_generator_kernel,
        out_shape=jax.ShapeDtypeStruct((B, MLP_OUT_DIM, N), jnp.float32),
        grid=(1,),
        in_specs=[_full_spec(a.shape) for a in args],
        out_specs=_full_spec((B, MLP_OUT_DIM, N)),
        scratch_shapes=[pltpu.VMEM((B * H, L * T), jnp.bfloat16)],
    )(*args)
    # render: output is already channel-major (B, 3, N) -> free metadata reshape
    return out.reshape(B, MLP_OUT_DIM, IMG_SIZE, IMG_SIZE)


# --------------------------------- params ------------------------------------
def init_params(key):
    ks = jax.random.split(key, 10)
    L, T, F = TABLE_NUM, TABLE_SIZE, FEAT_PER_LEVEL
    return {
        # s_mapping: 3x FullyConnectedLayer(lrelu)
        "map_w1": jax.random.normal(ks[0], (Z_DIM, STYLE_DIM), jnp.float32),
        "map_b1": jnp.zeros((1, STYLE_DIM), jnp.float32),
        "map_w2": jax.random.normal(ks[1], (STYLE_DIM, STYLE_DIM), jnp.float32),
        "map_b2": jnp.zeros((1, STYLE_DIM), jnp.float32),
        "map_w3": jax.random.normal(ks[2], (STYLE_DIM, STYLE_DIM), jnp.float32),
        "map_b3": jnp.zeros((1, STYLE_DIM), jnp.float32),
        # TODO(synk): placeholder hash-table generator (style -> per-level table)
        "table_w": jax.random.normal(ks[3], (STYLE_DIM, L * F * T), jnp.float32),
        # StackedModulatedMLP weights, stored transposed (out, in); W1 per level.
        "mlp_w1T": jax.random.normal(ks[4], (L, MLP_HIDDEN, F), jnp.float32),
        "mlp_w2T": jax.random.normal(ks[5], (MLP_HIDDEN, MLP_HIDDEN), jnp.float32),
        "mlp_w3T": jax.random.normal(ks[6], (MLP_OUT_DIM, MLP_HIDDEN), jnp.float32),
        "mlp_a1": jax.random.normal(ks[7], (L, STYLE_DIM, F), jnp.float32),
        "mlp_a2": jax.random.normal(ks[8], (STYLE_DIM, MLP_HIDDEN), jnp.float32),
        "mlp_a3": jax.random.normal(ks[9], (STYLE_DIM, MLP_HIDDEN), jnp.float32),
        "mlp_b1": jnp.zeros((MLP_HIDDEN, 1), jnp.float32),
        "mlp_b2": jnp.zeros((MLP_HIDDEN, 1), jnp.float32),
        "mlp_b3": jnp.zeros((MLP_OUT_DIM, 1), jnp.float32),
    }


if __name__ == "__main__":
    key = jax.random.PRNGKey(0)
    pkey, zkey = jax.random.split(key)
    params = init_params(pkey)
    z = jax.random.normal(zkey, (BATCH, Z_DIM), jnp.float32)
    # bf16 gather constant: MXU-native on v6e/v7x (f32 accumulation keeps
    # precision); bilinear weights lose ~0.4% relative precision (negligible).
    wgather_t = jnp.asarray(_gather_matrix_np(), dtype=jnp.bfloat16)

    fwd = jax.jit(hash_generator_forward)
    img = fwd(params, z, wgather_t)
    img = jax.block_until_ready(img)
    assert img.shape == (BATCH, MLP_OUT_DIM, IMG_SIZE, IMG_SIZE), img.shape
    assert bool(jnp.all(jnp.isfinite(img)))
    print("KERNEL_OK")
</pallas_src>

<mosaic_0001>
module attributes {stable_mosaic.version = 11 : i64} {
  func.func @_hash_generator_kernel(%arg0: i32, %arg1: memref<2x32xf32, #tpu.memory_space<vmem>>, %arg2: memref<32x64xf32, #tpu.memory_space<vmem>>, %arg3: memref<1x64xf32, #tpu.memory_space<vmem>>, %arg4: memref<64x64xf32, #tpu.memory_space<vmem>>, %arg5: memref<1x64xf32, #tpu.memory_space<vmem>>, %arg6: memref<64x64xf32, #tpu.memory_space<vmem>>, %arg7: memref<1x64xf32, #tpu.memory_space<vmem>>, %arg8: memref<64x2048xf32, #tpu.memory_space<vmem>>, %arg9: memref<1024x256xbf16, #tpu.memory_space<vmem>>, %arg10: memref<4x64x2xf32, #tpu.memory_space<vmem>>, %arg11: memref<4x32x2xf32, #tpu.memory_space<vmem>>, %arg12: memref<64x32xf32, #tpu.memory_space<vmem>>, %arg13: memref<32x32xf32, #tpu.memory_space<vmem>>, %arg14: memref<64x32xf32, #tpu.memory_space<vmem>>, %arg15: memref<3x32xf32, #tpu.memory_space<vmem>>, %arg16: memref<32x1xf32, #tpu.memory_space<vmem>>, %arg17: memref<32x1xf32, #tpu.memory_space<vmem>>, %arg18: memref<3x1xf32, #tpu.memory_space<vmem>>, %arg19: memref<2x3x256xf32, #tpu.memory_space<vmem>>, %arg20: memref<64x1024xbf16, #tpu.memory_space<vmem>>) attributes {dimension_semantics = [#tpu.dimension_semantics<arbitrary>], iteration_bounds = array<i64: 1>, scalar_prefetch = 0 : i64, scratch_operands = 1 : i64, tpu.core_type = #tpu.core_type<tc>, window_params = [{pipeline_mode = #tpu.pipeline_mode<synchronous>, transform_indices = @transform_0, window_bounds = array<i64: 2, 32>}, {pipeline_mode = #tpu.pipeline_mode<synchronous>, transform_indices = @transform_1, window_bounds = array<i64: 32, 64>}, {pipeline_mode = #tpu.pipeline_mode<synchronous>, transform_indices = @transform_2, window_bounds = array<i64: 1, 64>}, {pipeline_mode = #tpu.pipeline_mode<synchronous>, transform_indices = @transform_3, window_bounds = array<i64: 64, 64>}, {pipeline_mode = #tpu.pipeline_mode<synchronous>, transform_indices = @transform_4, window_bounds = array<i64: 1, 64>}, {pipeline_mode = #tpu.pipeline_mode<synchronous>, transform_indices = @transform_5, window_bounds = array<i64: 64, 64>}, {pipeline_mode = #tpu.pipeline_mode<synchronous>, transform_indices = @transform_6, window_bounds = array<i64: 1, 64>}, {pipeline_mode = #tpu.pipeline_mode<synchronous>, transform_indices = @transform_7, window_bounds = array<i64: 64, 2048>}, {pipeline_mode = #tpu.pipeline_mode<synchronous>, transform_indices = @transform_8, window_bounds = array<i64: 1024, 256>}, {pipeline_mode = #tpu.pipeline_mode<synchronous>, transform_indices = @transform_9, window_bounds = array<i64: 4, 64, 2>}, {pipeline_mode = #tpu.pipeline_mode<synchronous>, transform_indices = @transform_10, window_bounds = array<i64: 4, 32, 2>}, {pipeline_mode = #tpu.pipeline_mode<synchronous>, transform_indices = @transform_11, window_bounds = array<i64: 64, 32>}, {pipeline_mode = #tpu.pipeline_mode<synchronous>, transform_indices = @transform_12, window_bounds = array<i64: 32, 32>}, {pipeline_mode = #tpu.pipeline_mode<synchronous>, transform_indices = @transform_13, window_bounds = array<i64: 64, 32>}, {pipeline_mode = #tpu.pipeline_mode<synchronous>, transform_indices = @transform_14, window_bounds = array<i64: 3, 32>}, {pipeline_mode = #tpu.pipeline_mode<synchronous>, transform_indices = @transform_15, window_bounds = array<i64: 32, 1>}, {pipeline_mode = #tpu.pipeline_mode<synchronous>, transform_indices = @transform_16, window_bounds = array<i64: 32, 1>}, {pipeline_mode = #tpu.pipeline_mode<synchronous>, transform_indices = @transform_17, window_bounds = array<i64: 3, 1>}, {pipeline_mode = #tpu.pipeline_mode<synchronous>, transform_indices = @transform_18, window_bounds = array<i64: 2, 3, 256>}]} {
    %c0 = arith.constant 0 : index
    %c0_0 = arith.constant 0 : index
    %0 = vector.load %arg1[%c0, %c0_0] : memref<2x32xf32, #tpu.memory_space<vmem>>, vector<2x32xf32>
    %c0_1 = arith.constant 0 : index
    %c0_2 = arith.constant 0 : index
    %1 = vector.load %arg2[%c0_1, %c0_2] : memref<32x64xf32, #tpu.memory_space<vmem>>, vector<32x64xf32>
    %cst = arith.constant dense<0.000000e+00> : vector<2x64xf32>
    %2 = tpu.matmul %0, %1, %cst {dimension_numbers = #tpu.dot_dimension_numbers<[1], [0], [0], [1], [0, 0, 1, 1], [], []>} : vector<2x32xf32>, vector<32x64xf32>, vector<2x64xf32> -> vector<2x64xf32>
    %cst_3 = arith.constant 0.176776692 : f32
    %3 = vector.broadcast %cst_3 : f32 to vector<2x64xf32>
    %4 = arith.mulf %2, %3 : vector<2x64xf32>
    %c0_4 = arith.constant 0 : index
    %c0_5 = arith.constant 0 : index
    %5 = vector.load %arg3[%c0_4, %c0_5] : memref<1x64xf32, #tpu.memory_space<vmem>>, vector<1x64xf32>
    %6 = vector.broadcast %5 : vector<1x64xf32> to vector<2x64xf32>
    %7 = arith.addf %4, %6 : vector<2x64xf32>
    %cst_6 = arith.constant 2.000000e-01 : f32
    %8 = vector.broadcast %cst_6 : f32 to vector<2x64xf32>
    %9 = arith.mulf %8, %7 : vector<2x64xf32>
    %10 = arith.maximumf %7, %9 : vector<2x64xf32>
    %cst_7 = arith.constant 1.41421354 : f32
    %11 = vector.broadcast %cst_7 : f32 to vector<2x64xf32>
    %12 = arith.mulf %10, %11 : vector<2x64xf32>
    %c0_8 = arith.constant 0 : index
    %c0_9 = arith.constant 0 : index
    %13 = vector.load %arg4[%c0_8, %c0_9] : memref<64x64xf32, #tpu.memory_space<vmem>>, vector<64x64xf32>
    %cst_10 = arith.constant dense<0.000000e+00> : vector<2x64xf32>
    %14 = tpu.matmul %12, %13, %cst_10 {dimension_numbers = #tpu.dot_dimension_numbers<[1], [0], [0], [1], [0, 0, 1, 1], [], []>} : vector<2x64xf32>, vector<64x64xf32>, vector<2x64xf32> -> vector<2x64xf32>
    %cst_11 = arith.constant 1.250000e-01 : f32
    %15 = vector.broadcast %cst_11 : f32 to vector<2x64xf32>
    %16 = arith.mulf %14, %15 : vector<2x64xf32>
    %c0_12 = arith.constant 0 : index
    %c0_13 = arith.constant 0 : index
    %17 = vector.load %arg5[%c0_12, %c0_13] : memref<1x64xf32, #tpu.memory_space<vmem>>, vector<1x64xf32>
    %18 = vector.broadcast %17 : vector<1x64xf32> to vector<2x64xf32>
    %19 = arith.addf %16, %18 : vector<2x64xf32>
    %cst_14 = arith.constant 2.000000e-01 : f32
    %20 = vector.broadcast %cst_14 : f32 to vector<2x64xf32>
    %21 = arith.mulf %20, %19 : vector<2x64xf32>
    %22 = arith.maximumf %19, %21 : vector<2x64xf32>
    %cst_15 = arith.constant 1.41421354 : f32
    %23 = vector.broadcast %cst_15 : f32 to vector<2x64xf32>
    %24 = arith.mulf %22, %23 : vector<2x64xf32>
    %c0_16 = arith.constant 0 : index
    %c0_17 = arith.constant 0 : index
    %25 = vector.load %arg6[%c0_16, %c0_17] : memref<64x64xf32, #tpu.memory_space<vmem>>, vector<64x64xf32>
    %cst_18 = arith.constant dense<0.000000e+00> : vector<2x64xf32>
    %26 = tpu.matmul %24, %25, %cst_18 {dimension_numbers = #tpu.dot_dimension_numbers<[1], [0], [0], [1], [0, 0, 1, 1], [], []>} : vector<2x64xf32>, vector<64x64xf32>, vector<2x64xf32> -> vector<2x64xf32>
    %cst_19 = arith.constant 1.250000e-01 : f32
    %27 = vector.broadcast %cst_19 : f32 to vector<2x64xf32>
    %28 = arith.mulf %26, %27 : vector<2x64xf32>
    %c0_20 = arith.constant 0 : index
    %c0_21 = arith.constant 0 : index
    %29 = vector.load %arg7[%c0_20, %c0_21] : memref<1x64xf32, #tpu.memory_space<vmem>>, vector<1x64xf32>
    %30 = vector.broadcast %29 : vector<1x64xf32> to vector<2x64xf32>
    %31 = arith.addf %28, %30 : vector<2x64xf32>
    %cst_22 = arith.constant 2.000000e-01 : f32
    %32 = vector.broadcast %cst_22 : f32 to vector<2x64xf32>
    %33 = arith.mulf %32, %31 : vector<2x64xf32>
    %34 = arith.maximumf %31, %33 : vector<2x64xf32>
    %cst_23 = arith.constant 1.41421354 : f32
    %35 = vector.broadcast %cst_23 : f32 to vector<2x64xf32>
    %36 = arith.mulf %34, %35 : vector<2x64xf32>
    %c0_24 = arith.constant 0 : index
    %c0_25 = arith.constant 0 : index
    %37 = vector.load %arg8[%c0_24, %c0_25] : memref<64x2048xf32, #tpu.memory_space<vmem>>, vector<64x2048xf32>
    %cst_26 = arith.constant dense<0.000000e+00> : vector<2x2048xf32>
    %38 = tpu.matmul %36, %37, %cst_26 {dimension_numbers = #tpu.dot_dimension_numbers<[1], [0], [0], [1], [0, 0, 1, 1], [], []>} : vector<2x64xf32>, vector<64x2048xf32>, vector<2x2048xf32> -> vector<2x2048xf32>
    %cst_27 = arith.constant 1.250000e-01 : f32
    %39 = vector.broadcast %cst_27 : f32 to vector<2x2048xf32>
    %40 = arith.mulf %38, %39 : vector<2x2048xf32>
    %c0_28 = arith.constant 0 : index
    %c0_29 = arith.constant 0 : index
    %c0_30 = arith.constant 0 : index
    %41 = vector.load %arg10[%c0_28, %c0_29, %c0_30] : memref<4x64x2xf32, #tpu.memory_space<vmem>>, vector<1x64x2xf32>
    %42 = vector.shape_cast %41 : vector<1x64x2xf32> to vector<64x2xf32>
    %cst_31 = arith.constant dense<0.000000e+00> : vector<2x2xf32>
    %43 = tpu.matmul %36, %42, %cst_31 {dimension_numbers = #tpu.dot_dimension_numbers<[1], [0], [0], [1], [0, 0, 1, 1], [], []>} : vector<2x64xf32>, vector<64x2xf32>, vector<2x2xf32> -> vector<2x2xf32>
    %cst_32 = arith.constant 1.250000e-01 : f32
    %44 = vector.broadcast %cst_32 : f32 to vector<2x2xf32>
    %45 = arith.mulf %43, %44 : vector<2x2xf32>
    %cst_33 = arith.constant 1.000000e+00 : f32
    %46 = vector.broadcast %cst_33 : f32 to vector<2x2xf32>
    %47 = arith.addf %45, %46 : vector<2x2xf32>
    %c1 = arith.constant 1 : index
    %c0_34 = arith.constant 0 : index
    %c0_35 = arith.constant 0 : index
    %48 = vector.load %arg10[%c1, %c0_34, %c0_35] : memref<4x64x2xf32, #tpu.memory_space<vmem>>, vector<1x64x2xf32>
    %49 = vector.shape_cast %48 : vector<1x64x2xf32> to vector<64x2xf32>
    %cst_36 = arith.constant dense<0.000000e+00> : vector<2x2xf32>
    %50 = tpu.matmul %36, %49, %cst_36 {dimension_numbers = #tpu.dot_dimension_numbers<[1], [0], [0], [1], [0, 0, 1, 1], [], []>} : vector<2x64xf32>, vector<64x2xf32>, vector<2x2xf32> -> vector<2x2xf32>
    %cst_37 = arith.constant 1.250000e-01 : f32
    %51 = vector.broadcast %cst_37 : f32 to vector<2x2xf32>
    %52 = arith.mulf %50, %51 : vector<2x2xf32>
    %cst_38 = arith.constant 1.000000e+00 : f32
    %53 = vector.broadcast %cst_38 : f32 to vector<2x2xf32>
    %54 = arith.addf %52, %53 : vector<2x2xf32>
    %c2 = arith.constant 2 : index
    %c0_39 = arith.constant 0 : index
    %c0_40 = arith.constant 0 : index
    %55 = vector.load %arg10[%c2, %c0_39, %c0_40] : memref<4x64x2xf32, #tpu.memory_space<vmem>>, vector<1x64x2xf32>
    %56 = vector.shape_cast %55 : vector<1x64x2xf32> to vector<64x2xf32>
    %cst_41 = arith.constant dense<0.000000e+00> : vector<2x2xf32>
    %57 = tpu.matmul %36, %56, %cst_41 {dimension_numbers = #tpu.dot_dimension_numbers<[1], [0], [0], [1], [0, 0, 1, 1], [], []>} : vector<2x64xf32>, vector<64x2xf32>, vector<2x2xf32> -> vector<2x2xf32>
    %cst_42 = arith.constant 1.250000e-01 : f32
    %58 = vector.broadcast %cst_42 : f32 to vector<2x2xf32>
    %59 = arith.mulf %57, %58 : vector<2x2xf32>
    %cst_43 = arith.constant 1.000000e+00 : f32
    %60 = vector.broadcast %cst_43 : f32 to vector<2x2xf32>
    %61 = arith.addf %59, %60 : vector<2x2xf32>
    %c3 = arith.constant 3 : index
    %c0_44 = arith.constant 0 : index
    %c0_45 = arith.constant 0 : index
    %62 = vector.load %arg10[%c3, %c0_44, %c0_45] : memref<4x64x2xf32, #tpu.memory_space<vmem>>, vector<1x64x2xf32>
    %63 = vector.shape_cast %62 : vector<1x64x2xf32> to vector<64x2xf32>
    %cst_46 = arith.constant dense<0.000000e+00> : vector<2x2xf32>
    %64 = tpu.matmul %36, %63, %cst_46 {dimension_numbers = #tpu.dot_dimension_numbers<[1], [0], [0], [1], [0, 0, 1, 1], [], []>} : vector<2x64xf32>, vector<64x2xf32>, vector<2x2xf32> -> vector<2x2xf32>
    %cst_47 = arith.constant 1.250000e-01 : f32
    %65 = vector.broadcast %cst_47 : f32 to vector<2x2xf32>
    %66 = arith.mulf %64, %65 : vector<2x2xf32>
    %cst_48 = arith.constant 1.000000e+00 : f32
    %67 = vector.broadcast %cst_48 : f32 to vector<2x2xf32>
    %68 = arith.addf %66, %67 : vector<2x2xf32>
    %c0_49 = arith.constant 0 : index
    %c0_50 = arith.constant 0 : index
    %69 = vector.load %arg12[%c0_49, %c0_50] : memref<64x32xf32, #tpu.memory_space<vmem>>, vector<64x32xf32>
    %cst_51 = arith.constant dense<0.000000e+00> : vector<2x32xf32>
    %70 = tpu.matmul %36, %69, %cst_51 {dimension_numbers = #tpu.dot_dimension_numbers<[1], [0], [0], [1], [0, 0, 1, 1], [], []>} : vector<2x64xf32>, vector<64x32xf32>, vector<2x32xf32> -> vector<2x32xf32>
    %cst_52 = arith.constant 1.250000e-01 : f32
    %71 = vector.broadcast %cst_52 : f32 to vector<2x32xf32>
    %72 = arith.mulf %70, %71 : vector<2x32xf32>
    %cst_53 = arith.constant 1.000000e+00 : f32
    %73 = vector.broadcast %cst_53 : f32 to vector<2x32xf32>
    %74 = arith.addf %72, %73 : vector<2x32xf32>
    %c0_54 = arith.constant 0 : index
    %c0_55 = arith.constant 0 : index
    %75 = vector.load %arg14[%c0_54, %c0_55] : memref<64x32xf32, #tpu.memory_space<vmem>>, vector<64x32xf32>
    %cst_56 = arith.constant dense<0.000000e+00> : vector<2x32xf32>
    %76 = tpu.matmul %36, %75, %cst_56 {dimension_numbers = #tpu.dot_dimension_numbers<[1], [0], [0], [1], [0, 0, 1, 1], [], []>} : vector<2x64xf32>, vector<64x32xf32>, vector<2x32xf32> -> vector<2x32xf32>
    %cst_57 = arith.constant 1.250000e-01 : f32
    %77 = vector.broadcast %cst_57 : f32 to vector<2x32xf32>
    %78 = arith.mulf %76, %77 : vector<2x32xf32>
    %cst_58 = arith.constant 1.000000e+00 : f32
    %79 = vector.broadcast %cst_58 : f32 to vector<2x32xf32>
    %80 = arith.addf %78, %79 : vector<2x32xf32>
    %cst_59 = arith.constant 0.000000e+00 : f32
    %81 = vector.broadcast %cst_59 : f32 to vector<32x1xf32>
    %c0_60 = arith.constant 0 : index
    %c0_61 = arith.constant 0 : index
    %c0_62 = arith.constant 0 : index
    %82 = vector.load %arg11[%c0_60, %c0_61, %c0_62] : memref<4x32x2xf32, #tpu.memory_space<vmem>>, vector<1x32x2xf32>
    %83 = vector.shape_cast %82 : vector<1x32x2xf32> to vector<32x2xf32>
    %cst_63 = arith.constant 0.353553385 : f32
    %84 = vector.broadcast %cst_63 : f32 to vector<32x2xf32>
    %85 = arith.mulf %83, %84 : vector<32x2xf32>
    %86 = vector.extract_strided_slice %47 {offsets = [0, 0], sizes = [1, 2], strides = [1, 1]} : vector<2x2xf32> to vector<1x2xf32>
    %87 = vector.broadcast %86 : vector<1x2xf32> to vector<32x2xf32>
    %88 = arith.mulf %85, %87 : vector<32x2xf32>
    %89 = arith.mulf %88, %88 : vector<32x2xf32>
    %cst_64 = arith.constant dense<0.000000e+00> : vector<32xf32>
    %90 = vector.multi_reduction <add>, %89, %cst_64 [1] : vector<32x2xf32> to vector<32xf32>
    %91 = vector.shape_cast %90 : vector<32xf32> to vector<32x1xf32>
    %92 = arith.addf %81, %91 : vector<32x1xf32>
    %c1_65 = arith.constant 1 : index
    %c0_66 = arith.constant 0 : index
    %c0_67 = arith.constant 0 : index
    %93 = vector.load %arg11[%c1_65, %c0_66, %c0_67] : memref<4x32x2xf32, #tpu.memory_space<vmem>>, vector<1x32x2xf32>
    %94 = vector.shape_cast %93 : vector<1x32x2xf32> to vector<32x2xf32>
    %cst_68 = arith.constant 0.353553385 : f32
    %95 = vector.broadcast %cst_68 : f32 to vector<32x2xf32>
    %96 = arith.mulf %94, %95 : vector<32x2xf32>
    %97 = vector.extract_strided_slice %54 {offsets = [0, 0], sizes = [1, 2], strides = [1, 1]} : vector<2x2xf32> to vector<1x2xf32>
    %98 = vector.broadcast %97 : vector<1x2xf32> to vector<32x2xf32>
    %99 = arith.mulf %96, %98 : vector<32x2xf32>
    %100 = arith.mulf %99, %99 : vector<32x2xf32>
    %cst_69 = arith.constant dense<0.000000e+00> : vector<32xf32>
    %101 = vector.multi_reduction <add>, %100, %cst_69 [1] : vector<32x2xf32> to vector<32xf32>
    %102 = vector.shape_cast %101 : vector<32xf32> to vector<32x1xf32>
    %103 = arith.addf %92, %102 : vector<32x1xf32>
    %c2_70 = arith.constant 2 : index
    %c0_71 = arith.constant 0 : index
    %c0_72 = arith.constant 0 : index
    %104 = vector.load %arg11[%c2_70, %c0_71, %c0_72] : memref<4x32x2xf32, #tpu.memory_space<vmem>>, vector<1x32x2xf32>
    %105 = vector.shape_cast %104 : vector<1x32x2xf32> to vector<32x2xf32>
    %cst_73 = arith.constant 0.353553385 : f32
    %106 = vector.broadcast %cst_73 : f32 to vector<32x2xf32>
    %107 = arith.mulf %105, %106 : vector<32x2xf32>
    %108 = vector.extract_strided_slice %61 {offsets = [0, 0], sizes = [1, 2], strides = [1, 1]} : vector<2x2xf32> to vector<1x2xf32>
    %109 = vector.broadcast %108 : vector<1x2xf32> to vector<32x2xf32>
    %110 = arith.mulf %107, %109 : vector<32x2xf32>
    %111 = arith.mulf %110, %110 : vector<32x2xf32>
    %cst_74 = arith.constant dense<0.000000e+00> : vector<32xf32>
    %112 = vector.multi_reduction <add>, %111, %cst_74 [1] : vector<32x2xf32> to vector<32xf32>
    %113 = vector.shape_cast %112 : vector<32xf32> to vector<32x1xf32>
    %114 = arith.addf %103, %113 : vector<32x1xf32>
    %c3_75 = arith.constant 3 : index
    %c0_76 = arith.constant 0 : index
    %c0_77 = arith.constant 0 : index
    %115 = vector.load %arg11[%c3_75, %c0_76, %c0_77] : memref<4x32x2xf32, #tpu.memory_space<vmem>>, vector<1x32x2xf32>
    %116 = vector.shape_cast %115 : vector<1x32x2xf32> to vector<32x2xf32>
    %cst_78 = arith.constant 0.353553385 : f32
    %117 = vector.broadcast %cst_78 : f32 to vector<32x2xf32>
    %118 = arith.mulf %116, %117 : vector<32x2xf32>
    %119 = vector.extract_strided_slice %68 {offsets = [0, 0], sizes = [1, 2], strides = [1, 1]} : vector<2x2xf32> to vector<1x2xf32>
    %120 = vector.broadcast %119 : vector<1x2xf32> to vector<32x2xf32>
    %121 = arith.mulf %118, %120 : vector<32x2xf32>
    %122 = arith.mulf %121, %121 : vector<32x2xf32>
    %cst_79 = arith.constant dense<0.000000e+00> : vector<32xf32>
    %123 = vector.multi_reduction <add>, %122, %cst_79 [1] : vector<32x2xf32> to vector<32xf32>
    %124 = vector.shape_cast %123 : vector<32xf32> to vector<32x1xf32>
    %125 = arith.addf %114, %124 : vector<32x1xf32>
    %cst_80 = arith.constant 9.99999993E-9 : f32
    %126 = vector.broadcast %cst_80 : f32 to vector<32x1xf32>
    %127 = arith.addf %125, %126 : vector<32x1xf32>
    %128 = math.rsqrt %127 : vector<32x1xf32>
    %129 = vector.broadcast %128 : vector<32x1xf32> to vector<32x2xf32>
    %130 = arith.mulf %88, %129 : vector<32x2xf32>
    %131 = vector.extract_strided_slice %40 {offsets = [0, 0], sizes = [1, 256], strides = [1, 1]} : vector<2x2048xf32> to vector<1x256xf32>
    %132 = vector.extract_strided_slice %40 {offsets = [0, 256], sizes = [1, 256], strides = [1, 1]} : vector<2x2048xf32> to vector<1x256xf32>
    %133 = vector.extract_strided_slice %130 {offsets = [0, 0], sizes = [32, 1], strides = [1, 1]} : vector<32x2xf32> to vector<32x1xf32>
    %134 = vector.broadcast %133 : vector<32x1xf32> to vector<32x256xf32>
    %135 = vector.broadcast %131 : vector<1x256xf32> to vector<32x256xf32>
    %136 = arith.mulf %134, %135 : vector<32x256xf32>
    %137 = vector.extract_strided_slice %130 {offsets = [0, 1], sizes = [32, 1], strides = [1, 1]} : vector<32x2xf32> to vector<32x1xf32>
    %138 = vector.broadcast %137 : vector<32x1xf32> to vector<32x256xf32>
    %139 = vector.broadcast %132 : vector<1x256xf32> to vector<32x256xf32>
    %140 = arith.mulf %138, %139 : vector<32x256xf32>
    %141 = arith.addf %136, %140 : vector<32x256xf32>
    %142 = arith.truncf %141 : vector<32x256xf32> to vector<32x256xbf16>
    %c0_81 = arith.constant 0 : index
    %c0_82 = arith.constant 0 : index
    %143 = vector.load %arg20[%c0_81, %c0_82] : memref<64x1024xbf16, #tpu.memory_space<vmem>>, vector<32x256xbf16>
    tpu.vector_store %arg20[%c0_81, %c0_82], %142 {strides = array<i32>} : memref<64x1024xbf16, #tpu.memory_space<vmem>>, vector<32x256xbf16>,
    %144 = vector.broadcast %128 : vector<32x1xf32> to vector<32x2xf32>
    %145 = arith.mulf %99, %144 : vector<32x2xf32>
    %146 = vector.extract_strided_slice %40 {offsets = [0, 512], sizes = [1, 256], strides = [1, 1]} : vector<2x2048xf32> to vector<1x256xf32>
    %147 = vector.extract_strided_slice %40 {offsets = [0, 768], sizes = [1, 256], strides = [1, 1]} : vector<2x2048xf32> to vector<1x256xf32>
    %148 = vector.extract_strided_slice %145 {offsets = [0, 0], sizes = [32, 1], strides = [1, 1]} : vector<32x2xf32> to vector<32x1xf32>
    %149 = vector.broadcast %148 : vector<32x1xf32> to vector<32x256xf32>
    %150 = vector.broadcast %146 : vector<1x256xf32> to vector<32x256xf32>
    %151 = arith.mulf %149, %150 : vector<32x256xf32>
    %152 = vector.extract_strided_slice %145 {offsets = [0, 1], sizes = [32, 1], strides = [1, 1]} : vector<32x2xf32> to vector<32x1xf32>
    %153 = vector.broadcast %152 : vector<32x1xf32> to vector<32x256xf32>
    %154 = vector.broadcast %147 : vector<1x256xf32> to vector<32x256xf32>
    %155 = arith.mulf %153, %154 : vector<32x256xf32>
    %156 = arith.addf %151, %155 : vector<32x256xf32>
    %157 = arith.truncf %156 : vector<32x256xf32> to vector<32x256xbf16>
    %c0_83 = arith.constant 0 : index
    %c256 = arith.constant 256 : index
    %158 = vector.load %arg20[%c0_83, %c256] : memref<64x1024xbf16, #tpu.memory_space<vmem>>, vector<32x256xbf16>
    tpu.vector_store %arg20[%c0_83, %c256], %157 {strides = array<i32>} : memref<64x1024xbf16, #tpu.memory_space<vmem>>, vector<32x256xbf16>,
    %159 = vector.broadcast %128 : vector<32x1xf32> to vector<32x2xf32>
    %160 = arith.mulf %110, %159 : vector<32x2xf32>
    %161 = vector.extract_strided_slice %40 {offsets = [0, 1024], sizes = [1, 256], strides = [1, 1]} : vector<2x2048xf32> to vector<1x256xf32>
    %162 = vector.extract_strided_slice %40 {offsets = [0, 1280], sizes = [1, 256], strides = [1, 1]} : vector<2x2048xf32> to vector<1x256xf32>
    %163 = vector.extract_strided_slice %160 {offsets = [0, 0], sizes = [32, 1], strides = [1, 1]} : vector<32x2xf32> to vector<32x1xf32>
    %164 = vector.broadcast %163 : vector<32x1xf32> to vector<32x256xf32>
    %165 = vector.broadcast %161 : vector<1x256xf32> to vector<32x256xf32>
    %166 = arith.mulf %164, %165 : vector<32x256xf32>
    %167 = vector.extract_strided_slice %160 {offsets = [0, 1], sizes = [32, 1], strides = [1, 1]} : vector<32x2xf32> to vector<32x1xf32>
    %168 = vector.broadcast %167 : vector<32x1xf32> to vector<32x256xf32>
    %169 = vector.broadcast %162 : vector<1x256xf32> to vector<32x256xf32>
    %170 = arith.mulf %168, %169 : vector<32x256xf32>
    %171 = arith.addf %166, %170 : vector<32x256xf32>
    %172 = arith.truncf %171 : vector<32x256xf32> to vector<32x256xbf16>
    %c0_84 = arith.constant 0 : index
    %c512 = arith.constant 512 : index
    %173 = vector.load %arg20[%c0_84, %c512] : memref<64x1024xbf16, #tpu.memory_space<vmem>>, vector<32x256xbf16>
    tpu.vector_store %arg20[%c0_84, %c512], %172 {strides = array<i32>} : memref<64x1024xbf16, #tpu.memory_space<vmem>>, vector<32x256xbf16>,
    %174 = vector.broadcast %128 : vector<32x1xf32> to vector<32x2xf32>
    %175 = arith.mulf %121, %174 : vector<32x2xf32>
    %176 = vector.extract_strided_slice %40 {offsets = [0, 1536], sizes = [1, 256], strides = [1, 1]} : vector<2x2048xf32> to vector<1x256xf32>
    %177 = vector.extract_strided_slice %40 {offsets = [0, 1792], sizes = [1, 256], strides = [1, 1]} : vector<2x2048xf32> to vector<1x256xf32>
    %178 = vector.extract_strided_slice %175 {offsets = [0, 0], sizes = [32, 1], strides = [1, 1]} : vector<32x2xf32> to vector<32x1xf32>
    %179 = vector.broadcast %178 : vector<32x1xf32> to vector<32x256xf32>
    %180 = vector.broadcast %176 : vector<1x256xf32> to vector<32x256xf32>
    %181 = arith.mulf %179, %180 : vector<32x256xf32>
    %182 = vector.extract_strided_slice %175 {offsets = [0, 1], sizes = [32, 1], strides = [1, 1]} : vector<32x2xf32> to vector<32x1xf32>
    %183 = vector.broadcast %182 : vector<32x1xf32> to vector<32x256xf32>
    %184 = vector.broadcast %177 : vector<1x256xf32> to vector<32x256xf32>
    %185 = arith.mulf %183, %184 : vector<32x256xf32>
    %186 = arith.addf %181, %185 : vector<32x256xf32>
    %187 = arith.truncf %186 : vector<32x256xf32> to vector<32x256xbf16>
    %c0_85 = arith.constant 0 : index
    %c768 = arith.constant 768 : index
    %188 = vector.load %arg20[%c0_85, %c768] : memref<64x1024xbf16, #tpu.memory_space<vmem>>, vector<32x256xbf16>
    tpu.vector_store %arg20[%c0_85, %c768], %187 {strides = array<i32>} : memref<64x1024xbf16, #tpu.memory_space<vmem>>, vector<32x256xbf16>,
    %cst_86 = arith.constant 0.000000e+00 : f32
    %189 = vector.broadcast %cst_86 : f32 to vector<32x1xf32>
    %c0_87 = arith.constant 0 : index
    %c0_88 = arith.constant 0 : index
    %c0_89 = arith.constant 0 : index
    %190 = vector.load %arg11[%c0_87, %c0_88, %c0_89] : memref<4x32x2xf32, #tpu.memory_space<vmem>>, vector<1x32x2xf32>
    %191 = vector.shape_cast %190 : vector<1x32x2xf32> to vector<32x2xf32>
    %cst_90 = arith.constant 0.353553385 : f32
    %192 = vector.broadcast %cst_90 : f32 to vector<32x2xf32>
    %193 = arith.mulf %191, %192 : vector<32x2xf32>
    %194 = vector.extract_strided_slice %47 {offsets = [1, 0], sizes = [1, 2], strides = [1, 1]} : vector<2x2xf32> to vector<1x2xf32>
    %195 = vector.broadcast %194 : vector<1x2xf32> to vector<32x2xf32>
    %196 = arith.mulf %193, %195 : vector<32x2xf32>
    %197 = arith.mulf %196, %196 : vector<32x2xf32>
    %cst_91 = arith.constant dense<0.000000e+00> : vector<32xf32>
    %198 = vector.multi_reduction <add>, %197, %cst_91 [1] : vector<32x2xf32> to vector<32xf32>
    %199 = vector.shape_cast %198 : vector<32xf32> to vector<32x1xf32>
    %200 = arith.addf %189, %199 : vector<32x1xf32>
    %c1_92 = arith.constant 1 : index
    %c0_93 = arith.constant 0 : index
    %c0_94 = arith.constant 0 : index
    %201 = vector.load %arg11[%c1_92, %c0_93, %c0_94] : memref<4x32x2xf32, #tpu.memory_space<vmem>>, vector<1x32x2xf32>
    %202 = vector.shape_cast %201 : vector<1x32x2xf32> to vector<32x2xf32>
    %cst_95 = arith.constant 0.353553385 : f32
    %203 = vector.broadcast %cst_95 : f32 to vector<32x2xf32>
    %204 = arith.mulf %202, %203 : vector<32x2xf32>
    %205 = vector.extract_strided_slice %54 {offsets = [1, 0], sizes = [1, 2], strides = [1, 1]} : vector<2x2xf32> to vector<1x2xf32>
    %206 = vector.broadcast %205 : vector<1x2xf32> to vector<32x2xf32>
    %207 = arith.mulf %204, %206 : vector<32x2xf32>
    %208 = arith.mulf %207, %207 : vector<32x2xf32>
    %cst_96 = arith.constant dense<0.000000e+00> : vector<32xf32>
    %209 = vector.multi_reduction <add>, %208, %cst_96 [1] : vector<32x2xf32> to vector<32xf32>
    %210 = vector.shape_cast %209 : vector<32xf32> to vector<32x1xf32>
    %211 = arith.addf %200, %210 : vector<32x1xf32>
    %c2_97 = arith.constant 2 : index
    %c0_98 = arith.constant 0 : index
    %c0_99 = arith.constant 0 : index
    %212 = vector.load %arg11[%c2_97, %c0_98, %c0_99] : memref<4x32x2xf32, #tpu.memory_space<vmem>>, vector<1x32x2xf32>
    %213 = vector.shape_cast %212 : vector<1x32x2xf32> to vector<32x2xf32>
    %cst_100 = arith.constant 0.353553385 : f32
    %214 = vector.broadcast %cst_100 : f32 to vector<32x2xf32>
    %215 = arith.mulf %213, %214 : vector<32x2xf32>
    %216 = vector.extract_strided_slice %61 {offsets = [1, 0], sizes = [1, 2], strides = [1, 1]} : vector<2x2xf32> to vector<1x2xf32>
    %217 = vector.broadcast %216 : vector<1x2xf32> to vector<32x2xf32>
    %218 = arith.mulf %215, %217 : vector<32x2xf32>
    %219 = arith.mulf %218, %218 : vector<32x2xf32>
    %cst_101 = arith.constant dense<0.000000e+00> : vector<32xf32>
    %220 = vector.multi_reduction <add>, %219, %cst_101 [1] : vector<32x2xf32> to vector<32xf32>
    %221 = vector.shape_cast %220 : vector<32xf32> to vector<32x1xf32>
    %222 = arith.addf %211, %221 : vector<32x1xf32>
    %c3_102 = arith.constant 3 : index
    %c0_103 = arith.constant 0 : index
    %c0_104 = arith.constant 0 : index
    %223 = vector.load %arg11[%c3_102, %c0_103, %c0_104] : memref<4x32x2xf32, #tpu.memory_space<vmem>>, vector<1x32x2xf32>
    %224 = vector.shape_cast %223 : vector<1x32x2xf32> to vector<32x2xf32>
    %cst_105 = arith.constant 0.353553385 : f32
    %225 = vector.broadcast %cst_105 : f32 to vector<32x2xf32>
    %226 = arith.mulf %224, %225 : vector<32x2xf32>
    %227 = vector.extract_strided_slice %68 {offsets = [1, 0], sizes = [1, 2], strides = [1, 1]} : vector<2x2xf32> to vector<1x2xf32>
    %228 = vector.broadcast %227 : vector<1x2xf32> to vector<32x2xf32>
    %229 = arith.mulf %226, %228 : vector<32x2xf32>
    %230 = arith.mulf %229, %229 : vector<32x2xf32>
    %cst_106 = arith.constant dense<0.000000e+00> : vector<32xf32>
    %231 = vector.multi_reduction <add>, %230, %cst_106 [1] : vector<32x2xf32> to vector<32xf32>
    %232 = vector.shape_cast %231 : vector<32xf32> to vector<32x1xf32>
    %233 = arith.addf %222, %232 : vector<32x1xf32>
    %cst_107 = arith.constant 9.99999993E-9 : f32
    %234 = vector.broadcast %cst_107 : f32 to vector<32x1xf32>
    %235 = arith.addf %233, %234 : vector<32x1xf32>
    %236 = math.rsqrt %235 : vector<32x1xf32>
    %237 = vector.broadcast %236 : vector<32x1xf32> to vector<32x2xf32>
    %238 = arith.mulf %196, %237 : vector<32x2xf32>
    %239 = vector.extract_strided_slice %40 {offsets = [1, 0], sizes = [1, 256], strides = [1, 1]} : vector<2x2048xf32> to vector<1x256xf32>
    %240 = vector.extract_strided_slice %40 {offsets = [1, 256], sizes = [1, 256], strides = [1, 1]} : vector<2x2048xf32> to vector<1x256xf32>
    %241 = vector.extract_strided_slice %238 {offsets = [0, 0], sizes = [32, 1], strides = [1, 1]} : vector<32x2xf32> to vector<32x1xf32>
    %242 = vector.broadcast %241 : vector<32x1xf32> to vector<32x256xf32>
    %243 = vector.broadcast %239 : vector<1x256xf32> to vector<32x256xf32>
    %244 = arith.mulf %242, %243 : vector<32x256xf32>
    %245 = vector.extract_strided_slice %238 {offsets = [0, 1], sizes = [32, 1], strides = [1, 1]} : vector<32x2xf32> to vector<32x1xf32>
    %246 = vector.broadcast %245 : vector<32x1xf32> to vector<32x256xf32>
    %247 = vector.broadcast %240 : vector<1x256xf32> to vector<32x256xf32>
    %248 = arith.mulf %246, %247 : vector<32x256xf32>
    %249 = arith.addf %244, %248 : vector<32x256xf32>
    %250 = arith.truncf %249 : vector<32x256xf32> to vector<32x256xbf16>
    %c32 = arith.constant 32 : index
    %c0_108 = arith.constant 0 : index
    %251 = vector.load %arg20[%c32, %c0_108] : memref<64x1024xbf16, #tpu.memory_space<vmem>>, vector<32x256xbf16>
    tpu.vector_store %arg20[%c32, %c0_108], %250 {strides = array<i32>} : memref<64x1024xbf16, #tpu.memory_space<vmem>>, vector<32x256xbf16>,
    %252 = vector.broadcast %236 : vector<32x1xf32> to vector<32x2xf32>
    %253 = arith.mulf %207, %252 : vector<32x2xf32>
    %254 = vector.extract_strided_slice %40 {offsets = [1, 512], sizes = [1, 256], strides = [1, 1]} : vector<2x2048xf32> to vector<1x256xf32>
    %255 = vector.extract_strided_slice %40 {offsets = [1, 768], sizes = [1, 256], strides = [1, 1]} : vector<2x2048xf32> to vector<1x256xf32>
    %256 = vector.extract_strided_slice %253 {offsets = [0, 0], sizes = [32, 1], strides = [1, 1]} : vector<32x2xf32> to vector<32x1xf32>
    %257 = vector.broadcast %256 : vector<32x1xf32> to vector<32x256xf32>
    %258 = vector.broadcast %254 : vector<1x256xf32> to vector<32x256xf32>
    %259 = arith.mulf %257, %258 : vector<32x256xf32>
    %260 = vector.extract_strided_slice %253 {offsets = [0, 1], sizes = [32, 1], strides = [1, 1]} : vector<32x2xf32> to vector<32x1xf32>
    %261 = vector.broadcast %260 : vector<32x1xf32> to vector<32x256xf32>
    %262 = vector.broadcast %255 : vector<1x256xf32> to vector<32x256xf32>
    %263 = arith.mulf %261, %262 : vector<32x256xf32>
    %264 = arith.addf %259, %263 : vector<32x256xf32>
    %265 = arith.truncf %264 : vector<32x256xf32> to vector<32x256xbf16>
    %c32_109 = arith.constant 32 : index
    %c256_110 = arith.constant 256 : index
    %266 = vector.load %arg20[%c32_109, %c256_110] : memref<64x1024xbf16, #tpu.memory_space<vmem>>, vector<32x256xbf16>
    tpu.vector_store %arg20[%c32_109, %c256_110], %265 {strides = array<i32>} : memref<64x1024xbf16, #tpu.memory_space<vmem>>, vector<32x256xbf16>,
    %267 = vector.broadcast %236 : vector<32x1xf32> to vector<32x2xf32>
    %268 = arith.mulf %218, %267 : vector<32x2xf32>
    %269 = vector.extract_strided_slice %40 {offsets = [1, 1024], sizes = [1, 256], strides = [1, 1]} : vector<2x2048xf32> to vector<1x256xf32>
    %270 = vector.extract_strided_slice %40 {offsets = [1, 1280], sizes = [1, 256], strides = [1, 1]} : vector<2x2048xf32> to vector<1x256xf32>
    %271 = vector.extract_strided_slice %268 {offsets = [0, 0], sizes = [32, 1], strides = [1, 1]} : vector<32x2xf32> to vector<32x1xf32>
    %272 = vector.broadcast %271 : vector<32x1xf32> to vector<32x256xf32>
    %273 = vector.broadcast %269 : vector<1x256xf32> to vector<32x256xf32>
    %274 = arith.mulf %272, %273 : vector<32x256xf32>
    %275 = vector.extract_strided_slice %268 {offsets = [0, 1], sizes = [32, 1], strides = [1, 1]} : vector<32x2xf32> to vector<32x1xf32>
    %276 = vector.broadcast %275 : vector<32x1xf32> to vector<32x256xf32>
    %277 = vector.broadcast %270 : vector<1x256xf32> to vector<32x256xf32>
    %278 = arith.mulf %276, %277 : vector<32x256xf32>
    %279 = arith.addf %274, %278 : vector<32x256xf32>
    %280 = arith.truncf %279 : vector<32x256xf32> to vector<32x256xbf16>
    %c32_111 = arith.constant 32 : index
    %c512_112 = arith.constant 512 : index
    %281 = vector.load %arg20[%c32_111, %c512_112] : memref<64x1024xbf16, #tpu.memory_space<vmem>>, vector<32x256xbf16>
    tpu.vector_store %arg20[%c32_111, %c512_112], %280 {strides = array<i32>} : memref<64x1024xbf16, #tpu.memory_space<vmem>>, vector<32x256xbf16>,
    %282 = vector.broadcast %236 : vector<32x1xf32> to vector<32x2xf32>
    %283 = arith.mulf %229, %282 : vector<32x2xf32>
    %284 = vector.extract_strided_slice %40 {offsets = [1, 1536], sizes = [1, 256], strides = [1, 1]} : vector<2x2048xf32> to vector<1x256xf32>
    %285 = vector.extract_strided_slice %40 {offsets = [1, 1792], sizes = [1, 256], strides = [1, 1]} : vector<2x2048xf32> to vector<1x256xf32>
    %286 = vector.extract_strided_slice %283 {offsets = [0, 0], sizes = [32, 1], strides = [1, 1]} : vector<32x2xf32> to vector<32x1xf32>
    %287 = vector.broadcast %286 : vector<32x1xf32> to vector<32x256xf32>
    %288 = vector.broadcast %284 : vector<1x256xf32> to vector<32x256xf32>
    %289 = arith.mulf %287, %288 : vector<32x256xf32>
    %290 = vector.extract_strided_slice %283 {offsets = [0, 1], sizes = [32, 1], strides = [1, 1]} : vector<32x2xf32> to vector<32x1xf32>
    %291 = vector.broadcast %290 : vector<32x1xf32> to vector<32x256xf32>
    %292 = vector.broadcast %285 : vector<1x256xf32> to vector<32x256xf32>
    %293 = arith.mulf %291, %292 : vector<32x256xf32>
    %294 = arith.addf %289, %293 : vector<32x256xf32>
    %295 = arith.truncf %294 : vector<32x256xf32> to vector<32x256xbf16>
    %c32_113 = arith.constant 32 : index
    %c768_114 = arith.constant 768 : index
    %296 = vector.load %arg20[%c32_113, %c768_114] : memref<64x1024xbf16, #tpu.memory_space<vmem>>, vector<32x256xbf16>
    tpu.vector_store %arg20[%c32_113, %c768_114], %295 {strides = array<i32>} : memref<64x1024xbf16, #tpu.memory_space<vmem>>, vector<32x256xbf16>,
    %c0_115 = arith.constant 0 : index
    %c0_116 = arith.constant 0 : index
    %297 = vector.load %arg20[%c0_115, %c0_116] : memref<64x1024xbf16, #tpu.memory_space<vmem>>, vector<64x1024xbf16>
    %c0_117 = arith.constant 0 : index
    %c0_118 = arith.constant 0 : index
    %298 = vector.load %arg9[%c0_117, %c0_118] : memref<1024x256xbf16, #tpu.memory_space<vmem>>, vector<1024x256xbf16>
    %cst_119 = arith.constant dense<0.000000e+00> : vector<64x256xf32>
    %299 = tpu.matmul %297, %298, %cst_119 {dimension_numbers = #tpu.dot_dimension_numbers<[1], [0], [0], [1], [0, 0, 1, 1], [], []>} : vector<64x1024xbf16>, vector<1024x256xbf16>, vector<64x256xf32> -> vector<64x256xf32>
    %c0_120 = arith.constant 0 : index
    %c0_121 = arith.constant 0 : index
    %300 = vector.load %arg13[%c0_120, %c0_121] : memref<32x32xf32, #tpu.memory_space<vmem>>, vector<32x32xf32>
    %301 = vector.extract_strided_slice %74 {offsets = [0, 0], sizes = [1, 32], strides = [1, 1]} : vector<2x32xf32> to vector<1x32xf32>
    %cst_122 = arith.constant 0.176776692 : f32
    %302 = vector.broadcast %cst_122 : f32 to vector<32x32xf32>
    %303 = arith.mulf %300, %302 : vector<32x32xf32>
    %304 = vector.broadcast %301 : vector<1x32xf32> to vector<32x32xf32>
    %305 = arith.mulf %303, %304 : vector<32x32xf32>
    %306 = arith.mulf %305, %305 : vector<32x32xf32>
    %cst_123 = arith.constant dense<0.000000e+00> : vector<32xf32>
    %307 = vector.multi_reduction <add>, %306, %cst_123 [1] : vector<32x32xf32> to vector<32xf32>
    %308 = vector.shape_cast %307 : vector<32xf32> to vector<32x1xf32>
    %cst_124 = arith.constant 9.99999993E-9 : f32
    %309 = vector.broadcast %cst_124 : f32 to vector<32x1xf32>
    %310 = arith.addf %308, %309 : vector<32x1xf32>
    %311 = math.rsqrt %310 : vector<32x1xf32>
    %312 = vector.broadcast %311 : vector<32x1xf32> to vector<32x32xf32>
    %313 = arith.mulf %305, %312 : vector<32x32xf32>
    %c0_125 = arith.constant 0 : index
    %c0_126 = arith.constant 0 : index
    %314 = vector.load %arg15[%c0_125, %c0_126] : memref<3x32xf32, #tpu.memory_space<vmem>>, vector<3x32xf32>
    %315 = vector.extract_strided_slice %80 {offsets = [0, 0], sizes = [1, 32], strides = [1, 1]} : vector<2x32xf32> to vector<1x32xf32>
    %cst_127 = arith.constant 0.176776692 : f32
    %316 = vector.broadcast %cst_127 : f32 to vector<3x32xf32>
    %317 = arith.mulf %314, %316 : vector<3x32xf32>
    %318 = vector.broadcast %315 : vector<1x32xf32> to vector<3x32xf32>
    %319 = arith.mulf %317, %318 : vector<3x32xf32>
    %320 = arith.mulf %319, %319 : vector<3x32xf32>
    %cst_128 = arith.constant dense<0.000000e+00> : vector<3xf32>
    %321 = vector.multi_reduction <add>, %320, %cst_128 [1] : vector<3x32xf32> to vector<3xf32>
    %322 = vector.shape_cast %321 : vector<3xf32> to vector<3x1xf32>
    %cst_129 = arith.constant 9.99999993E-9 : f32
    %323 = vector.broadcast %cst_129 : f32 to vector<3x1xf32>
    %324 = arith.addf %322, %323 : vector<3x1xf32>
    %325 = math.rsqrt %324 : vector<3x1xf32>
    %326 = vector.broadcast %325 : vector<3x1xf32> to vector<3x32xf32>
    %327 = arith.mulf %319, %326 : vector<3x32xf32>
    %328 = vector.extract_strided_slice %299 {offsets = [0, 0], sizes = [32, 256], strides = [1, 1]} : vector<64x256xf32> to vector<32x256xf32>
    %c0_130 = arith.constant 0 : index
    %c0_131 = arith.constant 0 : index
    %329 = vector.load %arg16[%c0_130, %c0_131] : memref<32x1xf32, #tpu.memory_space<vmem>>, vector<32x1xf32>
    %330 = vector.broadcast %329 : vector<32x1xf32> to vector<32x256xf32>
    %331 = arith.addf %328, %330 : vector<32x256xf32>
    %cst_132 = arith.constant 2.000000e-01 : f32
    %332 = vector.broadcast %cst_132 : f32 to vector<32x256xf32>
    %333 = arith.mulf %332, %331 : vector<32x256xf32>
    %334 = arith.maximumf %331, %333 : vector<32x256xf32>
    %cst_133 = arith.constant 1.41421354 : f32
    %335 = vector.broadcast %cst_133 : f32 to vector<32x256xf32>
    %336 = arith.mulf %334, %335 : vector<32x256xf32>
    %cst_134 = arith.constant dense<0.000000e+00> : vector<32x256xf32>
    %337 = tpu.matmul %313, %336, %cst_134 {dimension_numbers = #tpu.dot_dimension_numbers<[1], [0], [0], [1], [0, 0, 1, 1], [], []>} : vector<32x32xf32>, vector<32x256xf32>, vector<32x256xf32> -> vector<32x256xf32>
    %c0_135 = arith.constant 0 : index
    %c0_136 = arith.constant 0 : index
    %338 = vector.load %arg17[%c0_135, %c0_136] : memref<32x1xf32, #tpu.memory_space<vmem>>, vector<32x1xf32>
    %339 = vector.broadcast %338 : vector<32x1xf32> to vector<32x256xf32>
    %340 = arith.addf %337, %339 : vector<32x256xf32>
    %cst_137 = arith.constant 2.000000e-01 : f32
    %341 = vector.broadcast %cst_137 : f32 to vector<32x256xf32>
    %342 = arith.mulf %341, %340 : vector<32x256xf32>
    %343 = arith.maximumf %340, %342 : vector<32x256xf32>
    %cst_138 = arith.constant 1.41421354 : f32
    %344 = vector.broadcast %cst_138 : f32 to vector<32x256xf32>
    %345 = arith.mulf %343, %344 : vector<32x256xf32>
    %cst_139 = arith.constant dense<0.000000e+00> : vector<3x256xf32>
    %346 = tpu.matmul %327, %345, %cst_139 {dimension_numbers = #tpu.dot_dimension_numbers<[1], [0], [0], [1], [0, 0, 1, 1], [], []>} : vector<3x32xf32>, vector<32x256xf32>, vector<3x256xf32> -> vector<3x256xf32>
    %c0_140 = arith.constant 0 : index
    %c0_141 = arith.constant 0 : index
    %347 = vector.load %arg18[%c0_140, %c0_141] : memref<3x1xf32, #tpu.memory_space<vmem>>, vector<3x1xf32>
    %348 = vector.broadcast %347 : vector<3x1xf32> to vector<3x256xf32>
    %349 = arith.addf %346, %348 : vector<3x256xf32>
    %c0_142 = arith.constant 0 : index
    %c0_143 = arith.constant 0 : index
    %c0_144 = arith.constant 0 : index
    %350 = vector.load %arg19[%c0_142, %c0_143, %c0_144] : memref<2x3x256xf32, #tpu.memory_space<vmem>>, vector<1x3x256xf32>
    %351 = vector.shape_cast %350 : vector<1x3x256xf32> to vector<3x256xf32>
    %352 = vector.shape_cast %349 : vector<3x256xf32> to vector<1x3x256xf32>
    tpu.vector_store %arg19[%c0_142, %c0_143, %c0_144], %352 {strides = array<i32>} : memref<2x3x256xf32, #tpu.memory_space<vmem>>, vector<1x3x256xf32>,
    %c0_145 = arith.constant 0 : index
    %c0_146 = arith.constant 0 : index
    %353 = vector.load %arg13[%c0_145, %c0_146] : memref<32x32xf32, #tpu.memory_space<vmem>>, vector<32x32xf32>
    %354 = vector.extract_strided_slice %74 {offsets = [1, 0], sizes = [1, 32], strides = [1, 1]} : vector<2x32xf32> to vector<1x32xf32>
    %cst_147 = arith.constant 0.176776692 : f32
    %355 = vector.broadcast %cst_147 : f32 to vector<32x32xf32>
    %356 = arith.mulf %353, %355 : vector<32x32xf32>
    %357 = vector.broadcast %354 : vector<1x32xf32> to vector<32x32xf32>
    %358 = arith.mulf %356, %357 : vector<32x32xf32>
    %359 = arith.mulf %358, %358 : vector<32x32xf32>
    %cst_148 = arith.constant dense<0.000000e+00> : vector<32xf32>
    %360 = vector.multi_reduction <add>, %359, %cst_148 [1] : vector<32x32xf32> to vector<32xf32>
    %361 = vector.shape_cast %360 : vector<32xf32> to vector<32x1xf32>
    %cst_149 = arith.constant 9.99999993E-9 : f32
    %362 = vector.broadcast %cst_149 : f32 to vector<32x1xf32>
    %363 = arith.addf %361, %362 : vector<32x1xf32>
    %364 = math.rsqrt %363 : vector<32x1xf32>
    %365 = vector.broadcast %364 : vector<32x1xf32> to vector<32x32xf32>
    %366 = arith.mulf %358, %365 : vector<32x32xf32>
    %c0_150 = arith.constant 0 : index
    %c0_151 = arith.constant 0 : index
    %367 = vector.load %arg15[%c0_150, %c0_151] : memref<3x32xf32, #tpu.memory_space<vmem>>, vector<3x32xf32>
    %368 = vector.extract_strided_slice %80 {offsets = [1, 0], sizes = [1, 32], strides = [1, 1]} : vector<2x32xf32> to vector<1x32xf32>
    %cst_152 = arith.constant 0.176776692 : f32
    %369 = vector.broadcast %cst_152 : f32 to vector<3x32xf32>
    %370 = arith.mulf %367, %369 : vector<3x32xf32>
    %371 = vector.broadcast %368 : vector<1x32xf32> to vector<3x32xf32>
    %372 = arith.mulf %370, %371 : vector<3x32xf32>
    %373 = arith.mulf %372, %372 : vector<3x32xf32>
    %cst_153 = arith.constant dense<0.000000e+00> : vector<3xf32>
    %374 = vector.multi_reduction <add>, %373, %cst_153 [1] : vector<3x32xf32> to vector<3xf32>
    %375 = vector.shape_cast %374 : vector<3xf32> to vector<3x1xf32>
    %cst_154 = arith.constant 9.99999993E-9 : f32
    %376 = vector.broadcast %cst_154 : f32 to vector<3x1xf32>
    %377 = arith.addf %375, %376 : vector<3x1xf32>
    %378 = math.rsqrt %377 : vector<3x1xf32>
    %379 = vector.broadcast %378 : vector<3x1xf32> to vector<3x32xf32>
    %380 = arith.mulf %372, %379 : vector<3x32xf32>
    %381 = vector.extract_strided_slice %299 {offsets = [32, 0], sizes = [32, 256], strides = [1, 1]} : vector<64x256xf32> to vector<32x256xf32>
    %c0_155 = arith.constant 0 : index
    %c0_156 = arith.constant 0 : index
    %382 = vector.load %arg16[%c0_155, %c0_156] : memref<32x1xf32, #tpu.memory_space<vmem>>, vector<32x1xf32>
    %383 = vector.broadcast %382 : vector<32x1xf32> to vector<32x256xf32>
    %384 = arith.addf %381, %383 : vector<32x256xf32>
    %cst_157 = arith.constant 2.000000e-01 : f32
    %385 = vector.broadcast %cst_157 : f32 to vector<32x256xf32>
    %386 = arith.mulf %385, %384 : vector<32x256xf32>
    %387 = arith.maximumf %384, %386 : vector<32x256xf32>
    %cst_158 = arith.constant 1.41421354 : f32
    %388 = vector.broadcast %cst_158 : f32 to vector<32x256xf32>
    %389 = arith.mulf %387, %388 : vector<32x256xf32>
    %cst_159 = arith.constant dense<0.000000e+00> : vector<32x256xf32>
    %390 = tpu.matmul %366, %389, %cst_159 {dimension_numbers = #tpu.dot_dimension_numbers<[1], [0], [0], [1], [0, 0, 1, 1], [], []>} : vector<32x32xf32>, vector<32x256xf32>, vector<32x256xf32> -> vector<32x256xf32>
    %c0_160 = arith.constant 0 : index
    %c0_161 = arith.constant 0 : index
    %391 = vector.load %arg17[%c0_160, %c0_161] : memref<32x1xf32, #tpu.memory_space<vmem>>, vector<32x1xf32>
    %392 = vector.broadcast %391 : vector<32x1xf32> to vector<32x256xf32>
    %393 = arith.addf %390, %392 : vector<32x256xf32>
    %cst_162 = arith.constant 2.000000e-01 : f32
    %394 = vector.broadcast %cst_162 : f32 to vector<32x256xf32>
    %395 = arith.mulf %394, %393 : vector<32x256xf32>
    %396 = arith.maximumf %393, %395 : vector<32x256xf32>
    %cst_163 = arith.constant 1.41421354 : f32
    %397 = vector.broadcast %cst_163 : f32 to vector<32x256xf32>
    %398 = arith.mulf %396, %397 : vector<32x256xf32>
    %cst_164 = arith.constant dense<0.000000e+00> : vector<3x256xf32>
    %399 = tpu.matmul %380, %398, %cst_164 {dimension_numbers = #tpu.dot_dimension_numbers<[1], [0], [0], [1], [0, 0, 1, 1], [], []>} : vector<3x32xf32>, vector<32x256xf32>, vector<3x256xf32> -> vector<3x256xf32>
    %c0_165 = arith.constant 0 : index
    %c0_166 = arith.constant 0 : index
    %400 = vector.load %arg18[%c0_165, %c0_166] : memref<3x1xf32, #tpu.memory_space<vmem>>, vector<3x1xf32>
    %401 = vector.broadcast %400 : vector<3x1xf32> to vector<3x256xf32>
    %402 = arith.addf %399, %401 : vector<3x256xf32>
    %c1_167 = arith.constant 1 : index
    %c0_168 = arith.constant 0 : index
    %c0_169 = arith.constant 0 : index
    %403 = vector.load %arg19[%c1_167, %c0_168, %c0_169] : memref<2x3x256xf32, #tpu.memory_space<vmem>>, vector<1x3x256xf32>
    %404 = vector.shape_cast %403 : vector<1x3x256xf32> to vector<3x256xf32>
    %405 = vector.shape_cast %402 : vector<3x256xf32> to vector<1x3x256xf32>
    tpu.vector_store %arg19[%c1_167, %c0_168, %c0_169], %405 {strides = array<i32>} : memref<2x3x256xf32, #tpu.memory_space<vmem>>, vector<1x3x256xf32>,
    return
  }
  func.func @transform_0(%arg0: i32) -> (i32, i32) {
    %c0_i32 = arith.constant 0 : i32
    %c0_i32_0 = arith.constant 0 : i32
    %c0_i32_1 = arith.constant 0 : i32
    return %c0_i32, %c0_i32_0 : i32, i32
  }
  func.func @transform_1(%arg0: i32) -> (i32, i32) {
    %c0_i32 = arith.constant 0 : i32
    %c0_i32_0 = arith.constant 0 : i32
    %c0_i32_1 = arith.constant 0 : i32
    return %c0_i32, %c0_i32_0 : i32, i32
  }
  func.func @transform_2(%arg0: i32) -> (i32, i32) {
    %c0_i32 = arith.constant 0 : i32
    %c0_i32_0 = arith.constant 0 : i32
    %c0_i32_1 = arith.constant 0 : i32
    return %c0_i32, %c0_i32_0 : i32, i32
  }
  func.func @transform_3(%arg0: i32) -> (i32, i32) {
    %c0_i32 = arith.constant 0 : i32
    %c0_i32_0 = arith.constant 0 : i32
    %c0_i32_1 = arith.constant 0 : i32
    return %c0_i32, %c0_i32_0 : i32, i32
  }
  func.func @transform_4(%arg0: i32) -> (i32, i32) {
    %c0_i32 = arith.constant 0 : i32
    %c0_i32_0 = arith.constant 0 : i32
    %c0_i32_1 = arith.constant 0 : i32
    return %c0_i32, %c0_i32_0 : i32, i32
  }
  func.func @transform_5(%arg0: i32) -> (i32, i32) {
    %c0_i32 = arith.constant 0 : i32
    %c0_i32_0 = arith.constant 0 : i32
    %c0_i32_1 = arith.constant 0 : i32
    return %c0_i32, %c0_i32_0 : i32, i32
  }
  func.func @transform_6(%arg0: i32) -> (i32, i32) {
    %c0_i32 = arith.constant 0 : i32
    %c0_i32_0 = arith.constant 0 : i32
    %c0_i32_1 = arith.constant 0 : i32
    return %c0_i32, %c0_i32_0 : i32, i32
  }
  func.func @transform_7(%arg0: i32) -> (i32, i32) {
    %c0_i32 = arith.constant 0 : i32
    %c0_i32_0 = arith.constant 0 : i32
    %c0_i32_1 = arith.constant 0 : i32
    return %c0_i32, %c0_i32_0 : i32, i32
  }
  func.func @transform_8(%arg0: i32) -> (i32, i32) {
    %c0_i32 = arith.constant 0 : i32
    %c0_i32_0 = arith.constant 0 : i32
    %c0_i32_1 = arith.constant 0 : i32
    return %c0_i32, %c0_i32_0 : i32, i32
  }
  func.func @transform_9(%arg0: i32) -> (i32, i32, i32) {
    %c0_i32 = arith.constant 0 : i32
    %c0_i32_0 = arith.constant 0 : i32
    %c0_i32_1 = arith.constant 0 : i32
    %c0_i32_2 = arith.constant 0 : i32
    return %c0_i32, %c0_i32_0, %c0_i32_1 : i32, i32, i32
  }
  func.func @transform_10(%arg0: i32) -> (i32, i32, i32) {
    %c0_i32 = arith.constant 0 : i32
    %c0_i32_0 = arith.constant 0 : i32
    %c0_i32_1 = arith.constant 0 : i32
    %c0_i32_2 = arith.constant 0 : i32
    return %c0_i32, %c0_i32_0, %c0_i32_1 : i32, i32, i32
  }
  func.func @transform_11(%arg0: i32) -> (i32, i32) {
    %c0_i32 = arith.constant 0 : i32
    %c0_i32_0 = arith.constant 0 : i32
    %c0_i32_1 = arith.constant 0 : i32
    return %c0_i32, %c0_i32_0 : i32, i32
  }
  func.func @transform_12(%arg0: i32) -> (i32, i32) {
    %c0_i32 = arith.constant 0 : i32
    %c0_i32_0 = arith.constant 0 : i32
    %c0_i32_1 = arith.constant 0 : i32
    return %c0_i32, %c0_i32_0 : i32, i32
  }
  func.func @transform_13(%arg0: i32) -> (i32, i32) {
    %c0_i32 = arith.constant 0 : i32
    %c0_i32_0 = arith.constant 0 : i32
    %c0_i32_1 = arith.constant 0 : i32
    return %c0_i32, %c0_i32_0 : i32, i32
  }
  func.func @transform_14(%arg0: i32) -> (i32, i32) {
    %c0_i32 = arith.constant 0 : i32
    %c0_i32_0 = arith.constant 0 : i32
    %c0_i32_1 = arith.constant 0 : i32
    return %c0_i32, %c0_i32_0 : i32, i32
  }
  func.func @transform_15(%arg0: i32) -> (i32, i32) {
    %c0_i32 = arith.constant 0 : i32
    %c0_i32_0 = arith.constant 0 : i32
    %c0_i32_1 = arith.constant 0 : i32
    return %c0_i32, %c0_i32_0 : i32, i32
  }
  func.func @transform_16(%arg0: i32) -> (i32, i32) {
    %c0_i32 = arith.constant 0 : i32
    %c0_i32_0 = arith.constant 0 : i32
    %c0_i32_1 = arith.constant 0 : i32
    return %c0_i32, %c0_i32_0 : i32, i32
  }
  func.func @transform_17(%arg0: i32) -> (i32, i32) {
    %c0_i32 = arith.constant 0 : i32
    %c0_i32_0 = arith.constant 0 : i32
    %c0_i32_1 = arith.constant 0 : i32
    return %c0_i32, %c0_i32_0 : i32, i32
  }
  func.func @transform_18(%arg0: i32) -> (i32, i32, i32) {
    %c0_i32 = arith.constant 0 : i32
    %c0_i32_0 = arith.constant 0 : i32
    %c0_i32_1 = arith.constant 0 : i32
    %c0_i32_2 = arith.constant 0 : i32
    return %c0_i32, %c0_i32_0, %c0_i32_1 : i32, i32, i32
  }
}

</mosaic_0001>

<bundles_post_ra>
// kernel: hash_generator_forward.1
= control target key start
LH: loop header
LB: loop body
LE: loop exit
PB: predicated region body
PF: predicated region fallthrough
CT: control target
= control target key end

     0   :  { %s7131_s0 = inlined_call_operand.vmem [shape: f32[2,32], index: 0, kind: input, shape index: {}]   ;;  %s7132_s1 = inlined_call_operand.vmem [shape: f32[32,64], index: 1, kind: input, shape index: {}]   ;;  %s7133_s2 = inlined_call_operand.vmem [shape: f32[1,64], index: 2, kind: input, shape index: {}]   ;;  %s7134_s3 = inlined_call_operand.vmem [shape: f32[64,64], index: 3, kind: input, shape index: {}]   ;;  %s7135_s4 = inlined_call_operand.vmem [shape: f32[1,64], index: 4, kind: input, shape index: {}]   ;;  %s7136_s5 = inlined_call_operand.vmem [shape: f32[64,64], index: 5, kind: input, shape index: {}]   ;;  %s7137_s6 = inlined_call_operand.vmem [shape: f32[1,64], index: 6, kind: input, shape index: {}]   ;;  %s7138_s7 = inlined_call_operand.hbm [shape: f32[64,2048], index: 7, kind: input, shape index: {}]   ;;  %s7139_s8 = inlined_call_operand.hbm [shape: bf16[1024,256], index: 8, kind: input, shape index: {}]   ;;  %s7140_s9 = inlined_call_operand.vmem [shape: f32[4,64,2], index: 9, kind: input, shape index: {}]   ;;  %s7141_s10 = inlined_call_operand.vmem [shape: f32[4,32,2], index: 10, kind: input, shape index: {}]   ;;  %s7142_s11 = inlined_call_operand.vmem [shape: f32[64,32], index: 11, kind: input, shape index: {}]   ;;  %s7143_s12 = inlined_call_operand.vmem [shape: f32[32,32], index: 12, kind: input, shape index: {}]   ;;  %s7144_s13 = inlined_call_operand.vmem [shape: f32[64,32], index: 13, kind: input, shape index: {}]   ;;  %s7145_s14 = inlined_call_operand.vmem [shape: f32[3,32], index: 14, kind: input, shape index: {}]   ;;  %s7146_s15 = inlined_call_operand.vmem [shape: f32[32,1], index: 15, kind: input, shape index: {}]   ;;  %s7147_s16 = inlined_call_operand.vmem [shape: f32[32,1], index: 16, kind: input, shape index: {}]   ;;  %s7148_s17 = inlined_call_operand.vmem [shape: f32[3,1], index: 17, kind: input, shape index: {}]   ;;  %s7149_s18 = inlined_call_operand.vmem [shape: f32[2,3,256], index: 18, kind: output, shape index: {}]  }
   0x1   :  { %7169 = sst [smem:[#allocation29_spill]] %s7131_s0 }
   0x2   :  { %7170 = sst [smem:[#allocation30_spill]] %s7132_s1 }
   0x3   :  { %7171 = sst [smem:[#allocation31_spill]] %s7133_s2 }
   0x4   :  { %23 = vsyncpa [#allocation4], 0 }
   0x5   :  { %24 = vsyncpa [#allocation6], 0  ;;  %s5591_s27 = smov [#allocation3]  }
   0x6   :  { %s44_s28 = sshll.u32 %s5591_s27, 4  ;;  %s45_s28 = int_to_ptr.vmem [resolvable:$true] %s44_s28 }
   0x7   :  { %s5555_s29 = scalar_lea.vmem %s45_s28, 16384  ;;  %p5560_p1 = scmp.lt.s32.totalorder %s45_s28, %s45_s28 }
   0x8   :  { %p5556_p0 = scmp.ne.s32.totalorder %s45_s28, %s5555_s29  ;;  %p5561_p2 = scmp.lt.s32.totalorder %s5555_s29, %s5555_s29 }
   0xa   :  { %p5562_p3 = por %p5561_p2, %p5560_p1 }
   0xc   :  { %p5563_p4 = pnand %p5562_p3, %p5556_p0 }
   0xe   :  { %5566 = shalt.err (!%p5563_p4)
}
   0xf   :  { %s5592_s30 = smov 2048   ;;  %s5593_s0 = smov 128  }
  0x10   :  { %50 = dma.hbm_to_vmem [thread:$0]  %s7138_s7, 16384, %s45_s28, [#allocation4], %s5592_s30, %s5592_s30, %s5593_s0  }
  0x11   :  { %s5594_s20 = smov [#allocation5]  }
  0x12   :  { %s56_s21 = sshll.u32 %s5594_s20, 4  ;;  %s57_s21 = int_to_ptr.vmem [resolvable:$true] %s56_s21 }
  0x13   :  { %s5575_s22 = scalar_lea.vmem %s57_s21, 16384  ;;  %p5580_p6 = scmp.lt.s32.totalorder %s57_s21, %s57_s21 }
  0x14   :  { %p5576_p5 = scmp.ne.s32.totalorder %s57_s21, %s5575_s22  ;;  %p5581_p7 = scmp.lt.s32.totalorder %s5575_s22, %s5575_s22 }
  0x16   :  { %p5582_p8 = por %p5581_p7, %p5580_p6 }
  0x18   :  { %p5583_p9 = pnand %p5582_p8, %p5576_p5 }
  0x1a   :  { %5586 = shalt.err (!%p5583_p9)
}
  0x1b   :  { %s5595_s2 = smov 8  }
  0x1c   :  { %62 = dma.hbm_to_vmem [thread:$0]  %s7139_s8, 16384, %s57_s21, [#allocation6], %s5593_s0, %s5593_s0, %s5595_s2  }
  0x1d   :  { %5587 = dma.done.wait [#allocation4], 16384  }
  0x1e   :  { %5588 = vsyncadd [#allocation4], 4294950912 }
  0x1f   :  { %5589 = dma.done.wait [#allocation6], 16384  }
  0x20   :  { %5590 = vsyncadd [#allocation6], 4294950912  ;;  %v7151_v0 = vmov 0.0   ;;  %vm5597_vm0 = vmmov 0   ;;  %s7172_s26 = sld [smem:[#allocation30_spill]]  ;;  %v185_v6 = vld [vmem:[%s7134_s3 + $0x38] sm:$0xff] }
  0x21   :  { %5103 = vmatprep.subr.mxu1 %v7151_v0  ;;  %5111 = vmatprep.mubr.msk.f32.mxu1 %vm5597_vm0, %v7151_v0  ;;  %s7173_s20 = sld [smem:[#allocation29_spill]]  ;;  %vm92_vm1 = vcmask 261120   ;;  %v184_v7 = vld [vmem:[%s7134_s3 + $0x30] sm:$0xff]  ;;  %v183_v8 = vld [vmem:[%s7134_s3 + $0x28] sm:$0xff]  ;;  %v182_v9 = vld [vmem:[%s7134_s3 + $0x20] sm:$0xff]  ;;  %vm186_vm2 = vcmask 523264  }
  0x22   :  { %5133 = vmatprep.subr.mxu0 %v7151_v0  ;;  %5149 = vmatprep.mubr.msk.f32.mxu0 %vm5597_vm0, %v7151_v0  ;;  %v181_v10 = vld [vmem:[%s7134_s3 + $0x18] sm:$0xff]  ;;  %v180_v11 = vld [vmem:[%s7134_s3 + $0x10] sm:$0xff]  ;;  %v179_v12 = vld [vmem:[%s7134_s3 + $0x8] sm:$0xff]  ;;  %s7174_s7 = sld [smem:[#allocation31_spill]]  ;;  %vm1583_vm3 = vcmask 15360   ;;  %vm4039_vm4 = vcmask 256000  }
  0x23   :  { %v178_v13 = vld [vmem:[%s7134_s3] sm:$0xff]  ;;  %v279_v14 = vld [vmem:[%s7136_s5 + $0x38] sm:$0xff]  ;;  %v278_v15 = vld [vmem:[%s7136_s5 + $0x30] sm:$0xff] }
  0x24   :  { %5134 = vmatpush3.msra.mxu0 %v279_v14  ;;  %v277_v24 = vld [vmem:[%s7136_s5 + $0x28] sm:$0xff]  ;;  %v276_v25 = vld [vmem:[%s7136_s5 + $0x20] sm:$0xff]  ;;  %v275_v26 = vld [vmem:[%s7136_s5 + $0x18] sm:$0xff] }
  0x25   :  { %5135 = vmatprep.subr.mxu0 %v7151_v0  ;;  %v274_v27 = vld [vmem:[%s7136_s5 + $0x10] sm:$0xff]  ;;  %v273_v28 = vld [vmem:[%s7136_s5 + $0x8] sm:$0xff]  ;;  %v272_v29 = vld [vmem:[%s7136_s5] sm:$0xff] }
  0x26   :  { %v91_v1 = vld [vmem:[%s7172_s26 + $0x18] sm:$0xff]  ;;  %v90_v2 = vld [vmem:[%s7172_s26 + $0x10] sm:$0xff]  ;;  %v89_v3 = vld [vmem:[%s7172_s26 + $0x8] sm:$0xff]  ;;  %5136 = vmatpush3.msra.mxu0 %v278_v15 }
  0x27   :  { %5104 = vmatpush3.msra.mxu1 %v91_v1  ;;  %v88_v4 = vld [vmem:[%s7172_s26] sm:$0xff]  ;;  %5137 = vmatprep.subr.mxu0 %v7151_v0  ;;  %v478_v30 = vld [vmem:[#allocation3 + $0x388] sm:$0xff]  ;;  %v480_v31 = vld [vmem:[#allocation3 + $0x398] sm:$0xff] }
  0x28   :  { %5105 = vmatprep.subr.mxu1 %v7151_v0  ;;  %v87_v5 = vld [vmem:[%s7173_s20] sm:$0x3]  ;;  %5138 = vmatpush3.msra.mxu0 %v277_v24  ;;  %v462_v33 = vld [vmem:[#allocation3 + $0x308] sm:$0xff]  ;;  %v479_v45 = vld [vmem:[#allocation3 + $0x390] sm:$0xff] }
  0x29   :  { %5106 = vmatpush3.msra.mxu1 %v90_v2  ;;  %v4692_v17 = vld [vmem:[%s7174_s7] ss:$0 sm:$0xff]  ;;  %5139 = vmatprep.subr.mxu0 %v7151_v0  ;;  %v446_v35 = vld [vmem:[#allocation3 + $0x288] sm:$0xff]  ;;  %v464_v46 = vld [vmem:[#allocation3 + $0x318] sm:$0xff] }
  0x2a   :  { %5107 = vmatprep.subr.mxu1 %v7151_v0  ;;  %5140 = vmatpush3.msra.mxu0 %v276_v25  ;;  %v477_v32 = vld [vmem:[#allocation3 + $0x380] sm:$0xff]  ;;  %v463_v47 = vld [vmem:[#allocation3 + $0x310] sm:$0xff]  ;;  %v448_v48 = vld [vmem:[#allocation3 + $0x298] sm:$0xff] }
  0x2b   :  { %5108 = vmatpush3.msra.mxu1 %v89_v3  ;;  %5141 = vmatprep.subr.mxu0 %v7151_v0  ;;  %v461_v34 = vld [vmem:[#allocation3 + $0x300] sm:$0xff]  ;;  %v447_v49 = vld [vmem:[#allocation3 + $0x290] sm:$0xff]  ;;  %v430_v50 = vld [vmem:[#allocation3 + $0x208] sm:$0xff] }
  0x2c   :  { %5109 = vmatprep.subr.mxu1 %v7151_v0  ;;  %5142 = vmatpush3.msra.mxu0 %v275_v26  ;;  %v445_v36 = vld [vmem:[#allocation3 + $0x280] sm:$0xff]  ;;  %v432_v51 = vld [vmem:[#allocation3 + $0x218] sm:$0xff]  ;;  %v431_v53 = vld [vmem:[#allocation3 + $0x210] sm:$0xff] }
  0x2d   :  { %5110 = vmatpush3.msra.mxu1 %v88_v4  ;;  %5143 = vmatprep.subr.mxu0 %v7151_v0  ;;  %v4694_v38 = vld [vmem:[%s7135_s4] ss:$0 sm:$0xff]  ;;  %v414_v54 = vld [vmem:[#allocation3 + $0x188] sm:$0xff]  ;;  %v416_v55 = vld [vmem:[#allocation3 + $0x198] sm:$0xff] }
  0x2e   :  { %5112 = vmatmul.mubr.msk.f32.vlgmr.msra.gmra.mxu1 %vm92_vm1, %v87_v5  ;;  %5114 = vmatprep.subr.mxu1 %v7151_v0  ;;  %v429_v52 = vld [vmem:[#allocation3 + $0x200] sm:$0xff]  ;;  %v415_v57 = vld [vmem:[#allocation3 + $0x190] sm:$0xff]  ;;  %v398_v58 = vld [vmem:[#allocation3 + $0x108] sm:$0xff] }
  0x2f   :  { %5115 = vmatpush3.msra.mxu1 %v185_v6  ;;  %5130 = vmatprep.mubr.msk.f32.mxu1 %vm5597_vm0, %v7151_v0  ;;  %v413_v56 = vld [vmem:[#allocation3 + $0x180] sm:$0xff]  ;;  %v400_v59 = vld [vmem:[#allocation3 + $0x118] sm:$0xff]  ;;  %v399_v61 = vld [vmem:[#allocation3 + $0x110] sm:$0xff] }
  0x30   :  { %5116 = vmatprep.subr.mxu1 %v7151_v0  ;;  %5144 = vmatpush3.msra.mxu0 %v274_v27  ;;  %v397_v60 = vld [vmem:[#allocation3 + $0x100] sm:$0xff]  ;;  %v382_v62 = vld [vmem:[#allocation3 + $0x88] sm:$0xff]  ;;  %v384_v63 = vld [vmem:[#allocation3 + $0x98] sm:$0xff] }
  0x31   :  { %5117 = vmatpush3.msra.mxu1 %v184_v7  ;;  %5145 = vmatprep.subr.mxu0 %v7151_v0  ;;  %v381_v1 = vld [vmem:[#allocation3 + $0x80] sm:$0xff]  ;;  %v383_v2 = vld [vmem:[#allocation3 + $0x90] sm:$0xff]  ;;  %v366_v3 = vld [vmem:[#allocation3 + $0x8] sm:$0xff] }
  0x32   :  { %5118 = vmatprep.subr.mxu1 %v7151_v0  ;;  %5146 = vmatpush3.msra.mxu0 %v273_v28  ;;  %v368_v4 = vld [vmem:[#allocation3 + $0x18] sm:$0xff]  ;;  %v365_v5 = vld [vmem:[#allocation3] sm:$0xff]  ;;  %v367_v6 = vld [vmem:[#allocation3 + $0x10] sm:$0xff] }
  0x33   :  { %5119 = vmatpush3.msra.mxu1 %v183_v8  ;;  %5147 = vmatprep.subr.mxu0 %v7151_v0  ;;  %v482_v7 = vld [vmem:[#allocation3 + $0x3a8] sm:$0xff]  ;;  %v484_v8 = vld [vmem:[#allocation3 + $0x3b8] sm:$0xff]  ;;  %v449_v25 = vld [vmem:[#allocation3 + $0x2a0] sm:$0xff] }
  0x34   :  { %5120 = vmatprep.subr.mxu1 %v7151_v0  ;;  %5148 = vmatpush3.msra.mxu0 %v272_v29  ;;  %v452_v24 = vld [vmem:[#allocation3 + $0x2b8] sm:$0xff]  ;;  %v451_v26 = vld [vmem:[#allocation3 + $0x2b0] sm:$0xff]  ;;  %v434_v27 = vld [vmem:[#allocation3 + $0x228] sm:$0xff] }
  0x35   :  { %5121 = vmatpush3.msra.mxu1 %v182_v9  ;;  %583 = vmatprep.subr.mxu0 %v480_v31  ;;  %v436_v28 = vld [vmem:[#allocation3 + $0x238] sm:$0xff]  ;;  %v433_v29 = vld [vmem:[#allocation3 + $0x220] sm:$0xff]  ;;  %v418_v31 = vld [vmem:[#allocation3 + $0x1a8] sm:$0xff] }
  0x36   :  { %5122 = vmatprep.subr.mxu1 %v7151_v0 }
  0x37   :  { %5123 = vmatpush3.msra.mxu1 %v181_v10  ;;  %v4696_v10 = vld [vmem:[%s7137_s6] ss:$0 sm:$0xff] }
  0x38   :  { %5124 = vmatprep.subr.mxu1 %v7151_v0 }
  0x39   :  { %5125 = vmatpush3.msra.mxu1 %v180_v11 }
  0x3a   :  { %5126 = vmatprep.subr.mxu1 %v7151_v0 }
  0x3b   :  { %5127 = vmatpush3.msra.mxu1 %v179_v12 }
  0x3c   :  { %5128 = vmatprep.subr.mxu1 %v7151_v0 }
  0x3d   :  { %5129 = vmatpush3.msra.mxu1 %v178_v13 }
  0x3e   :  { %512 = vmatprep.subr.mxu1 %v478_v30  ;;  %v435_v30 = vld [vmem:[#allocation3 + $0x230] sm:$0xff] }
  0xee   :  { %v162_v16 = vpop.f32.mrf.mxu1 }
  0xef   :  { %v166_v18 = vmul.f32 0.17677669, %v162_v16 }
  0xf0   :  { %v5113_v19 = vpop.f32.mrf.mxu1 }
  0xf1   :  { %v174_v20 = vadd.f32 %v4692_v17, %v166_v18  ;;  %v481_v17 = vld [vmem:[#allocation3 + $0x3a0] sm:$0xff]  ;;  %v483_v18 = vld [vmem:[#allocation3 + $0x3b0] sm:$0xff]  ;;  %v466_v19 = vld [vmem:[#allocation3 + $0x328] sm:$0xff] }
  0xf3   :  { %v175_v21 = vmul.f32 0.2, %v174_v20 }
  0xf5   :  { %v176_v22 = vmax.f32 %v174_v20, %v175_v21  ;;  %v468_v20 = vld [vmem:[#allocation3 + $0x338] sm:$0xff]  ;;  %v465_v21 = vld [vmem:[#allocation3 + $0x320] sm:$0xff] }
  0xf7   :  { %v177_v23 = vmul.f32 1.4142135, %v176_v22  ;;  %v467_v22 = vld [vmem:[#allocation3 + $0x330] sm:$0xff] }
  0xf9   :  { %5131 = vmatmul.mubr.msk.f32.vlgmr.msra.gmra.mxu1 %vm186_vm2, %v177_v23  ;;  %v450_v23 = vld [vmem:[#allocation3 + $0x2a8] sm:$0xff] }
  0xfa   :  { %560 = vmatprep.mubr.f32.mxu1 %v7151_v0  ;;  %513 = vmatpush1.msra.mxu1 %v477_v32  ;;  %v420_v32 = vld [vmem:[#allocation3 + $0x1b8] sm:$0xff] }
  0xfb   :  { %514 = vmatprep.subr.mxu1 %v462_v33  ;;  %v417_v33 = vld [vmem:[#allocation3 + $0x1a0] sm:$0xff] }
  0xfc   :  { %515 = vmatpush1.msra.mxu1 %v461_v34  ;;  %v419_v34 = vld [vmem:[#allocation3 + $0x1b0] sm:$0xff] }
  0xfd   :  { %516 = vmatprep.subr.mxu1 %v446_v35  ;;  %v402_v35 = vld [vmem:[#allocation3 + $0x128] sm:$0xff] }
  0xfe   :  { %517 = vmatpush1.msra.mxu1 %v445_v36  ;;  %v404_v36 = vld [vmem:[#allocation3 + $0x138] sm:$0xff] }
  0xff   :  { %518 = vmatprep.subr.mxu1 %v430_v50  ;;  %v487_v50 = vld [vmem:[#allocation3 + $0x3d0] sm:$0xff] }
 0x100   :  { %519 = vmatpush1.msra.mxu1 %v429_v52  ;;  %v472_v52 = vld [vmem:[#allocation3 + $0x358] sm:$0xff] }
 0x101   :  { %520 = vmatprep.subr.mxu1 %v414_v54  ;;  %v471_v54 = vld [vmem:[#allocation3 + $0x350] sm:$0xff] }
 0x102   :  { %521 = vmatpush1.msra.mxu1 %v413_v56  ;;  %v456_v56 = vld [vmem:[#allocation3 + $0x2d8] sm:$0xff] }
 0x103   :  { %522 = vmatprep.subr.mxu1 %v398_v58  ;;  %v455_v58 = vld [vmem:[#allocation3 + $0x2d0] sm:$0xff] }
 0x104   :  { %523 = vmatpush1.msra.mxu1 %v397_v60  ;;  %v440_v60 = vld [vmem:[#allocation3 + $0x258] sm:$0xff] }
 0x105   :  { %524 = vmatprep.subr.mxu1 %v382_v62  ;;  %v439_v62 = vld [vmem:[#allocation3 + $0x250] sm:$0xff] }
 0x106   :  { %525 = vmatpush1.msra.mxu1 %v381_v1  ;;  %v424_v1 = vld [vmem:[#allocation3 + $0x1d8] sm:$0xff] }
 0x107   :  { %526 = vmatprep.subr.mxu1 %v366_v3  ;;  %v423_v3 = vld [vmem:[#allocation3 + $0x1d0] sm:$0xff] }
 0x108   :  { %527 = vmatpush1.msra.mxu1 %v365_v5  ;;  %v408_v5 = vld [vmem:[#allocation3 + $0x158] sm:$0xff] }
 0x109   :  { %654 = vmatprep.subr.mxu1 %v482_v7  ;;  %v407_v7 = vld [vmem:[#allocation3 + $0x150] sm:$0xff] }
 0x1b9   :  { %v256_v37 = vpop.f32.mrf.mxu1 }
 0x1ba   :  { %v260_v39 = vmul.f32 0.125, %v256_v37  ;;  %v401_v37 = vld [vmem:[#allocation3 + $0x120] sm:$0xff] }
 0x1bb   :  { %v5132_v40 = vpop.f32.mrf.mxu1 }
 0x1bc   :  { %v268_v41 = vadd.f32 %v4694_v38, %v260_v39  ;;  %v403_v38 = vld [vmem:[#allocation3 + $0x130] sm:$0xff]  ;;  %v386_v39 = vld [vmem:[#allocation3 + $0xa8] sm:$0xff]  ;;  %v388_v40 = vld [vmem:[#allocation3 + $0xb8] sm:$0xff] }
 0x1be   :  { %v269_v42 = vmul.f32 0.2, %v268_v41 }
 0x1c0   :  { %v270_v43 = vmax.f32 %v268_v41, %v269_v42  ;;  %v385_v41 = vld [vmem:[#allocation3 + $0xa0] sm:$0xff]  ;;  %v387_v42 = vld [vmem:[#allocation3 + $0xb0] sm:$0xff] }
 0x1c2   :  { %v271_v44 = vmul.f32 1.4142135, %v270_v43  ;;  %v370_v43 = vld [vmem:[#allocation3 + $0x28] sm:$0xff] }
 0x1c4   :  { %5150 = vmatmul.mubr.msk.f32.vlgmr.msra.gmra.mxu0 %vm186_vm2, %v271_v44  ;;  %v372_v44 = vld [vmem:[#allocation3 + $0x38] sm:$0xff] }
 0x1c5   :  { %584 = vmatpush1.msra.mxu0 %v479_v45  ;;  %631 = vmatprep.mubr.f32.mxu0 %v7151_v0  ;;  %v369_v45 = vld [vmem:[#allocation3 + $0x20] sm:$0xff] }
 0x1c6   :  { %585 = vmatprep.subr.mxu0 %v464_v46  ;;  %v371_v46 = vld [vmem:[#allocation3 + $0x30] sm:$0xff] }
 0x1c7   :  { %586 = vmatpush1.msra.mxu0 %v463_v47  ;;  %v486_v47 = vld [vmem:[#allocation3 + $0x3c8] sm:$0xff] }
 0x1c8   :  { %587 = vmatprep.subr.mxu0 %v448_v48  ;;  %v488_v48 = vld [vmem:[#allocation3 + $0x3d8] sm:$0xff] }
 0x1c9   :  { %588 = vmatpush1.msra.mxu0 %v447_v49  ;;  %v485_v49 = vld [vmem:[#allocation3 + $0x3c0] sm:$0xff] }
 0x1ca   :  { %589 = vmatprep.subr.mxu0 %v432_v51  ;;  %v470_v51 = vld [vmem:[#allocation3 + $0x348] sm:$0xff] }
 0x1cb   :  { %590 = vmatpush1.msra.mxu0 %v431_v53  ;;  %v469_v53 = vld [vmem:[#allocation3 + $0x340] sm:$0xff] }
 0x1cc   :  { %591 = vmatprep.subr.mxu0 %v416_v55  ;;  %v454_v55 = vld [vmem:[#allocation3 + $0x2c8] sm:$0xff] }
 0x1cd   :  { %592 = vmatpush1.msra.mxu0 %v415_v57  ;;  %v453_v57 = vld [vmem:[#allocation3 + $0x2c0] sm:$0xff] }
 0x1ce   :  { %593 = vmatprep.subr.mxu0 %v400_v59  ;;  %v438_v59 = vld [vmem:[#allocation3 + $0x248] sm:$0xff] }
 0x1cf   :  { %594 = vmatpush1.msra.mxu0 %v399_v61  ;;  %v437_v61 = vld [vmem:[#allocation3 + $0x240] sm:$0xff] }
 0x1d0   :  { %595 = vmatprep.subr.mxu0 %v384_v63  ;;  %v422_v63 = vld [vmem:[#allocation3 + $0x1c8] sm:$0xff] }
 0x1d1   :  { %596 = vmatpush1.msra.mxu0 %v383_v2  ;;  %v421_v2 = vld [vmem:[#allocation3 + $0x1c0] sm:$0xff] }
 0x1d2   :  { %597 = vmatprep.subr.mxu0 %v368_v4  ;;  %v406_v4 = vld [vmem:[#allocation3 + $0x148] sm:$0xff] }
 0x1d3   :  { %598 = vmatpush1.msra.mxu0 %v367_v6  ;;  %v405_v6 = vld [vmem:[#allocation3 + $0x140] sm:$0xff] }
 0x1d4   :  { %725 = vmatprep.subr.mxu0 %v484_v8  ;;  %v390_v8 = vld [vmem:[#allocation3 + $0xc8] sm:$0xff] }
 0x284   :  { %v349_v9 = vpop.f32.mrf.mxu0 }
 0x285   :  { %v353_v11 = vmul.f32 0.125, %v349_v9  ;;  %v392_v9 = vld [vmem:[#allocation3 + $0xd8] sm:$0xff] }
 0x286   :  { %v5151_v12 = vpop.f32.mrf.mxu0 }
 0x287   :  { %v361_v13 = vadd.f32 %v4696_v10, %v353_v11  ;;  %v389_v10 = vld [vmem:[#allocation3 + $0xc0] sm:$0xff]  ;;  %v391_v11 = vld [vmem:[#allocation3 + $0xd0] sm:$0xff]  ;;  %v374_v12 = vld [vmem:[#allocation3 + $0x48] sm:$0xff] }
 0x289   :  { %v362_v14 = vmul.f32 0.2, %v361_v13 }
 0x28b   :  { %v363_v15 = vmax.f32 %v361_v13, %v362_v14  ;;  %v376_v13 = vld [vmem:[#allocation3 + $0x58] sm:$0xff]  ;;  %v373_v14 = vld [vmem:[#allocation3 + $0x40] sm:$0xff] }
 0x28d   :  { %v5804_v16 = vmul.f32 1.4142135, %v363_v15  ;;  %v375_v15 = vld [vmem:[#allocation3 + $0x50] sm:$0xff] }
 0x28f   :  { %4697 = vmatmul.mubr.msk.f32.vlgmr.msra.gmra.mxu1 %vm186_vm2, %v5804_v16  ;;  %4698 = vmatmul.mubr.msk.f32.vlgmr.msra.gmra.mxu0 %vm186_vm2, %v5804_v16 }
 0x290   :  { %655 = vmatpush1.msra.mxu1 %v481_v17  ;;  %726 = vmatpush1.msra.mxu0 %v483_v18  ;;  %v490_v17 = vld [vmem:[#allocation3 + $0x3e8] sm:$0xff]  ;;  %v492_v18 = vld [vmem:[#allocation3 + $0x3f8] sm:$0xff] }
 0x291   :  { %656 = vmatprep.subr.mxu1 %v466_v19  ;;  %727 = vmatprep.subr.mxu0 %v468_v20  ;;  %v489_v19 = vld [vmem:[#allocation3 + $0x3e0] sm:$0xff]  ;;  %v491_v20 = vld [vmem:[#allocation3 + $0x3f0] sm:$0xff] }
 0x292   :  { %657 = vmatpush1.msra.mxu1 %v465_v21  ;;  %728 = vmatpush1.msra.mxu0 %v467_v22  ;;  %v474_v21 = vld [vmem:[#allocation3 + $0x368] sm:$0xff]  ;;  %v476_v22 = vld [vmem:[#allocation3 + $0x378] sm:$0xff] }
 0x293   :  { %658 = vmatprep.subr.mxu1 %v450_v23  ;;  %729 = vmatprep.subr.mxu0 %v452_v24  ;;  %v473_v23 = vld [vmem:[#allocation3 + $0x360] sm:$0xff]  ;;  %v475_v24 = vld [vmem:[#allocation3 + $0x370] sm:$0xff] }
 0x294   :  { %659 = vmatpush1.msra.mxu1 %v449_v25  ;;  %730 = vmatpush1.msra.mxu0 %v451_v26  ;;  %v458_v25 = vld [vmem:[#allocation3 + $0x2e8] sm:$0xff]  ;;  %v460_v26 = vld [vmem:[#allocation3 + $0x2f8] sm:$0xff] }
 0x295   :  { %660 = vmatprep.subr.mxu1 %v434_v27  ;;  %731 = vmatprep.subr.mxu0 %v436_v28  ;;  %v457_v27 = vld [vmem:[#allocation3 + $0x2e0] sm:$0xff]  ;;  %v459_v28 = vld [vmem:[#allocation3 + $0x2f0] sm:$0xff] }
 0x296   :  { %661 = vmatpush1.msra.mxu1 %v433_v29  ;;  %732 = vmatpush1.msra.mxu0 %v435_v30  ;;  %v442_v29 = vld [vmem:[#allocation3 + $0x268] sm:$0xff]  ;;  %v444_v30 = vld [vmem:[#allocation3 + $0x278] sm:$0xff] }
 0x297   :  { %662 = vmatprep.subr.mxu1 %v418_v31  ;;  %733 = vmatprep.subr.mxu0 %v420_v32  ;;  %v441_v31 = vld [vmem:[#allocation3 + $0x260] sm:$0xff]  ;;  %v443_v32 = vld [vmem:[#allocation3 + $0x270] sm:$0xff] }
 0x298   :  { %663 = vmatpush1.msra.mxu1 %v417_v33  ;;  %734 = vmatpush1.msra.mxu0 %v419_v34  ;;  %v426_v33 = vld [vmem:[#allocation3 + $0x1e8] sm:$0xff]  ;;  %v428_v34 = vld [vmem:[#allocation3 + $0x1f8] sm:$0xff] }
 0x299   :  { %664 = vmatprep.subr.mxu1 %v402_v35  ;;  %735 = vmatprep.subr.mxu0 %v404_v36  ;;  %v425_v35 = vld [vmem:[#allocation3 + $0x1e0] sm:$0xff]  ;;  %v427_v36 = vld [vmem:[#allocation3 + $0x1f0] sm:$0xff] }
 0x29a   :  { %665 = vmatpush1.msra.mxu1 %v401_v37  ;;  %736 = vmatpush1.msra.mxu0 %v403_v38  ;;  %v410_v37 = vld [vmem:[#allocation3 + $0x168] sm:$0xff]  ;;  %v412_v38 = vld [vmem:[#allocation3 + $0x178] sm:$0xff] }
 0x29b   :  { %666 = vmatprep.subr.mxu1 %v386_v39  ;;  %737 = vmatprep.subr.mxu0 %v388_v40  ;;  %v409_v39 = vld [vmem:[#allocation3 + $0x160] sm:$0xff]  ;;  %v411_v40 = vld [vmem:[#allocation3 + $0x170] sm:$0xff] }
 0x29c   :  { %667 = vmatpush1.msra.mxu1 %v385_v41  ;;  %738 = vmatpush1.msra.mxu0 %v387_v42  ;;  %v394_v41 = vld [vmem:[#allocation3 + $0xe8] sm:$0xff]  ;;  %v396_v42 = vld [vmem:[#allocation3 + $0xf8] sm:$0xff] }
 0x29d   :  { %668 = vmatprep.subr.mxu1 %v370_v43  ;;  %739 = vmatprep.subr.mxu0 %v372_v44  ;;  %v393_v43 = vld [vmem:[#allocation3 + $0xe0] sm:$0xff]  ;;  %v395_v44 = vld [vmem:[#allocation3 + $0xf0] sm:$0xff] }
 0x29e   :  { %669 = vmatpush1.msra.mxu1 %v369_v45  ;;  %702 = vmatprep.mubr.f32.mxu1 %v7151_v0  ;;  %v378_v45 = vld [vmem:[#allocation3 + $0x68] sm:$0xff] }
 0x29f   :  { %740 = vmatpush1.msra.mxu0 %v371_v46  ;;  %773 = vmatprep.mubr.f32.mxu0 %v7151_v0  ;;  %v380_v46 = vld [vmem:[#allocation3 + $0x78] sm:$0xff] }
 0x2a0   :  { %4699 = vmatmul.mubr.msk.f32.vlgmr.msra.gmra.mxu1 %vm186_vm2, %v5804_v16  ;;  %4700 = vmatmul.mubr.msk.f32.vlgmr.msra.gmra.mxu0 %vm186_vm2, %v5804_v16 }
 0x2a1   :  { %796 = vmatprep.subr.mxu1 %v486_v47  ;;  %867 = vmatprep.subr.mxu0 %v488_v48  ;;  %v377_v47 = vld [vmem:[#allocation3 + $0x60] sm:$0xff]  ;;  %v379_v48 = vld [vmem:[#allocation3 + $0x70] sm:$0xff] }
 0x2a2   :  { %797 = vmatpush1.msra.mxu1 %v485_v49  ;;  %868 = vmatpush1.msra.mxu0 %v487_v50  ;;  %v1087_v49 = vld [vmem:[%s7140_s9 + $0x38] sm:$0xff] }
 0x2a3   :  { %798 = vmatprep.subr.mxu1 %v470_v51  ;;  %869 = vmatprep.subr.mxu0 %v472_v52  ;;  %v4713_v50 = vld [vmem:[%s7140_s9 + $0x78] sm:$0xff]  ;;  %v1086_v51 = vld [vmem:[%s7140_s9 + $0x30] sm:$0xff] }
 0x2a4   :  { %799 = vmatpush1.msra.mxu1 %v469_v53  ;;  %870 = vmatpush1.msra.mxu0 %v471_v54  ;;  %v4712_v52 = vld [vmem:[%s7140_s9 + $0x70] sm:$0xff]  ;;  %v1085_v53 = vld [vmem:[%s7140_s9 + $0x28] sm:$0xff] }
 0x2a5   :  { %800 = vmatprep.subr.mxu1 %v454_v55  ;;  %871 = vmatprep.subr.mxu0 %v456_v56  ;;  %v4711_v54 = vld [vmem:[%s7140_s9 + $0x68] sm:$0xff]  ;;  %v1084_v55 = vld [vmem:[%s7140_s9 + $0x20] sm:$0xff] }
 0x2a6   :  { %801 = vmatpush1.msra.mxu1 %v453_v57  ;;  %872 = vmatpush1.msra.mxu0 %v455_v58  ;;  %v4710_v56 = vld [vmem:[%s7140_s9 + $0x60] sm:$0xff]  ;;  %v1083_v57 = vld [vmem:[%s7140_s9 + $0x18] sm:$0xff] }
 0x2a7   :  { %802 = vmatprep.subr.mxu1 %v438_v59  ;;  %873 = vmatprep.subr.mxu0 %v440_v60  ;;  %v4709_v58 = vld [vmem:[%s7140_s9 + $0x58] sm:$0xff]  ;;  %v1082_v59 = vld [vmem:[%s7140_s9 + $0x10] sm:$0xff] }
 0x2a8   :  { %803 = vmatpush1.msra.mxu1 %v437_v61  ;;  %874 = vmatpush1.msra.mxu0 %v439_v62  ;;  %v4708_v60 = vld [vmem:[%s7140_s9 + $0x50] sm:$0xff]  ;;  %v1081_v61 = vld [vmem:[%s7140_s9 + $0x8] sm:$0xff] }
 0x2a9   :  { %804 = vmatprep.subr.mxu1 %v422_v63  ;;  %875 = vmatprep.subr.mxu0 %v424_v1  ;;  %v4707_v62 = vld [vmem:[%s7140_s9 + $0x48] sm:$0xff]  ;;  %v1080_v63 = vld [vmem:[%s7140_s9] sm:$0xff] }
 0x2aa   :  { %805 = vmatpush1.msra.mxu1 %v421_v2  ;;  %876 = vmatpush1.msra.mxu0 %v423_v3  ;;  %v4706_v1 = vld [vmem:[%s7140_s9 + $0x40] sm:$0xff]  ;;  %v4722_v2 = vld [vmem:[%s7140_s9 + $0xb8] sm:$0xff] }
 0x2ab   :  { %806 = vmatprep.subr.mxu1 %v406_v4  ;;  %877 = vmatprep.subr.mxu0 %v408_v5  ;;  %v4731_v3 = vld [vmem:[%s7140_s9 + $0xf8] sm:$0xff]  ;;  %v4721_v4 = vld [vmem:[%s7140_s9 + $0xb0] sm:$0xff] }
 0x2ac   :  { %807 = vmatpush1.msra.mxu1 %v405_v6  ;;  %878 = vmatpush1.msra.mxu0 %v407_v7  ;;  %v4730_v5 = vld [vmem:[%s7140_s9 + $0xf0] sm:$0xff]  ;;  %v4720_v6 = vld [vmem:[%s7140_s9 + $0xa8] sm:$0xff] }
 0x2ad   :  { %808 = vmatprep.subr.mxu1 %v390_v8  ;;  %879 = vmatprep.subr.mxu0 %v392_v9  ;;  %v4729_v7 = vld [vmem:[%s7140_s9 + $0xe8] sm:$0xff]  ;;  %v4719_v8 = vld [vmem:[%s7140_s9 + $0xa0] sm:$0xff] }
 0x2ae   :  { %809 = vmatpush1.msra.mxu1 %v389_v10  ;;  %880 = vmatpush1.msra.mxu0 %v391_v11  ;;  %v4728_v9 = vld [vmem:[%s7140_s9 + $0xe0] sm:$0xff]  ;;  %v4718_v10 = vld [vmem:[%s7140_s9 + $0x98] sm:$0xff] }
 0x2af   :  { %810 = vmatprep.subr.mxu1 %v374_v12  ;;  %881 = vmatprep.subr.mxu0 %v376_v13  ;;  %v4727_v11 = vld [vmem:[%s7140_s9 + $0xd8] sm:$0xff]  ;;  %v4717_v12 = vld [vmem:[%s7140_s9 + $0x90] sm:$0xff] }
 0x2b0   :  { %811 = vmatpush1.msra.mxu1 %v373_v14  ;;  %844 = vmatprep.mubr.f32.mxu1 %v7151_v0  ;;  %v4726_v13 = vld [vmem:[%s7140_s9 + $0xd0] sm:$0xff]  ;;  %v4716_v14 = vld [vmem:[%s7140_s9 + $0x88] sm:$0xff] }
 0x2b1   :  { %882 = vmatpush1.msra.mxu0 %v375_v15  ;;  %915 = vmatprep.mubr.f32.mxu0 %v7151_v0  ;;  %v4725_v15 = vld [vmem:[%s7140_s9 + $0xc8] sm:$0xff] }
 0x2b2   :  { %4701 = vmatmul.mubr.msk.f32.vlgmr.msra.gmra.mxu1 %vm186_vm2, %v5804_v16  ;;  %4702 = vmatmul.mubr.msk.f32.vlgmr.msra.gmra.mxu0 %vm186_vm2, %v5804_v16 }
 0x2b3   :  { %938 = vmatprep.subr.mxu1 %v490_v17  ;;  %1009 = vmatprep.subr.mxu0 %v492_v18  ;;  %v4715_v17 = vld [vmem:[%s7140_s9 + $0x80] sm:$0xff] }
 0x2b4   :  { %939 = vmatpush1.msra.mxu1 %v489_v19  ;;  %1010 = vmatpush1.msra.mxu0 %v491_v20  ;;  %v4724_v18 = vld [vmem:[%s7140_s9 + $0xc0] sm:$0xff]  ;;  %v1410_v19 = vld [vmem:[%s7142_s11 + $0x38] sm:$0xff] }
 0x2b5   :  { %940 = vmatprep.subr.mxu1 %v474_v21  ;;  %1011 = vmatprep.subr.mxu0 %v476_v22  ;;  %v1490_v20 = vld [vmem:[%s7144_s13 + $0x38] sm:$0xff]  ;;  %v1409_v21 = vld [vmem:[%s7142_s11 + $0x30] sm:$0xff] }
 0x2b6   :  { %941 = vmatpush1.msra.mxu1 %v473_v23  ;;  %1012 = vmatpush1.msra.mxu0 %v475_v24  ;;  %v1489_v22 = vld [vmem:[%s7144_s13 + $0x30] sm:$0xff]  ;;  %v1408_v23 = vld [vmem:[%s7142_s11 + $0x28] sm:$0xff] }
 0x2b7   :  { %942 = vmatprep.subr.mxu1 %v458_v25  ;;  %1013 = vmatprep.subr.mxu0 %v460_v26  ;;  %v1488_v24 = vld [vmem:[%s7144_s13 + $0x28] sm:$0xff]  ;;  %v1407_v25 = vld [vmem:[%s7142_s11 + $0x20] sm:$0xff] }
 0x2b8   :  { %943 = vmatpush1.msra.mxu1 %v457_v27  ;;  %1014 = vmatpush1.msra.mxu0 %v459_v28  ;;  %v1487_v26 = vld [vmem:[%s7144_s13 + $0x20] sm:$0xff]  ;;  %v1406_v27 = vld [vmem:[%s7142_s11 + $0x18] sm:$0xff] }
 0x2b9   :  { %944 = vmatprep.subr.mxu1 %v442_v29  ;;  %1015 = vmatprep.subr.mxu0 %v444_v30  ;;  %v1486_v28 = vld [vmem:[%s7144_s13 + $0x18] sm:$0xff]  ;;  %v1405_v29 = vld [vmem:[%s7142_s11 + $0x10] sm:$0xff] }
 0x2ba   :  { %945 = vmatpush1.msra.mxu1 %v441_v31  ;;  %1016 = vmatpush1.msra.mxu0 %v443_v32  ;;  %v1485_v30 = vld [vmem:[%s7144_s13 + $0x10] sm:$0xff]  ;;  %v1404_v31 = vld [vmem:[%s7142_s11 + $0x8] sm:$0xff] }
 0x2bb   :  { %946 = vmatprep.subr.mxu1 %v426_v33  ;;  %1017 = vmatprep.subr.mxu0 %v428_v34  ;;  %v1484_v32 = vld [vmem:[%s7144_s13 + $0x8] sm:$0xff]  ;;  %v1403_v33 = vld [vmem:[%s7142_s11] sm:$0xff] }
 0x2bc   :  { %947 = vmatpush1.msra.mxu1 %v425_v35  ;;  %1018 = vmatpush1.msra.mxu0 %v427_v36  ;;  %v1483_v34 = vld [vmem:[%s7144_s13] sm:$0xff] }
 0x2bd   :  { %948 = vmatprep.subr.mxu1 %v410_v37  ;;  %1019 = vmatprep.subr.mxu0 %v412_v38 }
 0x2be   :  { %949 = vmatpush1.msra.mxu1 %v409_v39  ;;  %1020 = vmatpush1.msra.mxu0 %v411_v40 }
 0x2bf   :  { %950 = vmatprep.subr.mxu1 %v394_v41  ;;  %1021 = vmatprep.subr.mxu0 %v396_v42 }
 0x2c0   :  { %951 = vmatpush1.msra.mxu1 %v393_v43  ;;  %1022 = vmatpush1.msra.mxu0 %v395_v44 }
 0x2c1   :  { %952 = vmatprep.subr.mxu1 %v378_v45  ;;  %1023 = vmatprep.subr.mxu0 %v380_v46  ;;  %v1571_v46 = vlaneseq }
 0x2c2   :  { %953 = vmatpush1.msra.mxu1 %v377_v47  ;;  %986 = vmatprep.mubr.f32.mxu1 %v7151_v0 }
 0x2c3   :  { %1024 = vmatpush1.msra.mxu0 %v379_v48  ;;  %1057 = vmatprep.mubr.f32.mxu0 %v7151_v0 }
 0x2c4   :  { %4703 = vmatmul.mubr.msk.f32.vlgmr.msra.gmra.mxu1 %vm186_vm2, %v5804_v16  ;;  %4704 = vmatmul.mubr.msk.f32.vlgmr.msra.gmra.mxu0 %vm186_vm2, %v5804_v16 }
 0x2c5   :  { %5152 = vmatprep.subr.mxu1 %v7151_v0  ;;  %5171 = vmatprep.subr.mxu0 %v7151_v0 }
 0x2c6   :  { %5153 = vmatpush3.msra.mxu1 %v1087_v49  ;;  %5172 = vmatpush3.msra.mxu0 %v4713_v50  ;;  %v1572_v49 = vshrl.u32 %v1571_v46, 7 }
 0x2c7   :  { %5154 = vmatprep.subr.mxu1 %v7151_v0  ;;  %5173 = vmatprep.subr.mxu0 %v7151_v0 }
 0x2c8   :  { %5155 = vmatpush3.msra.mxu1 %v1086_v51  ;;  %5174 = vmatpush3.msra.mxu0 %v4712_v52  ;;  %v4735_v52 = vld [vmem:[%s7141_s10 + $0x20] sm:$0xff] }
 0x2c9   :  { %5156 = vmatprep.subr.mxu1 %v7151_v0  ;;  %5175 = vmatprep.subr.mxu0 %v7151_v0 }
 0x2ca   :  { %5157 = vmatpush3.msra.mxu1 %v1085_v53  ;;  %5176 = vmatpush3.msra.mxu0 %v4711_v54  ;;  %v1563_v53 = vld [vmem:[%s7141_s10] sm:$0xff]  ;;  %v4736_v54 = vld [vmem:[%s7141_s10 + $0x28] sm:$0xff] }
 0x2cb   :  { %5158 = vmatprep.subr.mxu1 %v7151_v0  ;;  %5177 = vmatprep.subr.mxu0 %v7151_v0 }
 0x2cc   :  { %5159 = vmatpush3.msra.mxu1 %v1084_v55  ;;  %5178 = vmatpush3.msra.mxu0 %v4710_v56 }
 0x2cd   :  { %5160 = vmatprep.subr.mxu1 %v7151_v0  ;;  %5179 = vmatprep.subr.mxu0 %v7151_v0 }
 0x2ce   :  { %5161 = vmatpush3.msra.mxu1 %v1083_v57  ;;  %5180 = vmatpush3.msra.mxu0 %v4709_v58  ;;  %v1564_v57 = vld [vmem:[%s7141_s10 + $0x8] sm:$0xff]  ;;  %v6088_v58 = vsub.s32 0, %v1572_v49 }
 0x2cf   :  { %5162 = vmatprep.subr.mxu1 %v7151_v0  ;;  %5181 = vmatprep.subr.mxu0 %v7151_v0 }
 0x2d0   :  { %5163 = vmatpush3.msra.mxu1 %v1082_v59  ;;  %5182 = vmatpush3.msra.mxu0 %v4708_v60 }
 0x2d1   :  { %5164 = vmatprep.subr.mxu1 %v7151_v0  ;;  %5183 = vmatprep.subr.mxu0 %v7151_v0 }
 0x2d2   :  { %5165 = vmatpush3.msra.mxu1 %v1081_v61  ;;  %5184 = vmatpush3.msra.mxu0 %v4707_v62 }
 0x2d3   :  { %5166 = vmatprep.subr.mxu1 %v7151_v0  ;;  %5185 = vmatprep.subr.mxu0 %v7151_v0 }
 0x2d4   :  { %5167 = vmatpush3.msra.mxu1 %v1080_v63  ;;  %5168 = vmatprep.mubr.msk.f32.mxu1 %vm5597_vm0, %v7151_v0  ;;  %v6090_v63 = vmul.f32 0.35355338, %v4735_v52 }
 0x2d5   :  { %5186 = vmatpush3.msra.mxu0 %v4706_v1  ;;  %5187 = vmatprep.mubr.msk.f32.mxu0 %vm5597_vm0, %v7151_v0  ;;  %v1567_v1 = vmul.f32 0.35355338, %v1563_v53 }
 0x2d6   :  { %5169 = vmatmul.mubr.msk.f32.vlgmr.msra.gmra.mxu1 %vm186_vm2, %v5804_v16  ;;  %5188 = vmatmul.mubr.msk.f32.vlgmr.msra.gmra.mxu0 %vm186_vm2, %v5804_v16 }
 0x2d7   :  { %5190 = vmatprep.subr.mxu1 %v7151_v0  ;;  %5209 = vmatprep.subr.mxu0 %v7151_v0 }
 0x2d8   :  { %5191 = vmatpush3.msra.mxu1 %v4722_v2  ;;  %5210 = vmatpush3.msra.mxu0 %v4731_v3  ;;  %v6092_v2 = vmul.f32 0.35355338, %v4736_v54 }
 0x2d9   :  { %5192 = vmatprep.subr.mxu1 %v7151_v0  ;;  %5211 = vmatprep.subr.mxu0 %v7151_v0 }
 0x2da   :  { %5193 = vmatpush3.msra.mxu1 %v4721_v4  ;;  %5212 = vmatpush3.msra.mxu0 %v4730_v5  ;;  %v1568_v5 = vmul.f32 0.35355338, %v1564_v57 }
 0x2db   :  { %5194 = vmatprep.subr.mxu1 %v7151_v0  ;;  %5213 = vmatprep.subr.mxu0 %v7151_v0 }
 0x2dc   :  { %5195 = vmatpush3.msra.mxu1 %v4720_v6  ;;  %5214 = vmatpush3.msra.mxu0 %v4729_v7  ;;  %v1566_v6 = vld [vmem:[%s7141_s10 + $0x18] sm:$0xff]  ;;  %v1565_v7 = vld [vmem:[%s7141_s10 + $0x10] sm:$0xff] }
 0x2dd   :  { %5196 = vmatprep.subr.mxu1 %v7151_v0  ;;  %5215 = vmatprep.subr.mxu0 %v7151_v0 }
 0x2de   :  { %5197 = vmatpush3.msra.mxu1 %v4719_v8  ;;  %5216 = vmatpush3.msra.mxu0 %v4728_v9 }
 0x2df   :  { %5198 = vmatprep.subr.mxu1 %v7151_v0  ;;  %5217 = vmatprep.subr.mxu0 %v7151_v0 }
 0x2e0   :  { %5199 = vmatpush3.msra.mxu1 %v4718_v10  ;;  %5218 = vmatpush3.msra.mxu0 %v4727_v11  ;;  %v6102_v10 = vmul.f32 0.35355338, %v1566_v6  ;;  %v6104_v11 = vmul.f32 0.35355338, %v1565_v7  ;;  %v4743_v7 = vld [vmem:[%s7141_s10 + $0x60] sm:$0xff] }
 0x2e1   :  { %5200 = vmatprep.subr.mxu1 %v7151_v0  ;;  %5219 = vmatprep.subr.mxu0 %v7151_v0 }
 0x2e2   :  { %5201 = vmatpush3.msra.mxu1 %v4717_v12  ;;  %5220 = vmatpush3.msra.mxu0 %v4726_v13 }
 0x2e3   :  { %5202 = vmatprep.subr.mxu1 %v7151_v0  ;;  %5221 = vmatprep.subr.mxu0 %v7151_v0 }
 0x2e4   :  { %5203 = vmatpush3.msra.mxu1 %v4716_v14  ;;  %5222 = vmatpush3.msra.mxu0 %v4725_v15 }
 0x2e5   :  { %5204 = vmatprep.subr.mxu1 %v7151_v0  ;;  %5223 = vmatprep.subr.mxu0 %v7151_v0 }
 0x2e6   :  { %5205 = vmatpush3.msra.mxu1 %v4715_v17  ;;  %5206 = vmatprep.mubr.msk.f32.mxu1 %vm5597_vm0, %v7151_v0  ;;  %v4738_v17 = vld [vmem:[%s7141_s10 + $0x38] sm:$0xff] }
 0x2e7   :  { %5224 = vmatpush3.msra.mxu0 %v4724_v18  ;;  %5225 = vmatprep.mubr.msk.f32.mxu0 %vm5597_vm0, %v7151_v0  ;;  %v4737_v18 = vld [vmem:[%s7141_s10 + $0x30] sm:$0xff] }
 0x2e8   :  { %5207 = vmatmul.mubr.msk.f32.vlgmr.msra.gmra.mxu1 %vm186_vm2, %v5804_v16  ;;  %5226 = vmatmul.mubr.msk.f32.vlgmr.msra.gmra.mxu0 %vm186_vm2, %v5804_v16 }
 0x2e9   :  { %5228 = vmatprep.subr.mxu1 %v7151_v0  ;;  %5247 = vmatprep.subr.mxu0 %v7151_v0 }
 0x2ea   :  { %5229 = vmatpush3.msra.mxu1 %v1410_v19  ;;  %5248 = vmatpush3.msra.mxu0 %v1490_v20 }
 0x2eb   :  { %5230 = vmatprep.subr.mxu1 %v7151_v0  ;;  %5249 = vmatprep.subr.mxu0 %v7151_v0 }
 0x2ec   :  { %5231 = vmatpush3.msra.mxu1 %v1409_v21  ;;  %5250 = vmatpush3.msra.mxu0 %v1489_v22 }
 0x2ed   :  { %5232 = vmatprep.subr.mxu1 %v7151_v0  ;;  %5251 = vmatprep.subr.mxu0 %v7151_v0 }
 0x2ee   :  { %5233 = vmatpush3.msra.mxu1 %v1408_v23  ;;  %5252 = vmatpush3.msra.mxu0 %v1488_v24  ;;  %v6132_v23 = vmul.f32 0.35355338, %v4738_v17  ;;  %v6134_v24 = vmul.f32 0.35355338, %v4737_v18 }
 0x2ef   :  { %5234 = vmatprep.subr.mxu1 %v7151_v0  ;;  %5253 = vmatprep.subr.mxu0 %v7151_v0 }
 0x2f0   :  { %5235 = vmatpush3.msra.mxu1 %v1407_v25  ;;  %5254 = vmatpush3.msra.mxu0 %v1487_v26 }
 0x2f1   :  { %5236 = vmatprep.subr.mxu1 %v7151_v0  ;;  %5255 = vmatprep.subr.mxu0 %v7151_v0 }
 0x2f2   :  { %5237 = vmatpush3.msra.mxu1 %v1406_v27  ;;  %5256 = vmatpush3.msra.mxu0 %v1486_v28 }
 0x2f3   :  { %5238 = vmatprep.subr.mxu1 %v7151_v0  ;;  %5257 = vmatprep.subr.mxu0 %v7151_v0 }
 0x2f4   :  { %5239 = vmatpush3.msra.mxu1 %v1405_v29  ;;  %5258 = vmatpush3.msra.mxu0 %v1485_v30  ;;  %v6142_v29 = vsub.s32 1, %v1572_v49 }
 0x2f5   :  { %5240 = vmatprep.subr.mxu1 %v7151_v0  ;;  %5259 = vmatprep.subr.mxu0 %v7151_v0 }
 0x2f6   :  { %5241 = vmatpush3.msra.mxu1 %v1404_v31  ;;  %5260 = vmatpush3.msra.mxu0 %v1484_v32  ;;  %7183 = vst [vmem:[#allocation17_spill] sm:$0xff] %v6142_v29 }
 0x2f7   :  { %5242 = vmatprep.subr.mxu1 %v7151_v0  ;;  %5261 = vmatprep.subr.mxu0 %v7151_v0 }
 0x2f8   :  { %5243 = vmatpush3.msra.mxu1 %v1403_v33  ;;  %5244 = vmatprep.mubr.msk.f32.mxu1 %vm5597_vm0, %v7151_v0 }
 0x2f9   :  { %5262 = vmatpush3.msra.mxu0 %v1483_v34  ;;  %5263 = vmatprep.mubr.msk.f32.mxu0 %vm5597_vm0, %v7151_v0 }
 0x2fa   :  { %5245 = vmatmul.mubr.msk.f32.vlgmr.msra.gmra.mxu1 %vm186_vm2, %v5804_v16  ;;  %5264 = vmatmul.mubr.msk.f32.vlgmr.msra.gmra.mxu0 %vm186_vm2, %v5804_v16 }
 0x34f   :  { %v6044_v35 = vpop.f32.mrf.mxu1  ;;  %v6046_v36 = vpop.f32.mrf.mxu0 }
 0x351   :  { %v6048_v37 = vpop.f32.mrf.mxu1  ;;  %v6050_v38 = vpop.f32.mrf.mxu0 }
 0x360   :  { %v6052_v39 = vpop.f32.mrf.mxu1  ;;  %v6054_v40 = vpop.f32.mrf.mxu0 }
 0x362   :  { %v6056_v41 = vpop.f32.mrf.mxu1  ;;  %v6058_v42 = vpop.f32.mrf.mxu0 }
 0x372   :  { %v6060_v43 = vpop.f32.mrf.mxu1  ;;  %v6062_v44 = vpop.f32.mrf.mxu0 }
 0x373   :  { %7175 = vst [vmem:[#allocation9_spill] sm:$0xff] %v6060_v43  ;;  %7176 = vst [vmem:[#allocation10_spill] sm:$0xff] %v6062_v44  ;;  %v5333_v44 = vld [vmem:[#allocation5 + $0x34] ss:$8 sps:$4 sm:$0xff]   ;;  %v5334_v43 = vld [vmem:[#allocation5 + $0x170] ss:$8 sps:$4 sm:$0xff]  }
 0x374   :  { %v6064_v16 = vpop.f32.mrf.mxu1  ;;  %v6066_v45 = vpop.f32.mrf.mxu0 }
 0x375   :  { %7177 = vst [vmem:[#allocation11_spill] sm:$0xff] %v6064_v16  ;;  %7178 = vst [vmem:[#allocation12_spill] sm:$0xff] %v6066_v45  ;;  %v5328_v45 = vld [vmem:[#allocation5 + $0x40] ss:$8 sps:$4 sm:$0xff]   ;;  %v5331_v16 = vld [vmem:[#allocation5 + $0x30] ss:$8 sps:$4 sm:$0xff]  }
 0x384   :  { %v6068_v47 = vpop.f32.mrf.mxu1  ;;  %v6070_v48 = vpop.f32.mrf.mxu0 }
 0x385   :  { %7179 = vst [vmem:[#allocation13_spill] sm:$0xff] %v6068_v47  ;;  %7180 = vst [vmem:[#allocation14_spill] sm:$0xff] %v6070_v48  ;;  %v5330_v47 = vld [vmem:[#allocation5 + $0x44] ss:$8 sps:$4 sm:$0xff]  }
 0x386   :  { %v6072_v50 = vpop.f32.mrf.mxu1  ;;  %v6074_v51 = vpop.f32.mrf.mxu0 }
 0x387   :  { %7181 = vst [vmem:[#allocation15_spill] sm:$0xff] %v6072_v50  ;;  %7182 = vst [vmem:[#allocation16_spill] sm:$0xff] %v6074_v51 }
 0x396   :  { %v1154_v55 = vpop.f32.mrf.mxu1  ;;  %v1235_v56 = vpop.f32.mrf.mxu0 }
 0x397   :  { %v1158_v59 = vmul.f32 0.125, %v1154_v55  ;;  %v1239_v60 = vmul.f32 0.125, %v1235_v56 }
 0x398   :  { %v5170_v61 = vpop.f32.mrf.mxu1  ;;  %v5189_v62 = vpop.f32.mrf.mxu0 }
 0x399   :  { %v1159_v3 = vadd.f32 1.0, %v1158_v59  ;;  %v1240_v4 = vadd.f32 1.0, %v1239_v60  ;;  %v4740_v59 = vld [vmem:[%s7141_s10 + $0x48] sm:$0xff]  ;;  %v4739_v60 = vld [vmem:[%s7141_s10 + $0x40] sm:$0xff] }
 0x39a   :  { %v6180_v18 = vmul.f32 0.35355338, %v4740_v59 }
 0x39b   :  { %v1574_v8 = vrot.slane %v1159_v3, %v6088_v58  ;;  %v1612_v9 = vrot.slane %v1240_v4, %v6088_v58  ;;  %v2162_v30 = vrot.slane %v1159_v3, %v6142_v29 }
 0x39d   :  { %v6107_v12 = vmul.f32 %v1612_v9, %v6090_v63  ;;  %v6109_v13 = vmul.f32 %v1574_v8, %v1567_v1  ;;  %v6112_v14 = vmul.f32 %v1612_v9, %v6092_v2  ;;  %v6114_v15 = vmul.f32 %v1574_v8, %v1568_v5 }
 0x39e   :  { %v6127_v21 = vmul.f32 %v1574_v8, %v6102_v10  ;;  %v6130_v22 = vmul.f32 %v1574_v8, %v6104_v11  ;;  %v6148_v32 = vmul.f32 %v1612_v9, %v6132_v23  ;;  %v6151_v33 = vmul.f32 %v1612_v9, %v6134_v24 }
 0x39f   :  { %v1617_v19 = vmul.f32 %v6107_v12, %v6107_v12  ;;  %v1579_v20 = vmul.f32 %v6109_v13, %v6109_v13  ;;  %v1618_v27 = vmul.f32 %v6112_v14, %v6112_v14  ;;  %v1580_v28 = vmul.f32 %v6114_v15, %v6114_v15 }
 0x3a0   :  { %v1582_v31 = vmul.f32 %v6127_v21, %v6127_v21  ;;  %v1581_v49 = vmul.f32 %v6130_v22, %v6130_v22  ;;  %v1620_v55 = vmul.f32 %v6148_v32, %v6148_v32  ;;  %v1619_v56 = vmul.f32 %v6151_v33, %v6151_v33 }
 0x3a1   :  { %v1621_v25 = vsel %vm1583_vm3, %v1617_v19, 0.0  ;;  %v1584_v26 = vsel %vm1583_vm3, %v1579_v20, 0.0  ;;  %v1624_v34 = vsel %vm1583_vm3, %v1618_v27, 0.0  ;;  %v1587_v46 = vsel %vm1583_vm3, %v1580_v28, 0.0 }
 0x3a2   :  { %1622 = vadd.xlane.f32.xlu1 %v1621_v25  ;;  %1585 = vadd.xlane.f32.xlu0 %v1584_v26  ;;  %v1593_v54 = vsel %vm1583_vm3, %v1582_v31, 0.0  ;;  %v6162_v57 = vmul.f32 %v2162_v30, %v1568_v5  ;;  %v1590_v3 = vsel %vm1583_vm3, %v1581_v49, 0.0  ;;  %v6171_v6 = vmul.f32 %v2162_v30, %v1567_v1 }
 0x3a3   :  { %v6182_v19 = vmul.f32 0.35355338, %v4739_v60  ;;  %v2198_v20 = vrot.slane %v1240_v4, %v6142_v29  ;;  %v1630_v1 = vsel %vm1583_vm3, %v1620_v55, 0.0  ;;  %v6188_v26 = vmul.f32 0.35355338, %v4743_v7  ;;  %v4744_v7 = vld [vmem:[%s7141_s10 + $0x68] sm:$0xff] }
 0x3a4   :  { %v2168_v25 = vmul.f32 %v6162_v57, %v6162_v57  ;;  %v1627_v31 = vsel %vm1583_vm3, %v1619_v56, 0.0  ;;  %v6219_v59 = vmul.f32 %v2162_v30, %v6102_v10 }
 0x3a5   :  { %v6234_v10 = vmul.f32 %v2198_v20, %v6132_v23 }
 0x3a6   :  { %1625 = vadd.xlane.f32.xlu1 %v1624_v34  ;;  %1588 = vadd.xlane.f32.xlu0 %v1587_v46  ;;  %v2167_v34 = vmul.f32 %v6171_v6, %v6171_v6  ;;  %v2174_v49 = vsel %vm1583_vm3, %v2168_v25, 0.0  ;;  %v2170_v25 = vmul.f32 %v6219_v59, %v6219_v59 }
 0x3a8   :  { %v1397_v52 = vpop.f32.mrf.mxu0  ;;  %v1316_v53 = vpop.f32.mrf.mxu1 }
 0x3a9   :  { %v1401_v61 = vmul.f32 0.125, %v1397_v52  ;;  %v1320_v62 = vmul.f32 0.125, %v1316_v53  ;;  %v6207_v52 = vmul.f32 %v2198_v20, %v6092_v2  ;;  %v2171_v53 = vsel %vm1583_vm3, %v2167_v34, 0.0  ;;  %v4742_v34 = vld [vmem:[%s7141_s10 + $0x58] sm:$0xff] }
 0x3aa   :  { %v5208_v5 = vpop.f32.mrf.mxu1  ;;  %v5227_v8 = vpop.f32.mrf.mxu0  ;;  %1594 = vadd.xlane.f32.xlu1 %v1593_v54  ;;  %1591 = vadd.xlane.f32.xlu0 %v1590_v3  ;;  %v6222_v2 = vmul.f32 %v2198_v20, %v6090_v63  ;;  %v6237_v63 = vmul.f32 %v2162_v30, %v6104_v11  ;;  %v4741_v11 = vld [vmem:[%s7141_s10 + $0x50] sm:$0xff] }
 0x3ab   :  { %v6176_v9 = vadd.f32 1.0, %v1401_v61  ;;  %v6178_v17 = vadd.f32 1.0, %v1320_v62  ;;  %v2204_v62 = vmul.f32 %v6207_v52, %v6207_v52  ;;  %v1680_v5 = vmul.f32 0.35355338, %v4744_v7 }
 0x3ac   :  { %v2169_v0 = vmul.f32 %v6237_v63, %v6237_v63 }
 0x3ad   :  { %v6192_v27 = vrot.slane %v6176_v9, %v6088_v58  ;;  %v1649_v28 = vrot.slane %v6178_v17, %v6088_v58  ;;  %v2210_v8 = vsel %vm1583_vm3, %v2204_v62, 0.0  ;;  %v1644_v62 = vmul.f32 0.35355338, %v4741_v11 }
 0x3ae   :  { %1631 = vadd.xlane.f32.xlu1 %v1630_v1  ;;  %1628 = vadd.xlane.f32.xlu0 %v1627_v31  ;;  %v2203_v31 = vmul.f32 %v6222_v2, %v6222_v2 }
 0x3af   :  { %v6200_v4 = vmul.f32 %v1649_v28, %v6180_v18  ;;  %v6203_v46 = vmul.f32 %v1649_v28, %v6182_v19  ;;  %v6216_v56 = vmul.f32 %v6192_v27, %v6188_v26 }
 0x3b0   :  { %v2207_v7 = vsel %vm1583_vm3, %v2203_v31, 0.0 }
 0x3b1   :  { %v1655_v54 = vmul.f32 %v6200_v4, %v6200_v4  ;;  %v1654_v55 = vmul.f32 %v6203_v46, %v6203_v46  ;;  %v1691_v3 = vmul.f32 %v6216_v56, %v6216_v56 }
 0x3b2   :  { %2175 = vadd.xlane.f32.xlu1 %v2174_v49  ;;  %2172 = vadd.xlane.f32.xlu0 %v2171_v53 }
 0x3b3   :  { %v1661_v60 = vsel %vm1583_vm3, %v1655_v54, 0.0  ;;  %v1658_v61 = vsel %vm1583_vm3, %v1654_v55, 0.0  ;;  %v1695_v1 = vsel %vm1583_vm3, %v1691_v3, 0.0  ;;  %v2206_v55 = vmul.f32 %v6234_v10, %v6234_v10 }
 0x3b4   :  { %v2180_v3 = vsel %vm1583_vm3, %v2170_v25, 0.0 }
 0x3b6   :  { %1662 = vadd.xlane.f32.xlu1 %v1661_v60  ;;  %1659 = vadd.xlane.f32.xlu0 %v1658_v61  ;;  %v6256_v60 = vmul.f32 %v2198_v20, %v6134_v24  ;;  %v1645_v61 = vmul.f32 0.35355338, %v4742_v34  ;;  %v4745_v24 = vld [vmem:[%s7141_s10 + $0x70] sm:$0xff] }
 0x3b7   :  { %v1681_v11 = vmul.f32 0.35355338, %v4745_v24 }
 0x3b8   :  { %v2205_v25 = vmul.f32 %v6256_v60, %v6256_v60  ;;  %v6275_v31 = vmul.f32 %v1649_v28, %v1645_v61 }
 0x3b9   :  { %v6304_v51 = vmul.f32 %v6192_v27, %v1681_v11 }
 0x3ba   :  { %v6251_v23 = vpop.f32.mrf.mxu0  ;;  %v1477_v30 = vpop.f32.mrf.mxu1  ;;  %2211 = vadd.xlane.f32.xlu1 %v2210_v8  ;;  %1696 = vadd.xlane.f32.xlu0 %v1695_v1  ;;  %v6263_v8 = vmul.f32 %v6192_v27, %v1680_v5  ;;  %v4746_v1 = vld [vmem:[%s7141_s10 + $0x78] sm:$0xff]  ;;  %v2213_v24 = vsel %vm1583_vm3, %v2205_v25, 0.0 }
 0x3bb   :  { %7184 = vst [vmem:[#allocation18_spill] sm:$0xff] %v6251_v23  ;;  %v1481_v49 = vmul.f32 0.125, %v1477_v30  ;;  %v1682_v34 = vmul.f32 0.35355338, %v4746_v1  ;;  %v3988_v30 = vld [vmem:[%s7143_s12 + $0x8] sm:$0xff] }
 0x3bc   :  { %v5246_v53 = vpop.f32.mrf.mxu1  ;;  %v5265_v54 = vpop.f32.mrf.mxu0  ;;  %v6290_v1 = vmul.f32 0.17677669, %v3988_v30  ;;  %v2270_v30 = vrot.slane %v6176_v9, %v6142_v29 }
 0x3bd   :  { %v6271_v20 = vadd.f32 1.0, %v1481_v49  ;;  %v2216_v53 = vsel %vm1583_vm3, %v2206_v55, 0.0  ;;  %v2177_v54 = vsel %vm1583_vm3, %v2169_v0, 0.0  ;;  %v6284_v49 = vmul.f32 %v1649_v28, %v1644_v62 }
 0x3be   :  { %2181 = vadd.xlane.f32.xlu1 %v2180_v3  ;;  %2208 = vadd.xlane.f32.xlu0 %v2207_v7  ;;  %v1692_v3 = vmul.f32 %v6263_v8, %v6263_v8  ;;  %7186 = vst [vmem:[#allocation20_spill] sm:$0xff] %v6290_v1  ;;  %v1657_v55 = vmul.f32 %v6275_v31, %v6275_v31 }
 0x3bf   :  { %v6288_v7 = vrot.slane %v6271_v20, %v6142_v29  ;;  %v6296_v0 = vmul.f32 %v6192_v27, %v1682_v34  ;;  %v2234_v28 = vrot.slane %v6178_v17, %v6142_v29  ;;  %v1693_v27 = vmul.f32 %v6304_v51, %v6304_v51 }
 0x3c0   :  { %v1667_v50 = vsel %vm1583_vm3, %v1657_v55, 0.0 }
 0x3c1   :  { %7185 = vst [vmem:[#allocation19_spill] sm:$0xff] %v6288_v7  ;;  %v6308_v25 = vmul.f32 %v6288_v7, %v6290_v1  ;;  %v1694_v17 = vmul.f32 %v6296_v0, %v6296_v0  ;;  %v1701_v55 = vsel %vm1583_vm3, %v1693_v27, 0.0 }
 0x3c2   :  { %2217 = vadd.xlane.f32.xlu1 %v2216_v53  ;;  %2178 = vadd.xlane.f32.xlu0 %v2177_v54  ;;  %v1698_v53 = vsel %vm1583_vm3, %v1692_v3, 0.0  ;;  %v1656_v54 = vmul.f32 %v6284_v49, %v6284_v49 }
 0x3c3   :  { %7187 = vst [vmem:[#allocation21_spill] sm:$0xff] %v6308_v25  ;;  %v1704_v9 = vsel %vm1583_vm3, %v1694_v17, 0.0  ;;  %v6325_v25 = vmul.f32 %v2270_v30, %v1680_v5 }
 0x3c4   :  { %v1664_v3 = vsel %vm1583_vm3, %v1656_v54, 0.0 }
 0x3c5   :  { %7190 = vst [vmem:[#allocation24_spill] sm:$0xff] %v6325_v25 }
 0x3c6   :  { %1699 = vadd.xlane.f32.xlu1 %v1698_v53  ;;  %2214 = vadd.xlane.f32.xlu0 %v2213_v24  ;;  %v6319_v53 = vmul.f32 %v2234_v28, %v6180_v18  ;;  %v6322_v24 = vmul.f32 %v2234_v28, %v6182_v19  ;;  %v6333_v18 = vmul.f32 %v2270_v30, %v6188_v26 }
 0x3c7   :  { %v6335_v19 = vmul.f32 %v2234_v28, %v1645_v61 }
 0x3c8   :  { %7188 = vst [vmem:[#allocation22_spill] sm:$0xff] %v6319_v53  ;;  %7189 = vst [vmem:[#allocation23_spill] sm:$0xff] %v6322_v24  ;;  %v2240_v54 = vmul.f32 %v6319_v53, %v6319_v53  ;;  %v2239_v7 = vmul.f32 %v6322_v24, %v6322_v24  ;;  %v2275_v27 = vmul.f32 %v6333_v18, %v6333_v18  ;;  %v5340_v24 = vld [vmem:[#allocation5 + $0x160] ss:$8 sps:$4 sm:$0xff]  }
 0x3c9   :  { %7191 = vst [vmem:[#allocation25_spill] sm:$0xff] %v6335_v19  ;;  %v2242_v26 = vmul.f32 %v6335_v19, %v6335_v19  ;;  %v5336_v19 = vld [vmem:[#allocation5 + $0x174] ss:$8 sps:$4 sm:$0xff]  }
 0x3ca   :  { %1668 = vadd.xlane.f32.xlu1 %v1667_v50  ;;  %1665 = vadd.xlane.f32.xlu0 %v1664_v3  ;;  %v6337_v50 = vmul.f32 %v2234_v28, %v1644_v62  ;;  %v2246_v5 = vsel %vm1583_vm3, %v2240_v54, 0.0  ;;  %v2243_v17 = vsel %vm1583_vm3, %v2239_v7, 0.0  ;;  %v2276_v3 = vmul.f32 %v6325_v25, %v6325_v25 }
 0x3cb   :  { %v2279_v62 = vsel %vm1583_vm3, %v2275_v27, 0.0  ;;  %v6353_v28 = vmul.f32 %v2270_v30, %v1681_v11  ;;  %v2252_v54 = vsel %vm1583_vm3, %v2242_v26, 0.0  ;;  %3768 = vmatprep.subr.bf16.mxu0 %v5336_v19  ;;  %v5343_v19 = vld [vmem:[#allocation5 + $0x10] ss:$8 sps:$4 sm:$0xff]  }
 0x3cc   :  { %7192 = vst [vmem:[#allocation26_spill] sm:$0xff] %v6337_v50  ;;  %v2282_v61 = vsel %vm1583_vm3, %v2276_v3, 0.0  ;;  %v2241_v7 = vmul.f32 %v6337_v50, %v6337_v50  ;;  %3769 = vmatpush1.bf16.msra.mxu0 %v5334_v43  ;;  %v5346_v43 = vld [vmem:[#allocation5 + $0x150] ss:$8 sps:$4 sm:$0xff]  }
 0x3cd   :  { %7194 = vst [vmem:[#allocation28_spill] sm:$0xff] %v6353_v28 }
 0x3ce   :  { %1705 = vadd.xlane.f32.xlu1 %v1704_v9  ;;  %1702 = vadd.xlane.f32.xlu0 %v1701_v55  ;;  %v6347_v9 = vmul.f32 %v2270_v30, %v1682_v34  ;;  %v7156_v55 = vmov 0   ;;  %v2249_v34 = vsel %vm1583_vm3, %v2241_v7, 0.0  ;;  %v5321_v7 = vld [vmem:[#allocation5 + $0x74] ss:$8 sps:$4 sm:$0xff]  }
 0x3cf   :  { %5275 = vset.pattern.permute.xlu0 %v7156_v55  ;;  %5276 = vset.pattern.permute.xlu1 %v7156_v55 }
 0x3d0   :  { %7193 = vst [vmem:[#allocation27_spill] sm:$0xff] %v6347_v9  ;;  %3695 = vmatprep.subr.bf16.mxu1 %v5321_v7 }
 0x3d2   :  { %2247 = vadd.xlane.f32.xlu1 %v2246_v5  ;;  %2244 = vadd.xlane.f32.xlu0 %v2243_v17  ;;  %v2278_v5 = vmul.f32 %v6347_v9, %v6347_v9  ;;  %v2277_v17 = vmul.f32 %v6353_v28, %v6353_v28 }
 0x3d4   :  { %v2288_v11 = vsel %vm1583_vm3, %v2278_v5, 0.0  ;;  %v2285_v30 = vsel %vm1583_vm3, %v2277_v17, 0.0  ;;  %v5327_v5 = vld [vmem:[#allocation5 + $0x54] ss:$8 sps:$4 sm:$0xff]   ;;  %v5325_v17 = vld [vmem:[#allocation5 + $0x50] ss:$8 sps:$4 sm:$0xff]  }
 0x3d6   :  { %2283 = vadd.xlane.f32.xlu1 %v2282_v61  ;;  %2280 = vadd.xlane.f32.xlu0 %v2279_v62  ;;  %v5319_v62 = vld [vmem:[#allocation5 + $0x70] ss:$8 sps:$4 sm:$0xff]  }
 0x3d7   :  { %3696 = vmatpush1.bf16.msra.mxu1 %v5319_v62 }
 0x3da   :  { %2253 = vadd.xlane.f32.xlu1 %v2252_v54  ;;  %2250 = vadd.xlane.f32.xlu0 %v2249_v34  ;;  %v5322_v54 = vld [vmem:[#allocation5 + $0x60] ss:$8 sps:$4 sm:$0xff]   ;;  %v5324_v34 = vld [vmem:[#allocation5 + $0x64] ss:$8 sps:$4 sm:$0xff]  }
 0x3db   :  { %3697 = vmatprep.subr.bf16.mxu1 %v5324_v34 }
 0x3dc   :  { %3698 = vmatpush1.bf16.msra.mxu1 %v5322_v54 }
 0x3dd   :  { %3699 = vmatprep.subr.bf16.mxu1 %v5327_v5  ;;  %v5337_v5 = vld [vmem:[#allocation5 + $0x20] ss:$8 sps:$4 sm:$0xff]  }
 0x3de   :  { %2289 = vadd.xlane.f32.xlu1 %v2288_v11  ;;  %2286 = vadd.xlane.f32.xlu0 %v2285_v30 }
 0x3e0   :  { %3700 = vmatpush1.bf16.msra.mxu1 %v5325_v17  ;;  %v5339_v17 = vld [vmem:[#allocation5 + $0x24] ss:$8 sps:$4 sm:$0xff]  }
 0x3e1   :  { %3701 = vmatprep.subr.bf16.mxu1 %v5330_v47  ;;  %v5342_v47 = vld [vmem:[#allocation5 + $0x164] ss:$8 sps:$4 sm:$0xff]  }
 0x3e2   :  { %3770 = vmatprep.subr.bf16.mxu0 %v5342_v47 }
 0x3e3   :  { %3771 = vmatpush1.bf16.msra.mxu0 %v5340_v24 }
 0x3e4   :  { %3702 = vmatpush1.bf16.msra.mxu1 %v5328_v45 }
 0x3e5   :  { %3703 = vmatprep.subr.bf16.mxu1 %v5333_v44 }
 0x3e8   :  { %3704 = vmatpush1.bf16.msra.mxu1 %v5331_v16  ;;  %v5345_v16 = vld [vmem:[#allocation5 + $0x14] ss:$8 sps:$4 sm:$0xff]  }
 0x3e9   :  { %3705 = vmatprep.subr.bf16.mxu1 %v5339_v17  ;;  %v5357_v17 = vld [vmem:[#allocation5 + $0xf4] ss:$8 sps:$4 sm:$0xff]  }
 0x3ec   :  { %3706 = vmatpush1.bf16.msra.mxu1 %v5337_v5  ;;  %v5354_v5 = vld [vmem:[#allocation5 + $0x144] ss:$8 sps:$4 sm:$0xff]  }
 0x3ed   :  { %3707 = vmatprep.subr.bf16.mxu1 %v5345_v16 }
 0x3f0   :  { %3708 = vmatpush1.bf16.msra.mxu1 %v5343_v19 }
 0x42b   :  { %v1623_v3 = vpop.xlane.xlu1 %1622  ;;  %v1586_v27 = vpop.xlane.xlu0 %1585 }
 0x42c   :  { %v1633_v50 = vadd.f32 %v1623_v3, %v1586_v27  ;;  %v5351_v27 = vld [vmem:[#allocation5 + $0x4] ss:$8 sps:$4 sm:$0xff]  }
 0x42d   :  { %3709 = vmatprep.subr.bf16.mxu1 %v5351_v27 }
 0x42f   :  { %v6365_v61 = vpop.xlane.xlu1 %1625  ;;  %v1589_v26 = vpop.xlane.xlu0 %1588 }
 0x430   :  { %v1634_v24 = vadd.f32 %v6365_v61, %v1589_v26 }
 0x433   :  { %v6367_v55 = vpop.xlane.xlu1 %1594  ;;  %v6369_v48 = vpop.xlane.xlu0 %1591 }
 0x437   :  { %v6371_v11 = vpop.xlane.xlu1 %1631  ;;  %v6373_v30 = vpop.xlane.xlu0 %1628 }
 0x438   :  { %v1636_v26 = vadd.f32 %v6371_v11, %v6367_v55  ;;  %v5372_v11 = vld [vmem:[#allocation5 + $0x114] ss:$8 sps:$4 sm:$0xff]  }
 0x43b   :  { %v6375_v7 = vpop.xlane.xlu1 %2175  ;;  %v6377_v62 = vpop.xlane.xlu0 %2172 }
 0x43f   :  { %v1663_v34 = vpop.xlane.xlu1 %1662  ;;  %v1660_v54 = vpop.xlane.xlu0 %1659 }
 0x440   :  { %v1670_v53 = vadd.f32 %v1660_v54, %v1633_v50  ;;  %v5348_v50 = vld [vmem:[#allocation5 + $0x154] ss:$8 sps:$4 sm:$0xff]   ;;  %v5352_v54 = vld [vmem:[#allocation5 + $0x140] ss:$8 sps:$4 sm:$0xff]   ;;  %v1671_v47 = vadd.f32 %v1663_v34, %v1634_v24 }
 0x441   :  { %3772 = vmatprep.subr.bf16.mxu0 %v5348_v50  ;;  %v5358_v50 = vld [vmem:[#allocation5 + $0x130] ss:$8 sps:$4 sm:$0xff]   ;;  %v5361_v34 = vld [vmem:[#allocation5 + $0xe0] ss:$8 sps:$4 sm:$0xff]  }
 0x442   :  { %3773 = vmatpush1.bf16.msra.mxu0 %v5346_v43  ;;  %v5360_v43 = vld [vmem:[#allocation5 + $0x134] ss:$8 sps:$4 sm:$0xff]   ;;  %v5364_v24 = vld [vmem:[#allocation5 + $0x120] ss:$8 sps:$4 sm:$0xff]  }
 0x443   :  { %v6379_v23 = vpop.xlane.xlu1 %2211  ;;  %v1697_v29 = vpop.xlane.xlu0 %1696  ;;  %3774 = vmatprep.subr.bf16.mxu0 %v5354_v5 }
 0x444   :  { %v1707_v45 = vadd.f32 %v1697_v29, %v1670_v53  ;;  %v5349_v53 = vld [vmem:[#allocation5] ss:$8 sps:$4 sm:$0xff]  }
 0x445   :  { %3710 = vmatpush1.bf16.msra.mxu1 %v5349_v53  ;;  %v5363_v53 = vld [vmem:[#allocation5 + $0xe4] ss:$8 sps:$4 sm:$0xff]  }
 0x446   :  { %v1711_v1 = vadd.f32 1e-08, %v1707_v45  ;;  %3775 = vmatpush1.bf16.msra.mxu0 %v5352_v54  ;;  %3711 = vmatprep.subr.bf16.mxu1 %v5357_v17  ;;  %v5366_v54 = vld [vmem:[#allocation5 + $0x124] ss:$8 sps:$4 sm:$0xff]  }
 0x447   :  { %v6381_v9 = vpop.xlane.xlu1 %2181  ;;  %v6383_v44 = vpop.xlane.xlu0 %2208  ;;  %3776 = vmatprep.subr.bf16.mxu0 %v5360_v43 }
 0x448   :  { %5511 = vrsqrt.f32 %v1711_v1  ;;  %v5355_v1 = vld [vmem:[#allocation5 + $0xf0] ss:$8 sps:$4 sm:$0xff]  }
 0x449   :  { %3712 = vmatpush2.bf16.msra.mxu1 %v5355_v1  ;;  %v1635_v1 = vadd.f32 %v6373_v30, %v6369_v48  ;;  %v5375_v48 = vld [vmem:[#allocation5 + $0xc4] ss:$8 sps:$4 sm:$0xff]  }
 0x44a   :  { %3777 = vmatpush1.bf16.msra.mxu0 %v5358_v50  ;;  %3713 = vmatprep.subr.bf16.mxu1 %v5363_v53  ;;  %v5373_v53 = vld [vmem:[#allocation5 + $0xc0] ss:$8 sps:$4 sm:$0xff]   ;;  %v5378_v30 = vld [vmem:[#allocation5 + $0x104] ss:$8 sps:$4 sm:$0xff]  }
 0x44b   :  { %v6385_v3 = vpop.xlane.xlu1 %2217  ;;  %v6387_v29 = vpop.xlane.xlu0 %2178  ;;  %3778 = vmatprep.subr.bf16.mxu0 %v5366_v54 }
 0x44d   :  { %3714 = vmatpush2.bf16.msra.mxu1 %v5361_v34  ;;  %v2219_v34 = vadd.f32 %v6383_v44, %v6377_v62  ;;  %v2220_v62 = vadd.f32 %v6379_v23, %v6375_v7  ;;  %v5384_v44 = vld [vmem:[#allocation5 + $0x1f4] ss:$8 sps:$4 sm:$0xff]   ;;  %v5388_v23 = vld [vmem:[#allocation5 + $0x1e0] ss:$8 sps:$4 sm:$0xff]   ;;  %v5390_v7 = vld [vmem:[#allocation5 + $0x1e4] ss:$8 sps:$4 sm:$0xff]  }
 0x44e   :  { %3779 = vmatpush1.bf16.msra.mxu0 %v5364_v24 }
 0x44f   :  { %v1700_v45 = vpop.xlane.xlu1 %1699  ;;  %v6390_v19 = vpop.xlane.xlu0 %2214  ;;  %3780 = vmatprep.subr.bf16.mxu0 %v5372_v11 }
 0x450   :  { %v1708_v16 = vadd.f32 %v1700_v45, %v1671_v47  ;;  %v5369_v47 = vld [vmem:[#allocation5 + $0xd4] ss:$8 sps:$4 sm:$0xff]  }
 0x451   :  { %3715 = vmatprep.subr.bf16.mxu1 %v5369_v47 }
 0x452   :  { %v1712_v28 = vadd.f32 1e-08, %v1708_v16 }
 0x453   :  { %v1669_v25 = vpop.xlane.xlu1 %1668  ;;  %v1666_v61 = vpop.xlane.xlu0 %1665 }
 0x454   :  { %5513 = vrsqrt.f32 %v1712_v28  ;;  %v1673_v5 = vadd.f32 %v1669_v25, %v1636_v26  ;;  %v5367_v28 = vld [vmem:[#allocation5 + $0xd0] ss:$8 sps:$4 sm:$0xff]   ;;  %v1672_v50 = vadd.f32 %v1666_v61, %v1635_v1 }
 0x455   :  { %v6394_v27 = vpop.eup %5511  ;;  %v5370_v25 = vld [vmem:[#allocation5 + $0x110] ss:$8 sps:$4 sm:$0xff]   ;;  %3716 = vmatpush2.bf16.msra.mxu1 %v5367_v28 }
 0x456   :  { %v6398_v17 = vmul.f32 %v6394_v27, %v6109_v13  ;;  %3781 = vmatpush1.bf16.msra.mxu0 %v5370_v25  ;;  %3717 = vmatprep.subr.bf16.mxu1 %v5375_v48  ;;  %v5382_v28 = vld [vmem:[#allocation5 + $0x1f0] ss:$8 sps:$4 sm:$0xff]  }
 0x457   :  { %v1706_v45 = vpop.xlane.xlu1 %1705  ;;  %v1703_v55 = vpop.xlane.xlu0 %1702  ;;  %3782 = vmatprep.subr.bf16.mxu0 %v5378_v30  ;;  %v5599_v30 = vmov 1  }
 0x458   :  { %v1710_v16 = vadd.f32 %v1706_v45, %v1673_v5  ;;  %1725 = vperm.xlu0 %5275, %v6398_v17   ;;  %v1709_v43 = vadd.f32 %v1703_v55, %v1672_v50  ;;  %v5376_v5 = vld [vmem:[#allocation5 + $0x100] ss:$8 sps:$4 sm:$0xff]   ;;  %v5379_v45 = vld [vmem:[#allocation5 + $0xb0] ss:$8 sps:$4 sm:$0xff]   ;;  %v5381_v55 = vld [vmem:[#allocation5 + $0xb4] ss:$8 sps:$4 sm:$0xff]  }
 0x459   :  { %3718 = vmatpush2.bf16.msra.mxu1 %v5373_v53 }
 0x45a   :  { %v1714_v13 = vadd.f32 1e-08, %v1710_v16  ;;  %v1713_v61 = vadd.f32 1e-08, %v1709_v43  ;;  %3783 = vmatpush1.bf16.msra.mxu0 %v5376_v5  ;;  %3719 = vmatprep.subr.bf16.mxu1 %v5381_v55  ;;  %v5387_v43 = vld [vmem:[#allocation5 + $0xa4] ss:$8 sps:$4 sm:$0xff]  }
 0x45b   :  { %v2245_v26 = vpop.xlane.xlu0 %2244  ;;  %v2248_v54 = vpop.xlane.xlu1 %2247  ;;  %3784 = vmatprep.subr.bf16.mxu0 %v5384_v44  ;;  %v5394_v55 = vld [vmem:[#allocation5 + $0x1d0] ss:$8 sps:$4 sm:$0xff]   ;;  %v2222_v44 = vadd.f32 %v6385_v3, %v6381_v9  ;;  %v5405_v9 = vld [vmem:[#allocation5 + $0x1b4] ss:$8 sps:$4 sm:$0xff]  }
 0x45c   :  { %5515 = vrsqrt.f32 %v1714_v13  ;;  %v2255_v24 = vadd.f32 %v2245_v26, %v2219_v34  ;;  %v2256_v50 = vadd.f32 %v2248_v54, %v2220_v62  ;;  %v5385_v13 = vld [vmem:[#allocation5 + $0xa0] ss:$8 sps:$4 sm:$0xff]   ;;  %v5393_v34 = vld [vmem:[#allocation5 + $0x94] ss:$8 sps:$4 sm:$0xff]  }
 0x45d   :  { %5517 = vrsqrt.f32 %v1713_v61  ;;  %3720 = vmatpush2.bf16.msra.mxu1 %v5379_v45 }
 0x45e   :  { %3785 = vmatpush2.bf16.msra.mxu0 %v5382_v28  ;;  %3721 = vmatprep.subr.bf16.mxu1 %v5387_v43  ;;  %v5396_v28 = vld [vmem:[#allocation5 + $0x1d4] ss:$8 sps:$4 sm:$0xff]   ;;  %v7195_v43 = vmov 0  }
 0x45f   :  { %v2281_v47 = vpop.xlane.xlu0 %2280  ;;  %v2284_v16 = vpop.xlane.xlu1 %2283  ;;  %3786 = vmatprep.subr.bf16.mxu0 %v5390_v7  ;;  %v5408_v7 = vld [vmem:[#allocation5 + $0x1a4] ss:$8 sps:$4 sm:$0xff]  }
 0x460   :  { %v2291_v1 = vadd.f32 %v2281_v47, %v2255_v24  ;;  %v2292_v53 = vadd.f32 %v2284_v16, %v2256_v50  ;;  %v2221_v24 = vadd.f32 %v6390_v19, %v6387_v29  ;;  %v5397_v29 = vld [vmem:[#allocation5 + $0x80] ss:$8 sps:$4 sm:$0xff]   ;;  %v5402_v19 = vld [vmem:[#allocation5 + $0x1c4] ss:$8 sps:$4 sm:$0xff]   ;;  %v1827_v50 = vmul.f32 %v6394_v27, %v6107_v12  ;;  %v5403_v12 = vld [vmem:[#allocation5 + $0x1b0] ss:$8 sps:$4 sm:$0xff]  }
 0x461   :  { %v6405_v11 = vpop.eup %5513  ;;  %3722 = vmatpush2.bf16.msra.mxu1 %v5385_v13 }
 0x462   :  { %v1720_v25 = vmul.f32 %v6405_v11, %v6114_v15  ;;  %v2295_v26 = vadd.f32 1e-08, %v2291_v1  ;;  %v5391_v15 = vld [vmem:[#allocation5 + $0x90] ss:$8 sps:$4 sm:$0xff]   ;;  %v2296_v5 = vadd.f32 1e-08, %v2292_v53  ;;  %3787 = vmatpush2.bf16.msra.mxu0 %v5388_v23  ;;  %3723 = vmatprep.subr.bf16.mxu1 %v5393_v34 }
 0x463   :  { %v2251_v48 = vpop.xlane.xlu0 %2250  ;;  %v2254_v61 = vpop.xlane.xlu1 %2253  ;;  %3788 = vmatprep.subr.bf16.mxu0 %v5396_v28 }
 0x464   :  { %1730 = vperm.xlu1 %5276, %v1720_v25   ;;  %5519 = vrsqrt.f32 %v2295_v26  ;;  %v2257_v45 = vadd.f32 %v2251_v48, %v2221_v24  ;;  %v2258_v13 = vadd.f32 %v2254_v61, %v2222_v44  ;;  %v1828_v48 = vmul.f32 %v6405_v11, %v6112_v14  ;;  %v5409_v24 = vld [vmem:[#allocation5 + $0x190] ss:$8 sps:$4 sm:$0xff]  }
 0x465   :  { %3724 = vmatpush2.bf16.msra.mxu1 %v5391_v15  ;;  %5521 = vrsqrt.f32 %v2296_v5  ;;  %v5411_v5 = vld [vmem:[#allocation5 + $0x194] ss:$8 sps:$4 sm:$0xff]  }
 0x466   :  { %3789 = vmatpush2.bf16.msra.mxu0 %v5394_v55  ;;  %v3989_v44 = vld [vmem:[%s7143_s12 + $0x10] sm:$0xff] }
 0x467   :  { %v2287_v1 = vpop.xlane.xlu0 %2286  ;;  %3790 = vmatprep.subr.bf16.mxu0 %v5402_v19  ;;  %v3993_v19 = vmul.f32 0.17677669, %v3989_v44  ;;  %v4046_v44 = vld [vmem:[%s7146_s15] sm:$0xff] }
 0x468   :  { %5277 = vset.pattern.permute.xlu1 %v5599_v30  ;;  %v2293_v62 = vadd.f32 %v2287_v1, %v2257_v45 }
 0x469   :  { %v6412_v54 = vpop.eup %5515  ;;  %1760 = vperm.xlu1 %5277, %v6398_v17   ;;  %v5399_v17 = vld [vmem:[#allocation5 + $0x84] ss:$8 sps:$4 sm:$0xff]  }
 0x46a   :  { %v1722_v47 = vmul.f32 %v6412_v54, %v6127_v21  ;;  %v6421_v16 = vpop.eup %5517  ;;  %v2290_v21 = vpop.xlane.xlu1 %2289  ;;  %v2297_v26 = vadd.f32 1e-08, %v2293_v62  ;;  %3725 = vmatprep.subr.bf16.mxu1 %v5399_v17  ;;  %v1935_v62 = vmul.f32 %v6394_v27, %v6203_v46  ;;  %v1936_v17 = vmul.f32 %v6405_v11, %v6200_v4  ;;  %v5429_v4 = vld [vmem:[#allocation5 + $0x374] ss:$8 sps:$4 sm:$0xff]  }
 0x46b   :  { %v2294_v3 = vadd.f32 %v2290_v21, %v2258_v13  ;;  %v1829_v53 = vmul.f32 %v6421_v16, %v6151_v33  ;;  %3726 = vmatpush2.bf16.msra.mxu1 %v5397_v29  ;;  %v5406_v33 = vld [vmem:[#allocation5 + $0x1a0] ss:$8 sps:$4 sm:$0xff]   ;;  %v1721_v45 = vmul.f32 %v6421_v16, %v6130_v22  ;;  %v6476_v46 = vmul.f32 %v6421_v16, %v6284_v49 }
 0x46c   :  { %1740 = vperm.xlu0 %5275, %v1722_v47   ;;  %5523 = vrsqrt.f32 %v2297_v26  ;;  %v6488_v49 = vmul.f32 %v6421_v16, %v6304_v51  ;;  %v6501_v51 = vrot.slane %v6271_v20, %v6088_v58  ;;  %v6528_v13 = vmul.f32 0.125, %v6044_v35 }
 0x46d   :  { %1764 = vperm.xlu1 %5277, %v1720_v25   ;;  %v5400_v25 = vld [vmem:[#allocation5 + $0x1c0] ss:$8 sps:$4 sm:$0xff]   ;;  %v2298_v15 = vadd.f32 1e-08, %v2294_v3  ;;  %v6531_v26 = vmul.f32 0.125, %v6046_v36  ;;  %v6537_v3 = vmul.f32 0.125, %v6050_v38 }
 0x46e   :  { %3791 = vmatpush2.bf16.msra.mxu0 %v5400_v25  ;;  %v6515_v16 = vmul.f32 %v6501_v51, %v3993_v19  ;;  %v2044_v25 = vmul.f32 %v6405_v11, %v6263_v8  ;;  %v6541_v8 = vrot.slane %v6528_v13, %v6088_v58  ;;  %v4049_v38 = vld [vmem:[%s7146_s15 + $0x18] sm:$0xff]  ;;  %v5420_v19 = vld [vmem:[#allocation5 + $0x264] ss:$8 sps:$4 sm:$0xff]  }
 0x46f   :  { %3792 = vmatprep.subr.bf16.mxu0 %v5405_v9  ;;  %5525 = vrsqrt.f32 %v2298_v15  ;;  %v6534_v9 = vmul.f32 0.125, %v6048_v37  ;;  %v6545_v35 = vrot.slane %v6531_v26, %v6088_v58  ;;  %v6553_v37 = vrot.slane %v6537_v3, %v6088_v58 }
 0x470   :  { %5282 = vset.pattern.permute.xlu0 %v5599_v30  ;;  %v4005_v21 = vmul.f32 %v6515_v16, %v6515_v16 }
 0x471   :  { %5278 = vset.pattern.permute.xlu1 %v7195_v43  ;;  %1772 = vperm.xlu0 %5282, %v1722_v47   ;;  %v6431_v23 = vpop.eup %5519  ;;  %v5412_v47 = vld [vmem:[#allocation5 + $0x180] ss:$8 sps:$4 sm:$0xff]   ;;  %v6549_v36 = vrot.slane %v6534_v9, %v6088_v58 }
 0x472   :  { %1833 = vperm.xlu1 %5278, %v1827_v50   ;;  %v2303_v34 = vmul.f32 %v6431_v23, %v6171_v6  ;;  %3793 = vmatpush2.bf16.msra.mxu0 %v5403_v12  ;;  %v6436_v14 = vpop.eup %5521  ;;  %v5414_v6 = vld [vmem:[#allocation5 + $0x184] ss:$8 sps:$4 sm:$0xff]   ;;  %v2411_v1 = vmul.f32 %v6431_v23, %v6222_v2 }
 0x473   :  { %3794 = vmatprep.subr.bf16.mxu0 %v5408_v7  ;;  %v2304_v61 = vmul.f32 %v6436_v14, %v6162_v57 }
 0x475   :  { %1876 = vperm.xlu0 %5282, %v1829_v53  }
 0x476   :  { %1838 = vperm.xlu1 %5278, %v1828_v48   ;;  %3795 = vmatpush2.bf16.msra.mxu0 %v5406_v33 }
 0x477   :  { %3796 = vmatprep.subr.bf16.mxu0 %v5411_v5 }
 0x479   :  { %5285 = vset.pattern.permute.xlu0 %v7195_v43  ;;  %v6446_v55 = vpop.eup %5523 }
 0x47a   :  { %5279 = vset.pattern.permute.xlu1 %v5599_v30  ;;  %2309 = vperm.xlu0 %5285, %v2303_v34   ;;  %v2305_v57 = vmul.f32 %v6446_v55, %v6237_v63  ;;  %v2413_v2 = vmul.f32 %v6446_v55, %v6256_v60  ;;  %v1830_v63 = vmul.f32 %v6412_v54, %v6148_v32 }
 0x47b   :  { %1868 = vperm.xlu1 %5279, %v1827_v50   ;;  %3797 = vmatpush2.bf16.msra.mxu0 %v5409_v24  ;;  %v2043_v32 = vmul.f32 %v6394_v27, %v6216_v56  ;;  %v1938_v56 = vmul.f32 %v6412_v54, %v6275_v31  ;;  %v2412_v60 = vmul.f32 %v6436_v14, %v6207_v52  ;;  %v3987_v52 = vld [vmem:[%s7143_s12] sm:$0xff]  ;;  %v4013_v50 = vsel %vm92_vm1, %v4005_v21, 0.0 }
 0x47c   :  { %3798 = vmatprep.subr.bf16.mxu0 %v5414_v6  ;;  %v6452_v28 = vpop.eup %5525  ;;  %v3991_v31 = vmul.f32 0.17677669, %v3987_v52  ;;  %v5415_v52 = vld [vmem:[#allocation5 + $0x270] ss:$8 sps:$4 sm:$0xff]   ;;  %v6597_v21 = vmul.f32 0.125, %v6056_v41 }
 0x47d   :  { %v2306_v22 = vmul.f32 %v6452_v28, %v6219_v59  ;;  %v5417_v59 = vld [vmem:[#allocation5 + $0x274] ss:$8 sps:$4 sm:$0xff]   ;;  %v2414_v27 = vmul.f32 %v6452_v28, %v6234_v10 }
 0x47e   :  { %5288 = vset.pattern.permute.xlu0 %v5599_v30  ;;  %3841 = vmatprep.subr.bf16.mxu1 %v5417_v59  ;;  %v6509_v29 = vmul.f32 %v6501_v51, %v3991_v31 }
 0x47f   :  { %1872 = vperm.xlu1 %5279, %v1828_v48   ;;  %2348 = vperm.xlu0 %5288, %v2304_v61  }
 0x480   :  { %3799 = vmatpush2.bf16.msra.mxu0 %v5412_v47  ;;  %v4003_v20 = vmul.f32 %v6509_v29, %v6509_v29 }
 0x481   :  { %3914 = vmatprep.subr.bf16.mxu0 %v5429_v4 }
 0x482   :  { %v4007_v10 = vsel %vm92_vm1, %v4003_v20, 0.0  ;;  %v6589_v20 = vmul.f32 0.125, %v6052_v39  ;;  %v5423_v39 = vld [vmem:[#allocation5 + $0x254] ss:$8 sps:$4 sm:$0xff]  }
 0x483   :  { %5280 = vset.pattern.permute.xlu1 %v7195_v43  ;;  %2452 = vperm.xlu0 %5288, %v2411_v1  }
 0x484   :  { %1735 = vperm.xlu1 %5280, %v1721_v45  }
 0x487   :  { %5291 = vset.pattern.permute.xlu0 %v7195_v43 }
 0x488   :  { %5281 = vset.pattern.permute.xlu1 %v5599_v30  ;;  %2319 = vperm.xlu0 %5291, %v2305_v57  }
 0x489   :  { %1768 = vperm.xlu1 %5281, %v1721_v45  }
 0x48c   :  { %5294 = vset.pattern.permute.xlu0 %v5599_v30 }
 0x48d   :  { %5283 = vset.pattern.permute.xlu1 %v7195_v43  ;;  %2356 = vperm.xlu0 %5294, %v2306_v22  }
 0x48e   :  { %1843 = vperm.xlu1 %5283, %v1829_v53  }
 0x491   :  { %2460 = vperm.xlu0 %5294, %v2413_v2  }
 0x492   :  { %1848 = vperm.xlu1 %5283, %v1830_v63  }
 0x495   :  { %5297 = vset.pattern.permute.xlu0 %v7195_v43 }
 0x496   :  { %5284 = vset.pattern.permute.xlu1 %v5599_v30  ;;  %1941 = vperm.xlu0 %5297, %v1935_v62  }
 0x497   :  { %1880 = vperm.xlu1 %5284, %v1830_v63   ;;  %v4047_v63 = vld [vmem:[%s7146_s15 + $0x8] sm:$0xff] }
 0x49a   :  { %5300 = vset.pattern.permute.xlu0 %v5599_v30 }
 0x49b   :  { %5286 = vset.pattern.permute.xlu1 %v7195_v43  ;;  %1980 = vperm.xlu0 %5300, %v1936_v17  }
 0x49c   :  { %2314 = vperm.xlu1 %5286, %v2304_v61   ;;  %v4048_v61 = vld [vmem:[%s7146_s15 + $0x10] sm:$0xff] }
 0x49f   :  { %2084 = vperm.xlu0 %5300, %v2043_v32  }
 0x4a0   :  { %5287 = vset.pattern.permute.xlu1 %v5599_v30 }
 0x4a1   :  { %2344 = vperm.xlu1 %5287, %v2303_v34  }
 0x4a3   :  { %5303 = vset.pattern.permute.xlu0 %v7195_v43 }
 0x4a4   :  { %1951 = vperm.xlu0 %5303, %v6476_v46  }
 0x4a5   :  { %5289 = vset.pattern.permute.xlu1 %v7195_v43 }
 0x4a6   :  { %2417 = vperm.xlu1 %5289, %v2411_v1  }
 0x4a8   :  { %5306 = vset.pattern.permute.xlu0 %v5599_v30 }
 0x4a9   :  { %1988 = vperm.xlu0 %5306, %v1938_v56  }
 0x4aa   :  { %2422 = vperm.xlu1 %5289, %v2412_v60  }
 0x4ad   :  { %2092 = vperm.xlu0 %5306, %v6488_v49  }
 0x4ae   :  { %5290 = vset.pattern.permute.xlu1 %v5599_v30 }
 0x4af   :  { %2456 = vperm.xlu1 %5290, %v2412_v60  }
 0x4b1   :  { %5309 = vset.pattern.permute.xlu0 %v7195_v43 }
 0x4b3   :  { %5292 = vset.pattern.permute.xlu1 %v7195_v43 }
 0x4b4   :  { %2324 = vperm.xlu1 %5292, %v2306_v22  }
 0x4b8   :  { %5293 = vset.pattern.permute.xlu1 %v5599_v30 }
 0x4b9   :  { %2352 = vperm.xlu1 %5293, %v2305_v57  }
 0x4bd   :  { %5295 = vset.pattern.permute.xlu1 %v7195_v43 }
 0x4be   :  { %2427 = vperm.xlu1 %5295, %v2413_v2  }
 0x4c2   :  { %2432 = vperm.xlu1 %5295, %v2414_v27  }
 0x4c6   :  { %5296 = vset.pattern.permute.xlu1 %v5599_v30 }
 0x4c7   :  { %2464 = vperm.xlu1 %5296, %v2414_v27  }
 0x4cb   :  { %5298 = vset.pattern.permute.xlu1 %v7195_v43 }
 0x4cc   :  { %1946 = vperm.xlu1 %5298, %v1936_v17   ;;  %4008 = vadd.xlane.f32.xlu0 %v4007_v10  ;;  %v2046_v10 = vmul.f32 %v6412_v54, %v6296_v0  ;;  %v5421_v54 = vld [vmem:[#allocation5 + $0x250] ss:$8 sps:$4 sm:$0xff]  }
 0x4d0   :  { %5299 = vset.pattern.permute.xlu1 %v5599_v30  ;;  %4014 = vadd.xlane.f32.xlu0 %v4013_v50  ;;  %v6600_v50 = vmul.f32 0.125, %v6058_v42  ;;  %v6614_v42 = vrot.slane %v6597_v21, %v6088_v58 }
 0x4d1   :  { %1976 = vperm.xlu1 %5299, %v1935_v62  }
 0x4d2   :  { %v6618_v0 = vrot.slane %v6600_v50, %v6088_v58 }
 0x4d3   :  { %v1726_v48 = vpop.permute.xlu0 %1725 }
 0x4d4   :  { %v1751_v12 = vmul.f32 %v6541_v8, %v1726_v48  ;;  %v1752_v7 = vmul.f32 %v6549_v36, %v1726_v48  ;;  %v6604_v48 = vrot.slane %v6589_v20, %v6088_v58 }
 0x4d5   :  { %5301 = vset.pattern.permute.xlu1 %v7195_v43 }
 0x4d6   :  { %2049 = vperm.xlu1 %5301, %v2043_v32  }
 0x4da   :  { %2054 = vperm.xlu1 %5301, %v2044_v25  }
 0x4de   :  { %5302 = vset.pattern.permute.xlu1 %v5599_v30 }
 0x4df   :  { %v1731_v53 = vpop.permute.xlu1 %1730  ;;  %2088 = vperm.xlu1 %5302, %v2044_v25  }
 0x4e0   :  { %v1753_v47 = vmul.f32 %v6541_v8, %v1731_v53  ;;  %v1754_v1 = vmul.f32 %v6549_v36, %v1731_v53  ;;  %v5418_v53 = vld [vmem:[#allocation5 + $0x260] ss:$8 sps:$4 sm:$0xff]  }
 0x4e3   :  { %5304 = vset.pattern.permute.xlu1 %v7195_v43 }
 0x4e4   :  { %v1761_v11 = vpop.permute.xlu1 %1760  ;;  %1956 = vperm.xlu1 %5304, %v1938_v56  }
 0x4e5   :  { %v1783_v15 = vmul.f32 %v6545_v35, %v1761_v11  ;;  %v1784_v34 = vmul.f32 %v6553_v37, %v1761_v11 }
 0x4e6   :  { %4067 = vperm.xlu0 %5309, %v4049_v38  }
 0x4e7   :  { %v1791_v33 = vadd.f32 %v1783_v15, %v1751_v12  ;;  %v1792_v5 = vadd.f32 %v1784_v34, %v1752_v7  ;;  %v1741_v24 = vpop.permute.xlu0 %1740  ;;  %v7196_v34 = vld [vmem:[#allocation24_spill] sm:$0xff] }
 0x4e8   :  { %v1765_v6 = vpop.permute.xlu1 %1764  ;;  %5305 = vset.pattern.permute.xlu1 %v5599_v30  ;;  %v1757_v62 = vmul.f32 %v6541_v8, %v1741_v24  ;;  %v1758_v59 = vmul.f32 %v6549_v36, %v1741_v24 }
 0x4e9   :  { %v1785_v45 = vmul.f32 %v6545_v35, %v1765_v6  ;;  %v1786_v57 = vmul.f32 %v6553_v37, %v1765_v6  ;;  %1984 = vperm.xlu1 %5305, %v6476_v46  }
 0x4ea   :  { %4062 = vperm.xlu0 %5309, %v4048_v61   ;;  %v5424_v61 = vld [vmem:[#allocation5 + $0x240] ss:$8 sps:$4 sm:$0xff]  }
 0x4eb   :  { %v1793_v22 = vadd.f32 %v1785_v45, %v1753_v47  ;;  %v1794_v2 = vadd.f32 %v1786_v57, %v1754_v1  ;;  %v5432_v47 = vld [vmem:[#allocation5 + $0x234] ss:$8 sps:$4 sm:$0xff]  }
 0x4ec   :  { %v1773_v17 = vpop.permute.xlu0 %1772 }
 0x4ed   :  { %v4994_v32 = vpack.c.bf16 %v1793_v22, %v1791_v33  ;;  %v1789_v4 = vmul.f32 %v6545_v35, %v1773_v17  ;;  %v1790_v56 = vmul.f32 %v6553_v37, %v1773_v17  ;;  %v1834_v60 = vpop.permute.xlu1 %1833  ;;  %5307 = vset.pattern.permute.xlu1 %v7195_v43  ;;  %v4995_v46 = vpack.c.bf16 %v1794_v2, %v1792_v5 }
 0x4ee   :  { %2059 = vperm.xlu1 %5307, %v6488_v49   ;;  %4057 = vperm.xlu0 %5309, %v4047_v63   ;;  %v6594_v49 = vmul.f32 0.125, %v6054_v40  ;;  %v2627_v40 = vmul.f32 %v6431_v23, %v6333_v18  ;;  %v1859_v38 = vmul.f32 %v6604_v48, %v1834_v60  ;;  %v5426_v18 = vld [vmem:[#allocation5 + $0x244] ss:$8 sps:$4 sm:$0xff]   ;;  %v1860_v12 = vmul.f32 %v6614_v42, %v1834_v60 }
 0x4ef   :  { %v6581_v31 = vadd.f32 %v1789_v4, %v1757_v62  ;;  %v6583_v27 = vadd.f32 %v1790_v56, %v1758_v59  ;;  %3727 = vmatprep.mubr.bf16.mxu1 %v4995_v46  ;;  %v2628_v33 = vmul.f32 %v6436_v14, %v7196_v34  ;;  %v5430_v62 = vld [vmem:[#allocation5 + $0x230] ss:$8 sps:$4 sm:$0xff]   ;;  %v5438_v59 = vld [vmem:[#allocation5 + $0x224] ss:$8 sps:$4 sm:$0xff]   ;;  %v5436_v46 = vld [vmem:[#allocation5 + $0x220] ss:$8 sps:$4 sm:$0xff]  }
 0x4f0   :  { %3728 = vmatmul.mubr.bf16.vlgmr.msra.gmra.mxu1 %v4994_v32  ;;  %v6610_v41 = vrot.slane %v6594_v49, %v6088_v58  ;;  %v5427_v56 = vld [vmem:[#allocation5 + $0x370] ss:$8 sps:$4 sm:$0xff]   ;;  %v5435_v60 = vld [vmem:[#allocation5 + $0x364] ss:$8 sps:$4 sm:$0xff]  }
 0x4f1   :  { %v1839_v25 = vpop.permute.xlu1 %1838  ;;  %3842 = vmatpush1.bf16.msra.mxu1 %v5415_v52  ;;  %v5444_v52 = vld [vmem:[#allocation5 + $0x214] ss:$8 sps:$4 sm:$0xff]   ;;  %v5447_v34 = vld [vmem:[#allocation5 + $0x344] ss:$8 sps:$4 sm:$0xff]  }
 0x4f2   :  { %2064 = vperm.xlu1 %5307, %v2046_v10   ;;  %4052 = vperm.xlu0 %5309, %v4046_v44   ;;  %v1861_v1 = vmul.f32 %v6604_v48, %v1839_v25  ;;  %v1862_v45 = vmul.f32 %v6614_v42, %v1839_v25  ;;  %v5433_v44 = vld [vmem:[#allocation5 + $0x360] ss:$8 sps:$4 sm:$0xff]  }
 0x4f3   :  { %3843 = vmatprep.subr.bf16.mxu1 %v5420_v19 }
 0x4f5   :  { %3844 = vmatpush1.bf16.msra.mxu1 %v5418_v53 }
 0x4f6   :  { %v1869_v11 = vpop.permute.xlu1 %1868  ;;  %5308 = vset.pattern.permute.xlu1 %v5599_v30  ;;  %2633 = vperm.xlu0 %5309, %v2627_v40  }
 0x4f7   :  { %v1891_v7 = vmul.f32 %v6610_v41, %v1869_v11  ;;  %v1892_v15 = vmul.f32 %v6618_v0, %v1869_v11  ;;  %2096 = vperm.xlu1 %5308, %v2046_v10   ;;  %3845 = vmatprep.subr.bf16.mxu1 %v5423_v39  ;;  %v5441_v10 = vld [vmem:[#allocation5 + $0x354] ss:$8 sps:$4 sm:$0xff]  }
 0x4f9   :  { %v1899_v5 = vadd.f32 %v1891_v7, %v1859_v38  ;;  %v1900_v24 = vadd.f32 %v1892_v15, %v1860_v12  ;;  %3846 = vmatpush1.bf16.msra.mxu1 %v5421_v54  ;;  %v5442_v54 = vld [vmem:[#allocation5 + $0x210] ss:$8 sps:$4 sm:$0xff]   ;;  %v1877_v12 = vpop.permute.xlu0 %1876 }
 0x4fa   :  { %v1873_v6 = vpop.permute.xlu1 %1872  ;;  %2638 = vperm.xlu0 %5309, %v2628_v33   ;;  %3847 = vmatprep.subr.bf16.mxu1 %v5426_v18  ;;  %v7197_v38 = vld [vmem:[#allocation28_spill] sm:$0xff]  ;;  %v5450_v18 = vld [vmem:[#allocation5 + $0x204] ss:$8 sps:$4 sm:$0xff]  }
 0x4fb   :  { %v1893_v57 = vmul.f32 %v6610_v41, %v1873_v6  ;;  %v1894_v22 = vmul.f32 %v6618_v0, %v1873_v6  ;;  %5310 = vset.pattern.permute.xlu1 %v7195_v43  ;;  %v2629_v11 = vmul.f32 %v6446_v55, %v7197_v38  ;;  %v5448_v6 = vld [vmem:[#allocation5 + $0x200] ss:$8 sps:$4 sm:$0xff]  }
 0x4fd   :  { %v1901_v2 = vadd.f32 %v1893_v57, %v1861_v1  ;;  %v1902_v63 = vadd.f32 %v1894_v22, %v1862_v45  ;;  %3848 = vmatpush1.bf16.msra.mxu1 %v5424_v61  ;;  %v5456_v1 = vld [vmem:[#allocation5 + $0x2f4] ss:$8 sps:$4 sm:$0xff]   ;;  %v6647_v22 = vpop.permute.xlu0 %2309 }
 0x4fe   :  { %5314 = vset.pattern.permute.xlu0 %v5599_v30  ;;  %3849 = vmatprep.subr.bf16.mxu1 %v5432_v47  ;;  %v5445_v47 = vld [vmem:[#allocation5 + $0x340] ss:$8 sps:$4 sm:$0xff]  }
 0x4ff   :  { %v4996_v17 = vpack.c.bf16 %v1901_v2, %v1899_v5  ;;  %v1736_v32 = vpop.permute.xlu1 %1735  ;;  %2668 = vperm.xlu0 %5314, %v2627_v40   ;;  %v4997_v4 = vpack.c.bf16 %v1902_v63, %v1900_v24  ;;  %v1896_v5 = vmul.f32 %v6618_v0, %v1877_v12  ;;  %v5454_v2 = vld [vmem:[#allocation5 + $0x2f0] ss:$8 sps:$4 sm:$0xff]  }
 0x500   :  { %v1755_v25 = vmul.f32 %v6541_v8, %v1736_v32  ;;  %v1756_v53 = vmul.f32 %v6549_v36, %v1736_v32  ;;  %v5439_v8 = vld [vmem:[#allocation5 + $0x350] ss:$8 sps:$4 sm:$0xff]   ;;  %v5459_v32 = vld [vmem:[#allocation5 + $0x324] ss:$8 sps:$4 sm:$0xff]  }
 0x501   :  { %3800 = vmatprep.mubr.bf16.mxu0 %v4997_v4  ;;  %3850 = vmatpush1.bf16.msra.mxu1 %v5430_v62  ;;  %v7198_v63 = vld [vmem:[#allocation27_spill] sm:$0xff] }
 0x502   :  { %3801 = vmatmul.mubr.bf16.vlgmr.msra.gmra.mxu0 %v4996_v17  ;;  %3851 = vmatprep.subr.bf16.mxu1 %v5438_v59  ;;  %v6651_v62 = vmul.f32 %v6452_v28, %v7198_v63  ;;  %v5451_v59 = vld [vmem:[#allocation5 + $0x330] ss:$8 sps:$4 sm:$0xff]   ;;  %v5462_v17 = vld [vmem:[#allocation5 + $0x2e4] ss:$8 sps:$4 sm:$0xff]  }
 0x503   :  { %2672 = vperm.xlu0 %5314, %v2628_v33   ;;  %3915 = vmatpush1.bf16.msra.mxu0 %v5427_v56  ;;  %v1895_v33 = vmul.f32 %v6610_v41, %v1877_v12 }
 0x504   :  { %v1769_v19 = vpop.permute.xlu1 %1768  ;;  %3916 = vmatprep.subr.bf16.mxu0 %v5435_v60  ;;  %v7199_v60 = vld [vmem:[#allocation20_spill] sm:$0xff] }
 0x505   :  { %v1787_v39 = vmul.f32 %v6545_v35, %v1769_v19  ;;  %v1788_v40 = vmul.f32 %v6553_v37, %v1769_v19  ;;  %3852 = vmatpush1.bf16.msra.mxu1 %v5436_v46  ;;  %v6657_v46 = vmul.f32 %v6501_v51, %v7199_v60 }
 0x506   :  { %3853 = vmatprep.subr.bf16.mxu1 %v5444_v52  ;;  %v5460_v52 = vld [vmem:[#allocation5 + $0x2e0] ss:$8 sps:$4 sm:$0xff]  }
 0x507   :  { %v1795_v7 = vadd.f32 %v1787_v39, %v1755_v25  ;;  %v1796_v15 = vadd.f32 %v1788_v40, %v1756_v53  ;;  %5315 = vset.pattern.permute.xlu0 %v7195_v43  ;;  %3917 = vmatpush1.bf16.msra.mxu0 %v5433_v44  ;;  %v5457_v25 = vld [vmem:[#allocation5 + $0x320] ss:$8 sps:$4 sm:$0xff]   ;;  %v2349_v53 = vpop.permute.xlu0 %2348  ;;  %v5465_v39 = vld [vmem:[#allocation5 + $0x314] ss:$8 sps:$4 sm:$0xff]  }
 0x508   :  { %2643 = vperm.xlu0 %5315, %v2629_v11   ;;  %3918 = vmatprep.subr.bf16.mxu0 %v5441_v10  ;;  %v7200_v40 = vld [vmem:[#allocation17_spill] sm:$0xff] }
 0x509   :  { %v1844_v36 = vpop.permute.xlu1 %1843  ;;  %v5003_v35 = vpack.c.bf16 %v6583_v27, %v1796_v15  ;;  %v5002_v37 = vpack.c.bf16 %v6581_v31, %v1795_v7  ;;  %3854 = vmatpush1.bf16.msra.mxu1 %v5442_v54  ;;  %v5453_v31 = vld [vmem:[#allocation5 + $0x334] ss:$8 sps:$4 sm:$0xff]   ;;  %v6664_v54 = vrot.slane %v6531_v26, %v7200_v40  ;;  %v4004_v26 = vmul.f32 %v6657_v46, %v6657_v46 }
 0x50a   :  { %v1863_v24 = vmul.f32 %v6604_v48, %v1844_v36  ;;  %v1864_v61 = vmul.f32 %v6614_v42, %v1844_v36  ;;  %3855 = vmatprep.subr.bf16.mxu1 %v5450_v18  ;;  %v5466_v18 = vld [vmem:[#allocation5 + $0x2d0] ss:$8 sps:$4 sm:$0xff]   ;;  %v7201_v36 = vld [vmem:[#allocation18_spill] sm:$0xff] }
 0x50b   :  { %3737 = vmatprep.mubr.bf16.mxu1 %v5003_v35  ;;  %3919 = vmatpush1.bf16.msra.mxu0 %v5439_v8  ;;  %v2369_v12 = vmul.f32 %v6664_v54, %v2349_v53  ;;  %v1561_v35 = vmul.f32 0.125, %v7201_v36  ;;  %v2453_v63 = vpop.permute.xlu0 %2452  ;;  %v5489_v36 = vld [vmem:[#allocation5 + $0x3d4] ss:$8 sps:$4 sm:$0xff]  }
 0x50c   :  { %v1903_v45 = vadd.f32 %v1895_v33, %v1863_v24  ;;  %v1904_v27 = vadd.f32 %v1896_v5, %v1864_v61  ;;  %3738 = vmatmul.mubr.bf16.gmra.mxu1 %v5002_v37  ;;  %5317 = vset.pattern.permute.xlu0 %v5599_v30  ;;  %v5474_v33 = vld [vmem:[#allocation5 + $0x2c4] ss:$8 sps:$4 sm:$0xff]   ;;  %v4010_v61 = vsel %vm92_vm1, %v4004_v26, 0.0 }
 0x50d   :  { %v1849_v57 = vpop.permute.xlu1 %1848  ;;  %2676 = vperm.xlu0 %5317, %v2629_v11   ;;  %3920 = vmatprep.subr.bf16.mxu0 %v5447_v34  ;;  %v5471_v34 = vld [vmem:[#allocation5 + $0x304] ss:$8 sps:$4 sm:$0xff]  }
 0x50e   :  { %3856 = vmatpush1.bf16.msra.mxu1 %v5448_v6  ;;  %v1865_v4 = vmul.f32 %v6604_v48, %v1849_v57  ;;  %v1866_v44 = vmul.f32 %v6614_v42, %v1849_v57  ;;  %v5468_v48 = vld [vmem:[#allocation5 + $0x2d4] ss:$8 sps:$4 sm:$0xff]   ;;  %v6673_v42 = vrot.slane %v6534_v9, %v7200_v40  ;;  %v5472_v6 = vld [vmem:[#allocation5 + $0x2c0] ss:$8 sps:$4 sm:$0xff]  }
 0x50f   :  { %3921 = vmatpush1.bf16.msra.mxu0 %v5445_v47  ;;  %3857 = vmatprep.subr.bf16.mxu1 %v5456_v1  ;;  %v5469_v47 = vld [vmem:[#allocation5 + $0x300] ss:$8 sps:$4 sm:$0xff]   ;;  %v5480_v1 = vld [vmem:[#allocation5 + $0x2b4] ss:$8 sps:$4 sm:$0xff]  }
 0x510   :  { %3922 = vmatprep.subr.bf16.mxu0 %v5453_v31  ;;  %v5477_v31 = vld [vmem:[#allocation5 + $0x3f4] ss:$8 sps:$4 sm:$0xff]  }
 0x511   :  { %2680 = vperm.xlu0 %5317, %v6651_v62  }
 0x512   :  { %v1881_v56 = vpop.permute.xlu1 %1880  ;;  %3858 = vmatpush2.bf16.msra.mxu1 %v5454_v2  ;;  %v2336_v2 = vmul.f32 %v6673_v42, %v6647_v22 }
 0x513   :  { %v1897_v19 = vmul.f32 %v6610_v41, %v1881_v56  ;;  %v1898_v10 = vmul.f32 %v6618_v0, %v1881_v56  ;;  %3923 = vmatpush1.bf16.msra.mxu0 %v5451_v59  ;;  %3859 = vmatprep.subr.bf16.mxu1 %v5462_v17  ;;  %v6669_v41 = vrot.slane %v6528_v13, %v7200_v40  ;;  %v5463_v13 = vld [vmem:[#allocation5 + $0x310] ss:$8 sps:$4 sm:$0xff]  }
 0x514   :  { %3924 = vmatprep.subr.bf16.mxu0 %v5459_v32  ;;  %v6677_v0 = vrot.slane %v6537_v3, %v7200_v40  ;;  %v4031_v32 = vld [vmem:[%s7145_s14] sm:$0x7] }
 0x515   :  { %v1905_v38 = vadd.f32 %v1897_v19, %v1865_v4  ;;  %v1906_v11 = vadd.f32 %v1898_v10, %v1866_v44  ;;  %5318 = vset.pattern.permute.xlu0 %v7195_v43  ;;  %v2335_v57 = vmul.f32 %v6669_v41, %v6647_v22  ;;  %v5478_v4 = vld [vmem:[#allocation5 + $0x2b0] ss:$8 sps:$4 sm:$0xff]   ;;  %v6700_v44 = vrot.slane %v6589_v20, %v7200_v40 }
 0x516   :  { %3860 = vmatpush2.bf16.msra.mxu1 %v5460_v52  ;;  %v2370_v9 = vmul.f32 %v6677_v0, %v2349_v53  ;;  %v5475_v52 = vld [vmem:[#allocation5 + $0x3f0] ss:$8 sps:$4 sm:$0xff]   ;;  %v6704_v22 = vrot.slane %v6594_v49, %v7200_v40  ;;  %v6708_v19 = vrot.slane %v6597_v21, %v7200_v40  ;;  %v6712_v10 = vrot.slane %v6600_v50, %v7200_v40  ;;  %v5484_v50 = vld [vmem:[#allocation5 + $0x2a0] ss:$8 sps:$4 sm:$0xff]  }
 0x517   :  { %v2315_v7 = vpop.permute.xlu1 %2314  ;;  %v5005_v15 = vpack.c.bf16 %v1906_v11, %v1904_v27  ;;  %v5004_v8 = vpack.c.bf16 %v1905_v38, %v1903_v45  ;;  %3925 = vmatpush1.bf16.msra.mxu0 %v5457_v25  ;;  %3861 = vmatprep.subr.bf16.mxu1 %v5468_v48  ;;  %v6687_v45 = vadd.f32 1.0, %v1561_v35  ;;  %v5483_v25 = vld [vmem:[#allocation5 + $0x3e4] ss:$8 sps:$4 sm:$0xff]   ;;  %v4032_v38 = vmul.f32 0.17677669, %v4031_v32 }
 0x518   :  { %v2337_v37 = vmul.f32 %v6669_v41, %v2315_v7  ;;  %v2338_v3 = vmul.f32 %v6673_v42, %v2315_v7  ;;  %3926 = vmatprep.subr.bf16.mxu0 %v5465_v39  ;;  %v5486_v11 = vld [vmem:[#allocation5 + $0x2a4] ss:$8 sps:$4 sm:$0xff]   ;;  %v2475_v49 = vmul.f32 %v6704_v22, %v2453_v63  ;;  %v2476_v26 = vmul.f32 %v6712_v10, %v2453_v63  ;;  %v5481_v7 = vld [vmem:[#allocation5 + $0x3e0] ss:$8 sps:$4 sm:$0xff]  }
 0x519   :  { %3810 = vmatprep.mubr.bf16.mxu0 %v5005_v15  ;;  %v4036_v53 = vrot.slane %v6687_v45, %v6088_v58  ;;  %v5492_v15 = vld [vmem:[#allocation5 + $0x294] ss:$8 sps:$4 sm:$0xff]   ;;  %v5493_v63 = vld [vmem:[#allocation5 + $0x3c0] ss:$8 sps:$4 sm:$0xff]  }
 0x51a   :  { %v2377_v5 = vadd.f32 %v2369_v12, %v2337_v37  ;;  %v2378_v24 = vadd.f32 %v2370_v9, %v2338_v3  ;;  %3811 = vmatmul.mubr.bf16.gmra.mxu0 %v5004_v8  ;;  %3862 = vmatpush2.bf16.msra.mxu1 %v5466_v18  ;;  %v6720_v12 = vpop.permute.xlu0 %2319  ;;  %v5490_v37 = vld [vmem:[#allocation5 + $0x290] ss:$8 sps:$4 sm:$0xff]   ;;  %v7203_v32 = vld [vmem:[#allocation22_spill] sm:$0xff] }
 0x51b   :  { %4011 = vadd.xlane.f32.xlu1 %v4010_v61  ;;  %3927 = vmatpush1.bf16.msra.mxu0 %v5463_v13  ;;  %v6722_v9 = vmul.f32 %v4036_v53, %v4032_v38  ;;  %v5487_v3 = vld [vmem:[#allocation5 + $0x3d0] ss:$8 sps:$4 sm:$0xff]  }
 0x51c   :  { %v2345_v27 = vpop.permute.xlu1 %2344  ;;  %3928 = vmatprep.subr.bf16.mxu0 %v5471_v34  ;;  %3863 = vmatprep.subr.bf16.mxu1 %v5474_v33  ;;  %v5498_v34 = vld [vmem:[#allocation5 + $0x284] ss:$8 sps:$4 sm:$0xff]  }
 0x51d   :  { %v2367_v59 = vmul.f32 %v6664_v54, %v2345_v27  ;;  %v2368_v17 = vmul.f32 %v6677_v0, %v2345_v27  ;;  %v5495_v33 = vld [vmem:[#allocation5 + $0x3c4] ss:$8 sps:$4 sm:$0xff]   ;;  %v5496_v27 = vld [vmem:[#allocation5 + $0x280] ss:$8 sps:$4 sm:$0xff]  }
 0x51e   :  { %3864 = vmatpush2.bf16.msra.mxu1 %v5472_v6  ;;  %v7202_v6 = vld [vmem:[#allocation23_spill] sm:$0xff] }
 0x51f   :  { %v2375_v56 = vadd.f32 %v2367_v59, %v2335_v57  ;;  %v2376_v60 = vadd.f32 %v2368_v17, %v2336_v2  ;;  %3929 = vmatpush1.bf16.msra.mxu0 %v5469_v47  ;;  %3865 = vmatprep.subr.bf16.mxu1 %v5480_v1  ;;  %v2519_v47 = vmul.f32 %v6431_v23, %v7202_v6  ;;  %v5501_v23 = vld [vmem:[#allocation5 + $0x3b4] ss:$8 sps:$4 sm:$0xff]  }
 0x520   :  { %3930 = vmatprep.subr.bf16.mxu0 %v5477_v31  ;;  %v4038_v1 = vmul.f32 %v6722_v9, %v6722_v9 }
 0x521   :  { %v2418_v39 = vpop.permute.xlu1 %2417  ;;  %v5011_v20 = vpack.c.bf16 %v2378_v24, %v2376_v60  ;;  %v5010_v48 = vpack.c.bf16 %v2377_v5, %v2375_v56  ;;  %v2357_v5 = vpop.permute.xlu0 %2356 }
 0x522   :  { %v2443_v21 = vmul.f32 %v6700_v44, %v2418_v39  ;;  %v2444_v18 = vmul.f32 %v6708_v19, %v2418_v39  ;;  %3866 = vmatpush2.bf16.msra.mxu1 %v5478_v4  ;;  %v2520_v4 = vmul.f32 %v6436_v14, %v7203_v32  ;;  %v2373_v56 = vmul.f32 %v6664_v54, %v2357_v5  ;;  %v5504_v14 = vld [vmem:[#allocation5 + $0x3a4] ss:$8 sps:$4 sm:$0xff]  }
 0x523   :  { %3747 = vmatprep.mubr.bf16.mxu1 %v5011_v20  ;;  %3931 = vmatpush2.bf16.msra.mxu0 %v5475_v52  ;;  %v5499_v20 = vld [vmem:[#allocation5 + $0x3b0] ss:$8 sps:$4 sm:$0xff]  }
 0x524   :  { %v2483_v8 = vadd.f32 %v2475_v49, %v2443_v21  ;;  %v2484_v13 = vadd.f32 %v2476_v26, %v2444_v18  ;;  %3748 = vmatmul.mubr.bf16.gmra.mxu1 %v5010_v48  ;;  %3932 = vmatprep.subr.bf16.mxu0 %v5483_v25  ;;  %v4040_v25 = vsel %vm4039_vm4, %v4038_v1, 0.0  ;;  %v2374_v48 = vmul.f32 %v6677_v0, %v2357_v5  ;;  %v5502_v21 = vld [vmem:[#allocation5 + $0x3a0] ss:$8 sps:$4 sm:$0xff]  }
 0x525   :  { %v2423_v35 = vpop.permute.xlu1 %2422  ;;  %3867 = vmatprep.subr.bf16.mxu1 %v5486_v11  ;;  %v2461_v60 = vpop.permute.xlu0 %2460  ;;  %v7204_v1 = vld [vmem:[#allocation26_spill] sm:$0xff] }
 0x526   :  { %3868 = vmatpush2.bf16.msra.mxu1 %v5484_v50  ;;  %v2445_v24 = vmul.f32 %v6700_v44, %v2423_v35  ;;  %v2446_v31 = vmul.f32 %v6708_v19, %v2423_v35  ;;  %v5507_v50 = vld [vmem:[#allocation5 + $0x394] ss:$8 sps:$4 sm:$0xff]  }
 0x527   :  { %3933 = vmatpush2.bf16.msra.mxu0 %v5481_v7  ;;  %3869 = vmatprep.subr.bf16.mxu1 %v5492_v15  ;;  %v2339_v7 = vmul.f32 %v6669_v41, %v6720_v12  ;;  %v2340_v15 = vmul.f32 %v6673_v42, %v6720_v12 }
 0x528   :  { %3934 = vmatprep.subr.bf16.mxu0 %v5489_v36 }
 0x52a   :  { %v2457_v61 = vpop.permute.xlu1 %2456  ;;  %3870 = vmatpush2.bf16.msra.mxu1 %v5490_v37 }
 0x52b   :  { %v2477_v57 = vmul.f32 %v6704_v22, %v2457_v61  ;;  %v2478_v2 = vmul.f32 %v6712_v10, %v2457_v61  ;;  %3935 = vmatpush2.bf16.msra.mxu0 %v5487_v3  ;;  %3871 = vmatprep.subr.bf16.mxu1 %v5498_v34  ;;  %v5505_v3 = vld [vmem:[#allocation5 + $0x390] ss:$8 sps:$4 sm:$0xff]   ;;  %v5510_v34 = vld [vmem:[#allocation5 + $0x384] ss:$8 sps:$4 sm:$0xff]   ;;  %v5508_v61 = vld [vmem:[#allocation5 + $0x380] ss:$8 sps:$4 sm:$0xff]  }
 0x52c   :  { %2525 = vperm.xlu1 %5310, %v2519_v47   ;;  %3936 = vmatprep.subr.bf16.mxu0 %v5495_v33 }
 0x52d   :  { %v2485_v59 = vadd.f32 %v2477_v57, %v2445_v24  ;;  %v2486_v17 = vadd.f32 %v2478_v2, %v2446_v31  ;;  %v2479_v24 = vmul.f32 %v6704_v22, %v2461_v60  ;;  %v7205_v57 = vld [vmem:[#allocation25_spill] sm:$0xff] }
 0x52e   :  { %3872 = vmatpush2.bf16.msra.mxu1 %v5496_v27  ;;  %v2521_v27 = vmul.f32 %v6446_v55, %v7204_v1  ;;  %v2522_v2 = vmul.f32 %v6452_v28, %v7205_v57  ;;  %v7209_v55 = vld [vmem:[#allocation12_spill] sm:$0xff] }
 0x52f   :  { %v2325_v52 = vpop.permute.xlu1 %2324  ;;  %v5013_v53 = vpack.c.bf16 %v2486_v17, %v2484_v13  ;;  %v5012_v39 = vpack.c.bf16 %v2485_v59, %v2483_v8  ;;  %3937 = vmatpush2.bf16.msra.mxu0 %v5493_v63  ;;  %v6744_v8 = vpop.permute.xlu0 %1941  ;;  %v7206_v63 = vld [vmem:[#allocation9_spill] sm:$0xff] }
 0x530   :  { %v2341_v38 = vmul.f32 %v6669_v41, %v2325_v52  ;;  %v2342_v11 = vmul.f32 %v6673_v42, %v2325_v52  ;;  %2530 = vperm.xlu1 %5310, %v2520_v4   ;;  %4041 = vadd.xlane.f32.xlu0 %v4040_v25  ;;  %v2480_v42 = vmul.f32 %v6712_v10, %v2461_v60  ;;  %v6758_v59 = vmul.f32 0.125, %v7206_v63 }
 0x531   :  { %3820 = vmatprep.mubr.bf16.mxu0 %v5013_v53  ;;  %3938 = vmatprep.subr.bf16.mxu0 %v5501_v23  ;;  %v7207_v23 = vld [vmem:[#allocation10_spill] sm:$0xff]  ;;  %v6767_v60 = vmul.f32 0.125, %v7209_v55 }
 0x532   :  { %v2381_v49 = vadd.f32 %v2373_v56, %v2341_v38  ;;  %v2382_v26 = vadd.f32 %v2374_v48, %v2342_v11  ;;  %3821 = vmatmul.mubr.bf16.gmra.mxu0 %v5012_v39  ;;  %v6761_v32 = vmul.f32 0.125, %v7207_v23  ;;  %v6780_v48 = vrot.slane %v6758_v59, %v6088_v58 }
 0x533   :  { %3939 = vmatpush2.bf16.msra.mxu0 %v5499_v20  ;;  %v6776_v20 = vld [vmem:[%s7147_s16 + $0x18] sm:$0xff] }
 0x534   :  { %v2353_v18 = vpop.permute.xlu1 %2352  ;;  %5311 = vset.pattern.permute.xlu1 %v5599_v30  ;;  %3940 = vmatprep.subr.bf16.mxu0 %v5504_v14 }
 0x535   :  { %v2371_v13 = vmul.f32 %v6664_v54, %v2353_v18  ;;  %v2372_v36 = vmul.f32 %v6677_v0, %v2353_v18  ;;  %2560 = vperm.xlu1 %5311, %v2519_v47   ;;  %v1981_v0 = vpop.permute.xlu0 %1980 }
 0x537   :  { %v2379_v35 = vadd.f32 %v2371_v13, %v2339_v7  ;;  %v2380_v37 = vadd.f32 %v2372_v36, %v2340_v15  ;;  %3941 = vmatpush2.bf16.msra.mxu0 %v5502_v21  ;;  %v6801_v21 = vld [vmem:[%s7147_s16 + $0x8] sm:$0xff]  ;;  %v6811_v36 = vld [vmem:[%s7147_s16] sm:$0xff] }
 0x538   :  { %3942 = vmatprep.subr.bf16.mxu0 %v5507_v50 }
 0x539   :  { %v2428_v33 = vpop.permute.xlu1 %2427  ;;  %2564 = vperm.xlu1 %5311, %v2520_v4   ;;  %v5019_v5 = vpack.c.bf16 %v2382_v26, %v2380_v37  ;;  %v5018_v41 = vpack.c.bf16 %v2381_v49, %v2379_v35  ;;  %v2085_v17 = vpop.permute.xlu0 %2084  ;;  %v7208_v4 = vld [vmem:[#allocation11_spill] sm:$0xff]  ;;  %v7210_v35 = vld [vmem:[#allocation13_spill] sm:$0xff] }
 0x53a   :  { %v2447_v12 = vmul.f32 %v6700_v44, %v2428_v33  ;;  %v2448_v54 = vmul.f32 %v6708_v19, %v2428_v33  ;;  %v6764_v56 = vmul.f32 0.125, %v7208_v4  ;;  %v6814_v37 = vmul.f32 0.125, %v7210_v35  ;;  %v7212_v33 = vld [vmem:[#allocation15_spill] sm:$0xff] }
 0x53b   :  { %3757 = vmatprep.mubr.bf16.mxu1 %v5019_v5  ;;  %3943 = vmatpush2.bf16.msra.mxu0 %v5505_v3  ;;  %v7211_v3 = vld [vmem:[#allocation14_spill] sm:$0xff]  ;;  %v6820_v5 = vmul.f32 0.125, %v7212_v33 }
 0x53c   :  { %v2487_v6 = vadd.f32 %v2479_v24, %v2447_v12  ;;  %v2488_v47 = vadd.f32 %v2480_v42, %v2448_v54  ;;  %3758 = vmatmul.mubr.bf16.gmra.mxu1 %v5018_v41  ;;  %3944 = vmatprep.subr.bf16.mxu0 %v5510_v34  ;;  %v6817_v34 = vmul.f32 0.125, %v7211_v3  ;;  %v7213_v41 = vld [vmem:[#allocation16_spill] sm:$0xff]  ;;  %v1967_v12 = vmul.f32 %v6780_v48, %v6744_v8 }
 0x53d   :  { %v2433_v31 = vpop.permute.xlu1 %2432  ;;  %5312 = vset.pattern.permute.xlu1 %v7195_v43  ;;  %v6823_v24 = vmul.f32 0.125, %v7213_v41 }
 0x53e   :  { %2535 = vperm.xlu1 %5312, %v2521_v27   ;;  %v2449_v25 = vmul.f32 %v6700_v44, %v2433_v31  ;;  %v2450_v53 = vmul.f32 %v6708_v19, %v2433_v31  ;;  %v6784_v44 = vrot.slane %v6761_v32, %v6088_v58  ;;  %v6792_v19 = vrot.slane %v6767_v60, %v6088_v58 }
 0x53f   :  { %3945 = vmatpush2.bf16.msra.mxu0 %v5508_v61  ;;  %v6839_v31 = vrot.slane %v6817_v34, %v6088_v58  ;;  %v6847_v57 = vrot.slane %v6823_v24, %v6088_v58 }
 0x540   :  { %v2001_v18 = vmul.f32 %v6784_v44, %v1981_v0  ;;  %v2002_v50 = vmul.f32 %v6792_v19, %v1981_v0 }
 0x541   :  { %v2108_v4 = vmul.f32 %v6847_v57, %v2085_v17 }
 0x542   :  { %v2465_v52 = vpop.permute.xlu1 %2464  ;;  %2540 = vperm.xlu1 %5312, %v2522_v2  }
 0x543   :  { %v2481_v28 = vmul.f32 %v6704_v22, %v2465_v52  ;;  %v2482_v39 = vmul.f32 %v6712_v10, %v2465_v52  ;;  %v6788_v22 = vrot.slane %v6764_v56, %v6088_v58  ;;  %v6796_v10 = vpop.permute.xlu0 %1951 }
 0x545   :  { %v2489_v38 = vadd.f32 %v2481_v28, %v2449_v25  ;;  %v2490_v11 = vadd.f32 %v2482_v39, %v2450_v53  ;;  %v1968_v54 = vmul.f32 %v6788_v22, %v6744_v8  ;;  %v6843_v8 = vrot.slane %v6820_v5, %v6088_v58 }
 0x546   :  { %5313 = vset.pattern.permute.xlu1 %v5599_v30  ;;  %4123 = vperm.xlu0 %5318, %v6776_v20  }
 0x547   :  { %v1947_v14 = vpop.permute.xlu1 %1946  ;;  %2568 = vperm.xlu1 %5313, %v2521_v27   ;;  %v5021_v49 = vpack.c.bf16 %v2490_v11, %v2488_v47  ;;  %v5020_v26 = vpack.c.bf16 %v2489_v38, %v2487_v6  ;;  %v1989_v0 = vpop.permute.xlu0 %1988  ;;  %v6835_v27 = vrot.slane %v6814_v37, %v6088_v58 }
 0x548   :  { %v1969_v7 = vmul.f32 %v6780_v48, %v1947_v14  ;;  %v1970_v30 = vmul.f32 %v6788_v22, %v1947_v14  ;;  %v2005_v41 = vmul.f32 %v6784_v44, %v1989_v0 }
 0x549   :  { %3830 = vmatprep.mubr.bf16.mxu0 %v5021_v49 }
 0x54a   :  { %v2009_v15 = vadd.f32 %v2001_v18, %v1969_v7  ;;  %v2010_v13 = vadd.f32 %v2002_v50, %v1970_v30  ;;  %3831 = vmatmul.mubr.bf16.gmra.mxu0 %v5020_v26  ;;  %4113 = vperm.xlu0 %5318, %v6801_v21   ;;  %v4338_v26 = vld [vmem:[%s7143_s12 + $0x10] sm:$0xff]  ;;  %v3990_v18 = vld [vmem:[%s7143_s12 + $0x18] sm:$0xff] }
 0x54b   :  { %2572 = vperm.xlu1 %5313, %v2522_v2   ;;  %v2093_v25 = vpop.permute.xlu0 %2092  ;;  %v4342_v3 = vmul.f32 0.17677669, %v4338_v26  ;;  %v3994_v33 = vmul.f32 0.17677669, %v3990_v18 }
 0x54c   :  { %v1977_v42 = vpop.permute.xlu1 %1976 }
 0x54d   :  { %v1999_v61 = vmul.f32 %v6784_v44, %v1977_v42  ;;  %v2000_v6 = vmul.f32 %v6792_v19, %v1977_v42  ;;  %v2006_v42 = vmul.f32 %v6792_v19, %v1989_v0  ;;  %v1971_v0 = vmul.f32 %v6780_v48, %v6796_v10 }
 0x54e   :  { %4108 = vperm.xlu0 %5318, %v6811_v36  }
 0x54f   :  { %v2007_v47 = vadd.f32 %v1999_v61, %v1967_v12  ;;  %v2008_v1 = vadd.f32 %v2000_v6, %v1968_v54  ;;  %5316 = vset.pattern.permute.xlu1 %v7195_v43  ;;  %v2107_v43 = vmul.f32 %v6839_v31, %v2085_v17 }
 0x551   :  { %v4998_v2 = vpack.c.bf16 %v2009_v15, %v2007_v47  ;;  %v2050_v63 = vpop.permute.xlu1 %2049  ;;  %v4999_v23 = vpack.c.bf16 %v2010_v13, %v2008_v1 }
 0x552   :  { %v2075_v55 = vmul.f32 %v6835_v27, %v2050_v63  ;;  %v2076_v52 = vmul.f32 %v6843_v8, %v2050_v63 }
 0x553   :  { %3873 = vmatprep.mubr.bf16.mxu1 %v4999_v23  ;;  %v6877_v23 = vmul.f32 %v6501_v51, %v3994_v33 }
 0x554   :  { %v2115_v53 = vadd.f32 %v2107_v43, %v2075_v55  ;;  %v2116_v28 = vadd.f32 %v2108_v4, %v2076_v52  ;;  %3874 = vmatmul.mubr.bf16.vlgmr.msra.gmra.mxu1 %v4998_v2  ;;  %v7214_v2 = vld [vmem:[#allocation19_spill] sm:$0xff]  ;;  %v1972_v43 = vmul.f32 %v6788_v22, %v6796_v10 }
 0x555   :  { %v2055_v39 = vpop.permute.xlu1 %2054  ;;  %v6853_v38 = vpop.xlane.xlu0 %4008  ;;  %v6874_v63 = vmul.f32 %v7214_v2, %v4342_v3  ;;  %v6890_v51 = vmul.f32 %v7214_v2, %v3994_v33 }
 0x556   :  { %v2077_v11 = vmul.f32 %v6835_v27, %v2055_v39  ;;  %v2078_v14 = vmul.f32 %v6843_v8, %v2055_v39 }
 0x557   :  { %v4354_v39 = vmul.f32 %v6874_v63, %v6874_v63 }
 0x559   :  { %v6865_v50 = vpop.xlane.xlu0 %4014  ;;  %v4362_v18 = vsel %vm92_vm1, %v4354_v39, 0.0 }
 0x55a   :  { %v2089_v58 = vpop.permute.xlu1 %2088 }
 0x55b   :  { %v2109_v49 = vmul.f32 %v6839_v31, %v2089_v58  ;;  %v2110_v17 = vmul.f32 %v6847_v57, %v2089_v58 }
 0x55d   :  { %v2117_v7 = vadd.f32 %v2109_v49, %v2077_v11  ;;  %v2118_v30 = vadd.f32 %v2110_v17, %v2078_v14 }
 0x55f   :  { %v5000_v15 = vpack.c.bf16 %v2117_v7, %v2115_v53  ;;  %v1957_v13 = vpop.permute.xlu1 %1956  ;;  %v5001_v35 = vpack.c.bf16 %v2118_v30, %v2116_v28  ;;  %v4355_v7 = vmul.f32 %v6890_v51, %v6890_v51 }
 0x560   :  { %v1973_v12 = vmul.f32 %v6780_v48, %v1957_v13  ;;  %v1974_v54 = vmul.f32 %v6788_v22, %v1957_v13  ;;  %v2111_v22 = vmul.f32 %v6839_v31, %v2093_v25 }
 0x561   :  { %v6871_v61 = vpop.permute.xlu0 %4067  ;;  %3946 = vmatprep.mubr.bf16.mxu0 %v5001_v35 }
 0x562   :  { %v2013_v6 = vadd.f32 %v2005_v41, %v1973_v12  ;;  %v2014_v47 = vadd.f32 %v2006_v42, %v1974_v54  ;;  %3947 = vmatmul.mubr.bf16.vlgmr.msra.gmra.mxu0 %v5000_v15 }
 0x564   :  { %v1985_v1 = vpop.permute.xlu1 %1984 }
 0x565   :  { %v2003_v4 = vmul.f32 %v6784_v44, %v1985_v1  ;;  %v2004_v55 = vmul.f32 %v6792_v19, %v1985_v1  ;;  %v6885_v52 = vpop.permute.xlu0 %4062  ;;  %v4006_v44 = vmul.f32 %v6877_v23, %v6877_v23  ;;  %v2112_v19 = vmul.f32 %v6847_v57, %v2093_v25 }
 0x566   :  { %v4365_v25 = vsel %vm92_vm1, %v4355_v7, 0.0  ;;  %v7215_v7 = vld [vmem:[#allocation21_spill] sm:$0xff] }
 0x567   :  { %v2011_v53 = vadd.f32 %v2003_v4, %v1971_v0  ;;  %v2012_v28 = vadd.f32 %v2004_v55, %v1972_v43  ;;  %v4016_v13 = vsel %vm92_vm1, %v4006_v44, 0.0  ;;  %v6913_v4 = vrot.slane %v6817_v34, %v7200_v40 }
 0x569   :  { %v2060_v58 = vpop.permute.xlu1 %2059  ;;  %v6892_v11 = vpop.permute.xlu0 %4057  ;;  %v5007_v48 = vpack.c.bf16 %v2014_v47, %v2012_v28  ;;  %v5006_v14 = vpack.c.bf16 %v2013_v6, %v2011_v53 }
 0x56a   :  { %v2079_v10 = vmul.f32 %v6835_v27, %v2060_v58  ;;  %v2080_v49 = vmul.f32 %v6843_v8, %v2060_v58 }
 0x56b   :  { %3883 = vmatprep.mubr.bf16.mxu1 %v5007_v48 }
 0x56c   :  { %v2119_v17 = vadd.f32 %v2111_v22, %v2079_v10  ;;  %v2120_v26 = vadd.f32 %v2112_v19, %v2080_v49  ;;  %3884 = vmatmul.mubr.bf16.gmra.mxu1 %v5006_v14  ;;  %v4394_v10 = vld [vmem:[%s7146_s15] sm:$0xff]  ;;  %v4104_v49 = vld [vmem:[%s7147_s16 + $0x10] sm:$0xff] }
 0x56d   :  { %v2065_v30 = vpop.permute.xlu1 %2064  ;;  %4363 = vadd.xlane.f32.xlu0 %v4362_v18  ;;  %v6903_v15 = vpop.permute.xlu0 %4052 }
 0x56e   :  { %v2081_v33 = vmul.f32 %v6835_v27, %v2065_v30  ;;  %v2082_v41 = vmul.f32 %v6843_v8, %v2065_v30  ;;  %v6917_v27 = vrot.slane %v6823_v24, %v7200_v40  ;;  %v6925_v8 = vrot.slane %v6820_v5, %v7200_v40 }
 0x56f   :  { %4017 = vadd.xlane.f32.xlu1 %v4016_v13  ;;  %v4353_v30 = vmul.f32 %v7215_v7, %v7215_v7 }
 0x571   :  { %4366 = vadd.xlane.f32.xlu0 %v4365_v25  ;;  %v2634_v35 = vpop.permute.xlu0 %2633  ;;  %v4359_v13 = vsel %vm92_vm1, %v4353_v30, 0.0 }
 0x572   :  { %v2097_v3 = vpop.permute.xlu1 %2096  ;;  %v2660_v34 = vmul.f32 %v6925_v8, %v2634_v35 }
 0x573   :  { %v2113_v42 = vmul.f32 %v6839_v31, %v2097_v3  ;;  %v2114_v12 = vmul.f32 %v6847_v57, %v2097_v3  ;;  %v6921_v31 = vrot.slane %v6814_v37, %v7200_v40  ;;  %v2550_v3 = vrot.slane %v6764_v56, %v7200_v40 }
 0x575   :  { %v2121_v54 = vadd.f32 %v2113_v42, %v2081_v33  ;;  %v2122_v6 = vadd.f32 %v2114_v12, %v2082_v41  ;;  %v2639_v47 = vpop.permute.xlu0 %2638  ;;  %v2659_v53 = vmul.f32 %v6921_v31, %v2634_v35  ;;  %v2582_v33 = vrot.slane %v6767_v60, %v7200_v40  ;;  %v4397_v60 = vld [vmem:[%s7146_s15 + $0x18] sm:$0xff] }
 0x576   :  { %v2661_v24 = vmul.f32 %v6921_v31, %v2639_v47  ;;  %v2662_v39 = vmul.f32 %v6925_v8, %v2639_v47 }
 0x577   :  { %v5009_v1 = vpack.c.bf16 %v2122_v6, %v2120_v26  ;;  %v5008_v0 = vpack.c.bf16 %v2121_v54, %v2119_v17 }
 0x579   :  { %3956 = vmatprep.mubr.bf16.mxu0 %v5009_v1 }
 0x57a   :  { %v2669_v43 = vpop.permute.xlu0 %2668  ;;  %3957 = vmatmul.mubr.bf16.gmra.mxu0 %v5008_v0 }
 0x57b   :  { %v2691_v57 = vmul.f32 %v6913_v4, %v2669_v43  ;;  %v2692_v55 = vmul.f32 %v6917_v27, %v2669_v43 }
 0x57d   :  { %v2699_v5 = vadd.f32 %v2691_v57, %v2659_v53  ;;  %v2700_v48 = vadd.f32 %v2692_v55, %v2660_v34 }
 0x57e   :  { %v2673_v28 = vpop.permute.xlu0 %2672 }
 0x57f   :  { %v2693_v37 = vmul.f32 %v6913_v4, %v2673_v28  ;;  %v2694_v58 = vmul.f32 %v6917_v27, %v2673_v28 }
 0x580   :  { %2648 = vperm.xlu1 %5316, %v6651_v62   ;;  %v4336_v62 = vld [vmem:[%s7143_s12] sm:$0xff] }
 0x581   :  { %v2701_v14 = vadd.f32 %v2693_v37, %v2661_v24  ;;  %v2702_v44 = vadd.f32 %v2694_v58, %v2662_v39  ;;  %v4340_v17 = vmul.f32 0.17677669, %v4336_v62  ;;  %v4396_v39 = vld [vmem:[%s7146_s15 + $0x10] sm:$0xff]  ;;  %v4395_v58 = vld [vmem:[%s7146_s15 + $0x8] sm:$0xff] }
 0x583   :  { %v5017_v22 = vpack.c.bf16 %v2702_v44, %v2700_v48  ;;  %v5016_v19 = vpack.c.bf16 %v2701_v14, %v2699_v5  ;;  %v6949_v26 = vmul.f32 %v7214_v2, %v4340_v17  ;;  %v2578_v2 = vrot.slane %v6761_v32, %v7200_v40 }
 0x585   :  { %3966 = vmatprep.mubr.bf16.mxu0 %v5017_v22 }
 0x586   :  { %3967 = vmatmul.mubr.bf16.gmra.mxu0 %v5016_v19 }
 0x587   :  { %4400 = vperm.xlu0 %5318, %v4394_v10  }
 0x58b   :  { %4471 = vperm.xlu0 %5318, %v6776_v20   ;;  %v4352_v20 = vmul.f32 %v6949_v26, %v6949_v26 }
 0x58d   :  { %v4356_v18 = vsel %vm92_vm1, %v4352_v20, 0.0 }
 0x58f   :  { %4466 = vperm.xlu0 %5318, %v4104_v49  }
 0x593   :  { %4461 = vperm.xlu0 %5318, %v6801_v21  }
 0x597   :  { %4456 = vperm.xlu0 %5318, %v6811_v36   ;;  %v2546_v36 = vrot.slane %v6758_v59, %v7200_v40 }
 0x5a4   :  { %4357 = vadd.xlane.f32.xlu1 %v4356_v18  ;;  %v6956_v21 = vpop.xlane.xlu1 %4011 }
 0x5a8   :  { %4360 = vadd.xlane.f32.xlu1 %v4359_v13  ;;  %v2526_v25 = vpop.permute.xlu1 %2525 }
 0x5a9   :  { %v2551_v42 = vmul.f32 %v2546_v36, %v2526_v25  ;;  %v2552_v12 = vmul.f32 %v2550_v3, %v2526_v25 }
 0x5ac   :  { %v2531_v35 = vpop.permute.xlu1 %2530 }
 0x5ad   :  { %v2553_v43 = vmul.f32 %v2546_v36, %v2531_v35  ;;  %v2554_v57 = vmul.f32 %v2550_v3, %v2531_v35 }
 0x5b0   :  { %v2561_v41 = vpop.permute.xlu1 %2560  ;;  %v6976_v35 = vpop.f32.mrf.mxu1 }
 0x5b1   :  { %v2583_v54 = vmul.f32 %v2578_v2, %v2561_v41  ;;  %v2584_v6 = vmul.f32 %v2582_v33, %v2561_v41  ;;  %v7216_v41 = vmov 0.0  }
 0x5b3   :  { %v2591_v47 = vadd.f32 %v2583_v54, %v2551_v42  ;;  %v2592_v1 = vadd.f32 %v2584_v6, %v2552_v12  ;;  %v6979_v42 = vpop.f32.mrf.mxu1  ;;  %v4385_v6 = vrot.slane %v6687_v45, %v7200_v40 }
 0x5b4   :  { %v2565_v0 = vpop.permute.xlu1 %2564 }
 0x5b5   :  { %v2585_v59 = vmul.f32 %v2578_v2, %v2565_v0  ;;  %v2586_v55 = vmul.f32 %v2582_v33, %v2565_v0  ;;  %v6983_v54 = vpop.f32.mrf.mxu1 }
 0x5b7   :  { %v2593_v53 = vadd.f32 %v2585_v59, %v2553_v43  ;;  %v2594_v32 = vadd.f32 %v2586_v55, %v2554_v57 }
 0x5b9   :  { %4118 = vperm.xlu1 %5316, %v4104_v49   ;;  %v2536_v34 = vpop.permute.xlu1 %2535  ;;  %v5015_v56 = vpack.c.bf16 %v2594_v32, %v2592_v1  ;;  %v5014_v28 = vpack.c.bf16 %v2593_v53, %v2591_v47 }
 0x5ba   :  { %v2555_v5 = vmul.f32 %v2546_v36, %v2536_v34  ;;  %v2556_v48 = vmul.f32 %v2550_v3, %v2536_v34 }
 0x5bb   :  { %3893 = vmatprep.mubr.bf16.mxu1 %v5015_v56 }
 0x5bc   :  { %3894 = vmatmul.mubr.bf16.gmra.mxu1 %v5014_v28  ;;  %v2644_v28 = vpop.permute.xlu0 %2643 }
 0x5bd   :  { %4415 = vperm.xlu1 %5316, %v4397_v60   ;;  %v2541_v24 = vpop.permute.xlu1 %2540 }
 0x5be   :  { %v2557_v49 = vmul.f32 %v2546_v36, %v2541_v24  ;;  %v2558_v62 = vmul.f32 %v2550_v3, %v2541_v24  ;;  %v4380_v36 = vld [vmem:[%s7145_s14] sm:$0x7]  ;;  %v6990_v3 = vpop.f32.mrf.mxu1 }
 0x5c1   :  { %4410 = vperm.xlu1 %5316, %v4396_v39  }
 0x5c2   :  { %v2569_v37 = vpop.permute.xlu1 %2568  ;;  %v6981_v12 = vpop.f32.mrf.mxu0 }
 0x5c3   :  { %v2587_v14 = vmul.f32 %v2578_v2, %v2569_v37  ;;  %v2588_v44 = vmul.f32 %v2582_v33, %v2569_v37 }
 0x5c5   :  { %v2595_v22 = vadd.f32 %v2587_v14, %v2555_v5  ;;  %v2596_v19 = vadd.f32 %v2588_v44, %v2556_v48  ;;  %4405 = vperm.xlu1 %5316, %v4395_v58   ;;  %v2677_v5 = vpop.permute.xlu0 %2676 }
 0x5c6   :  { %v2573_v10 = vpop.permute.xlu1 %2572 }
 0x5c7   :  { %v2589_v17 = vmul.f32 %v2578_v2, %v2573_v10  ;;  %v2590_v20 = vmul.f32 %v2582_v33, %v2573_v10  ;;  %v6988_v2 = vpop.f32.mrf.mxu0  ;;  %v4381_v33 = vmul.f32 0.17677669, %v4380_v36  ;;  %v4251_v10 = vld [vmem:[%s7148_s17] sm:$0x7] }
 0x5c9   :  { %v2597_v18 = vadd.f32 %v2589_v17, %v2557_v49  ;;  %v2598_v30 = vadd.f32 %v2590_v20, %v2558_v62  ;;  %v6996_v1 = vpop.f32.mrf.mxu0  ;;  %v6998_v0 = vmul.f32 %v4385_v6, %v4381_v33  ;;  %v2681_v20 = vpop.permute.xlu0 %2680 }
 0x5ca   :  { %v2697_v33 = vmul.f32 %v6913_v4, %v2681_v20  ;;  %v2698_v6 = vmul.f32 %v6917_v27, %v2681_v20 }
 0x5cb   :  { %v5023_v13 = vpack.c.bf16 %v2598_v30, %v2596_v19  ;;  %v5022_v25 = vpack.c.bf16 %v2597_v18, %v2595_v22  ;;  %7217 = vst [vmem:[#allocation24_spill] sm:$0xff] %v6998_v0  ;;  %v7002_v57 = vpop.f32.mrf.mxu0  ;;  %v4387_v55 = vmul.f32 %v6998_v0, %v6998_v0  ;;  %v2695_v18 = vmul.f32 %v6913_v4, %v2677_v5 }
 0x5cc   :  { %v6994_v47 = vpop.f32.mrf.mxu1  ;;  %v2696_v30 = vmul.f32 %v6917_v27, %v2677_v5 }
 0x5cd   :  { %3903 = vmatprep.mubr.bf16.mxu1 %v5023_v13  ;;  %v4388_v40 = vsel %vm4039_vm4, %v4387_v55, 0.0  ;;  %v2663_v13 = vmul.f32 %v6921_v31, %v2644_v28 }
 0x5ce   :  { %3904 = vmatmul.mubr.bf16.gmra.mxu1 %v5022_v25  ;;  %v7000_v43 = vpop.f32.mrf.mxu1  ;;  %v2664_v25 = vmul.f32 %v6925_v8, %v2644_v28 }
 0x5cf   :  { %4202 = vmatprep.mubr.f32.mxu1 %v7216_v41 }
 0x5d0   :  { %v7008_v53 = vpop.f32.mrf.mxu1 }
 0x5d2   :  { %v7013_v45 = vpop.f32.mrf.mxu1 }
 0x5da   :  { %v7004_v59 = vpop.f32.mrf.mxu0 }
 0x5dc   :  { %v7010_v32 = vpop.f32.mrf.mxu0 }
 0x5de   :  { %v7015_v56 = vpop.f32.mrf.mxu0 }
 0x5e0   :  { %v7017_v24 = vpop.f32.mrf.mxu0 }
 0x5e4   :  { %v3749_v34 = vpop.f32.mrf.mxu1 }
 0x5e6   :  { %v3751_v60 = vpop.f32.mrf.mxu1 }
 0x5e8   :  { %v3753_v37 = vpop.f32.mrf.mxu1 }
 0x5e9   :  { %4389 = vadd.xlane.f32.xlu1 %v4388_v40 }
 0x5ea   :  { %v3755_v22 = vpop.f32.mrf.mxu1 }
 0x5f2   :  { %v3822_v39 = vpop.f32.mrf.mxu0 }
 0x5f3   :  { %v7019_v58 = vadd.f32 %v3822_v39, %v3749_v34  ;;  %v4599_v34 = vld [vmem:[%s7148_s17] sm:$0x7]  ;;  %v2704_v39 = vadd.f32 %v2696_v30, %v2664_v25 }
 0x5f4   :  { %v3824_v48 = vpop.f32.mrf.mxu0  ;;  %4602 = vperm.xlu0 %5318, %v4599_v34  }
 0x5f5   :  { %v7021_v14 = vadd.f32 %v3824_v48, %v3751_v60  ;;  %v2703_v60 = vadd.f32 %v2695_v18, %v2663_v13 }
 0x5f6   :  { %v3826_v44 = vpop.f32.mrf.mxu0 }
 0x5f7   :  { %v7023_v19 = vadd.f32 %v3826_v44, %v3753_v37 }
 0x5f8   :  { %v3828_v49 = vpop.f32.mrf.mxu0  ;;  %v7028_v62 = vpop.xlane.xlu1 %4017 }
 0x5f9   :  { %v7030_v17 = vadd.f32 %v3828_v49, %v3755_v22 }
 0x5fa   :  { %4254 = vperm.xlu1 %5316, %v4251_v10  }
 0x5fc   :  { %v2649_v36 = vpop.permute.xlu1 %2648  ;;  %v3759_v44 = vpop.f32.mrf.mxu1 }
 0x5fd   :  { %v2665_v55 = vmul.f32 %v6921_v31, %v2649_v36  ;;  %v2666_v40 = vmul.f32 %v6925_v8, %v2649_v36 }
 0x5fe   :  { %v3761_v4 = vpop.f32.mrf.mxu1 }
 0x5ff   :  { %v2705_v37 = vadd.f32 %v2697_v33, %v2665_v55  ;;  %v2706_v5 = vadd.f32 %v2698_v6, %v2666_v40 }
 0x600   :  { %v3763_v8 = vpop.f32.mrf.mxu1 }
 0x601   :  { %v5025_v48 = vpack.c.bf16 %v2706_v5, %v2704_v39  ;;  %v5024_v28 = vpack.c.bf16 %v2705_v37, %v2703_v60  ;;  %v3813_v37 = vadd.f32 %v7004_v59, %v6994_v47  ;;  %v3817_v47 = vadd.f32 %v7015_v56, %v7008_v53 }
 0x602   :  { %v3765_v18 = vpop.f32.mrf.mxu1 }
 0x603   :  { %3976 = vmatprep.mubr.bf16.mxu0 %v5025_v48 }
 0x604   :  { %3977 = vmatmul.mubr.bf16.gmra.mxu0 %v5024_v28  ;;  %v3809_v28 = vadd.f32 %v7002_v57, %v6990_v3  ;;  %v3803_v3 = vadd.f32 %v6981_v12, %v6976_v35 }
 0x605   :  { %4324 = vmatprep.mubr.f32.mxu0 %v7216_v41 }
 0x60a   :  { %v3832_v27 = vpop.f32.mrf.mxu0 }
 0x60b   :  { %v7044_v31 = vadd.f32 %v3832_v27, %v3759_v44  ;;  %v3815_v44 = vadd.f32 %v7010_v32, %v7000_v43  ;;  %v3807_v27 = vadd.f32 %v6996_v1, %v6983_v54  ;;  %v3819_v43 = vadd.f32 %v7017_v24, %v7013_v45 }
 0x60c   :  { %v3834_v22 = vpop.f32.mrf.mxu0  ;;  %v4020_v24 = vadd.f32 1e-08, %v6956_v21 }
 0x60d   :  { %v7046_v10 = vadd.f32 %v3834_v22, %v3761_v4  ;;  %v4019_v4 = vadd.f32 1e-08, %v6853_v38 }
 0x60e   :  { %v3836_v49 = vpop.f32.mrf.mxu0 }
 0x60f   :  { %v7048_v20 = vadd.f32 %v3836_v49, %v3763_v8  ;;  %v3805_v49 = vadd.f32 %v6988_v2, %v6979_v42  ;;  %5527 = vrsqrt.f32 %v4019_v4 }
 0x610   :  { %v3838_v30 = vpop.f32.mrf.mxu0  ;;  %5529 = vrsqrt.f32 %v4020_v24 }
 0x611   :  { %v7050_v13 = vadd.f32 %v3838_v30, %v3765_v18 }
 0x614   :  { %v3875_v25 = vpop.f32.mrf.mxu1 }
 0x615   :  { %v3876_v42 = vadd.f32 %v3875_v25, %v3803_v3 }
 0x616   :  { %v3877_v36 = vpop.f32.mrf.mxu1 }
 0x617   :  { %v3878_v1 = vadd.f32 %v3877_v36, %v3805_v49 }
 0x618   :  { %v3879_v33 = vpop.f32.mrf.mxu1 }
 0x619   :  { %v3880_v38 = vadd.f32 %v3879_v33, %v3807_v27 }
 0x61a   :  { %v3881_v55 = vpop.f32.mrf.mxu1 }
 0x61b   :  { %v3882_v59 = vadd.f32 %v3881_v55, %v3809_v28 }
 0x622   :  { %v3948_v6 = vpop.f32.mrf.mxu0 }
 0x623   :  { %v3949_v35 = vadd.f32 %v3948_v6, %v3876_v42 }
 0x624   :  { %v3950_v40 = vpop.f32.mrf.mxu0 }
 0x625   :  { %v3951_v53 = vadd.f32 %v3950_v40, %v3878_v1  ;;  %v4070_v6 = vadd.f32 %v6903_v15, %v3949_v35 }
 0x626   :  { %v3952_v60 = vpop.f32.mrf.mxu0 }
 0x627   :  { %v3953_v2 = vadd.f32 %v3952_v60, %v3880_v38  ;;  %v4071_v40 = vadd.f32 %v6903_v15, %v3951_v53 }
 0x628   :  { %v3954_v5 = vpop.f32.mrf.mxu0 }
 0x629   :  { %v3955_v30 = vadd.f32 %v3954_v5, %v3882_v59  ;;  %v4072_v25 = vadd.f32 %v6892_v11, %v3953_v2  ;;  %v4022_v59 = vadd.f32 1e-08, %v7028_v62 }
 0x62b   :  { %v4073_v36 = vadd.f32 %v6892_v11, %v3955_v30  ;;  %v4080_v4 = vmul.f32 0.2, %v4072_v25  ;;  %v4078_v11 = vmul.f32 0.2, %v4070_v6 }
 0x62c   :  { %v3885_v34 = vpop.f32.mrf.mxu1 }
 0x62d   :  { %v3886_v8 = vadd.f32 %v3885_v34, %v3813_v37  ;;  %v4081_v21 = vmul.f32 0.2, %v4073_v36  ;;  %v4088_v3 = vmax.f32 %v4072_v25, %v4080_v4  ;;  %v4086_v38 = vmax.f32 %v4070_v6, %v4078_v11 }
 0x62e   :  { %v3887_v39 = vpop.f32.mrf.mxu1 }
 0x62f   :  { %v3888_v18 = vadd.f32 %v3887_v39, %v3815_v44  ;;  %v4096_v1 = vmul.f32 1.4142135, %v4088_v3 }
 0x630   :  { %v3889_v48 = vpop.f32.mrf.mxu1 }
 0x631   :  { %v3890_v34 = vadd.f32 %v3889_v48, %v3817_v47 }
 0x632   :  { %v3891_v57 = vpop.f32.mrf.mxu1 }
 0x633   :  { %v3892_v56 = vadd.f32 %v3891_v57, %v3819_v43 }
 0x63a   :  { %v3958_v22 = vpop.f32.mrf.mxu0 }
 0x63b   :  { %v3959_v32 = vadd.f32 %v3958_v22, %v3886_v8  ;;  %v4079_v8 = vmul.f32 0.2, %v4071_v40 }
 0x63c   :  { %v3960_v54 = vpop.f32.mrf.mxu0 }
 0x63d   :  { %v3961_v37 = vadd.f32 %v3960_v54, %v3888_v18  ;;  %v4074_v12 = vadd.f32 %v6885_v52, %v3959_v32  ;;  %v5528_v32 = vpop.eup %5527 }
 0x63e   :  { %v3962_v0 = vpop.f32.mrf.mxu0  ;;  %v4027_v62 = vmul.f32 %v5528_v32, %v6509_v29 }
 0x63f   :  { %v4075_v55 = vadd.f32 %v6885_v52, %v3961_v37  ;;  %v3963_v39 = vadd.f32 %v3962_v0, %v3890_v34  ;;  %v4082_v28 = vmul.f32 0.2, %v4074_v12  ;;  %v4021_v52 = vadd.f32 1e-08, %v6865_v50  ;;  %v5530_v37 = vpop.eup %5529 }
 0x640   :  { %v3964_v45 = vpop.f32.mrf.mxu0  ;;  %v4087_v50 = vmax.f32 %v4071_v40, %v4079_v8  ;;  %v4094_v34 = vmul.f32 1.4142135, %v4086_v38  ;;  %v4028_v42 = vmul.f32 %v5530_v37, %v6657_v46 }
 0x641   :  { %v4076_v33 = vadd.f32 %v6871_v61, %v3963_v39  ;;  %v3965_v5 = vadd.f32 %v3964_v45, %v3892_v56  ;;  %v4083_v60 = vmul.f32 0.2, %v4075_v55  ;;  %v4090_v47 = vmax.f32 %v4074_v12, %v4082_v28  ;;  %v4042_v45 = vpop.xlane.xlu0 %4041 }
 0x642   :  { %5531 = vrsqrt.f32 %v4021_v52  ;;  %v4095_v30 = vmul.f32 1.4142135, %v4087_v50  ;;  %v4043_v8 = vadd.f32 1e-08, %v4042_v45 }
 0x643   :  { %v4084_v48 = vmul.f32 0.2, %v4076_v33  ;;  %v4077_v0 = vadd.f32 %v6871_v61, %v3965_v5  ;;  %v4091_v49 = vmax.f32 %v4075_v55, %v4083_v60  ;;  %v4089_v61 = vmax.f32 %v4073_v36, %v4081_v21  ;;  %v4358_v5 = vpop.xlane.xlu1 %4357 }
 0x644   :  { %v4098_v57 = vmul.f32 1.4142135, %v4090_v47  ;;  %5533 = vrsqrt.f32 %v4022_v59 }
 0x645   :  { %v4085_v44 = vmul.f32 0.2, %v4077_v0  ;;  %v4092_v27 = vmax.f32 %v4076_v33, %v4084_v48  ;;  %v4099_v43 = vmul.f32 1.4142135, %v4091_v49  ;;  %v4097_v54 = vmul.f32 1.4142135, %v4089_v61  ;;  %v4124_v36 = vpop.permute.xlu0 %4123 }
 0x646   :  { %v7092_v35 = vpop.f32.mrf.mxu0  ;;  %5535 = vrsqrt.f32 %v4043_v8 }
 0x647   :  { %v4093_v22 = vmax.f32 %v4077_v0, %v4085_v44  ;;  %v4100_v15 = vmul.f32 1.4142135, %v4092_v27  ;;  %v4361_v48 = vpop.xlane.xlu1 %4360 }
 0x648   :  { %v7096_v3 = vadd.f32 1e-08, %v4361_v48 }
 0x649   :  { %v4101_v18 = vmul.f32 1.4142135, %v4093_v22  ;;  %v4114_v60 = vpop.permute.xlu0 %4113  ;;  %v4368_v22 = vadd.f32 1e-08, %v4358_v5 }
 0x64b   :  { %4162 = vmatprep.subr.mxu1 %v4101_v18  ;;  %v4119_v21 = vpop.permute.xlu1 %4118  ;;  %5537 = vrsqrt.f32 %v4368_v22 }
 0x64c   :  { %4163 = vmatpush1.msra.mxu1 %v4100_v15  ;;  %5539 = vrsqrt.f32 %v7096_v3 }
 0x64d   :  { %4164 = vmatprep.subr.mxu1 %v4099_v43  ;;  %v4109_v52 = vpop.permute.xlu0 %4108 }
 0x64e   :  { %4165 = vmatpush1.msra.mxu1 %v4098_v57 }
 0x64f   :  { %4166 = vmatprep.subr.mxu1 %v4097_v54  ;;  %v5532_v2 = vpop.eup %5531  ;;  %v4416_v59 = vpop.permute.xlu1 %4415 }
 0x650   :  { %4167 = vmatpush1.msra.mxu1 %v4096_v1  ;;  %v4029_v53 = vmul.f32 %v5532_v2, %v6515_v16  ;;  %v3970_v16 = vpop.f32.mrf.mxu0 }
 0x651   :  { %4168 = vmatprep.subr.mxu1 %v4095_v30  ;;  %v5534_v56 = vpop.eup %5533  ;;  %v4364_v47 = vpop.xlane.xlu0 %4363 }
 0x652   :  { %4169 = vmatpush1.msra.mxu1 %v4094_v34  ;;  %v4030_v29 = vmul.f32 %v5534_v56, %v6877_v23  ;;  %v3972_v25 = vpop.f32.mrf.mxu0  ;;  %v7094_v61 = vadd.f32 1e-08, %v4364_v47 }
 0x653   :  { %4951 = vmatmul.mubr.msk.f32.vlgmr.msra.gmra.mxu1 %vm92_vm1, %v4027_v62  ;;  %v4411_v56 = vpop.permute.xlu1 %4410 }
 0x654   :  { %4208 = vmatprep.mubr.f32.mxu1 %v7216_v41  ;;  %v3974_v23 = vpop.f32.mrf.mxu0  ;;  %5541 = vrsqrt.f32 %v7094_v61 }
 0x657   :  { %4952 = vmatmul.mubr.msk.f32.gmra.mxu1 %vm92_vm1, %v4028_v42  ;;  %v4406_v22 = vpop.permute.xlu1 %4405 }
 0x658   :  { %4214 = vmatprep.mubr.f32.mxu1 %v7216_v41 }
 0x65b   :  { %4953 = vmatmul.mubr.msk.f32.gmra.mxu1 %vm92_vm1, %v4029_v53 }
 0x65c   :  { %4220 = vmatprep.mubr.f32.mxu1 %v7216_v41 }
 0x65f   :  { %4954 = vmatmul.mubr.msk.f32.gmra.mxu1 %vm92_vm1, %v4030_v29 }
 0x660   :  { %4672 = vmatprep.mubr.f32.mxu1 %v7216_v41 }
 0x67c   :  { %v3895_v55 = vpop.f32.mrf.mxu1 }
 0x67d   :  { %v3896_v50 = vadd.f32 %v3895_v55, %v7019_v58 }
 0x67e   :  { %v3897_v46 = vpop.f32.mrf.mxu1 }
 0x67f   :  { %v3898_v38 = vadd.f32 %v3897_v46, %v7021_v14 }
 0x680   :  { %v3899_v39 = vpop.f32.mrf.mxu1 }
 0x681   :  { %v3900_v54 = vadd.f32 %v3899_v39, %v7023_v19  ;;  %v3971_v45 = vadd.f32 %v3970_v16, %v3898_v38 }
 0x682   :  { %v3901_v12 = vpop.f32.mrf.mxu1 }
 0x683   :  { %v3902_v37 = vadd.f32 %v3901_v12, %v7030_v17 }
 0x685   :  { %v3975_v17 = vadd.f32 %v3974_v23, %v3902_v37 }
 0x68e   :  { %v3905_v24 = vpop.f32.mrf.mxu1 }
 0x68f   :  { %v3906_v58 = vadd.f32 %v3905_v24, %v7044_v31 }
 0x690   :  { %v3907_v33 = vpop.f32.mrf.mxu1 }
 0x691   :  { %v3908_v1 = vadd.f32 %v3907_v33, %v7046_v10 }
 0x692   :  { %v3909_v40 = vpop.f32.mrf.mxu1 }
 0x693   :  { %v3910_v30 = vadd.f32 %v3909_v40, %v7048_v20  ;;  %v4367_v40 = vpop.xlane.xlu0 %4366 }
 0x694   :  { %v3911_v0 = vpop.f32.mrf.mxu1  ;;  %v4371_v3 = vadd.f32 1e-08, %v4367_v40 }
 0x695   :  { %v3912_v57 = vadd.f32 %v3911_v0, %v7050_v13 }
 0x696   :  { %5543 = vrsqrt.f32 %v4371_v3 }
 0x6c4   :  { %v3978_v6 = vpop.f32.mrf.mxu0 }
 0x6c5   :  { %v3979_v20 = vadd.f32 %v3978_v6, %v3906_v58 }
 0x6c6   :  { %v3980_v44 = vpop.f32.mrf.mxu0 }
 0x6c7   :  { %v3981_v14 = vadd.f32 %v3980_v44, %v3908_v1  ;;  %v4422_v16 = vadd.f32 %v4411_v56, %v3979_v20 }
 0x6c8   :  { %v3982_v49 = vpop.f32.mrf.mxu0 }
 0x6c9   :  { %v3983_v29 = vadd.f32 %v3982_v49, %v3910_v30  ;;  %v4423_v44 = vadd.f32 %v4411_v56, %v3981_v14  ;;  %v4421_v49 = vadd.f32 %v4406_v22, %v3975_v17 }
 0x6ca   :  { %v3984_v15 = vpop.f32.mrf.mxu0 }
 0x6cb   :  { %v3985_v42 = vadd.f32 %v3984_v15, %v3912_v57  ;;  %v4424_v8 = vadd.f32 %v4416_v59, %v3983_v29 }
 0x6cd   :  { %v4425_v12 = vadd.f32 %v4416_v59, %v3985_v42  ;;  %v4432_v59 = vmul.f32 0.2, %v4424_v8  ;;  %v4429_v42 = vmul.f32 0.2, %v4421_v49 }
 0x6cf   :  { %v4433_v23 = vmul.f32 0.2, %v4425_v12 }
 0x6d1   :  { %v4441_v37 = vmax.f32 %v4425_v12, %v4433_v23 }
 0x713   :  { %v4204_v28 = vpop.f32.mrf.mxu1 }
 0x714   :  { %v4205_v33 = vadd.f32 %v4204_v28, %v4109_v52 }
 0x715   :  { %v4206_v4 = vpop.f32.mrf.mxu1 }
 0x716   :  { %v4207_v46 = vadd.f32 %v4206_v4, %v4109_v52  ;;  %v4227_v6 = vmul.f32 0.2, %v4205_v33  ;;  %v4401_v52 = vpop.permute.xlu0 %4400 }
 0x717   :  { %v4210_v27 = vpop.f32.mrf.mxu1  ;;  %v4419_v57 = vadd.f32 %v4401_v52, %v3971_v45 }
 0x718   :  { %v4211_v13 = vadd.f32 %v4210_v27, %v4114_v60  ;;  %v4235_v30 = vmax.f32 %v4205_v33, %v4227_v6 }
 0x719   :  { %v4212_v11 = vpop.f32.mrf.mxu1  ;;  %v4427_v58 = vmul.f32 0.2, %v4419_v57 }
 0x71a   :  { %v4213_v2 = vadd.f32 %v4212_v11, %v4114_v60  ;;  %v4229_v31 = vmul.f32 0.2, %v4211_v13  ;;  %v4228_v60 = vmul.f32 0.2, %v4207_v46 }
 0x71b   :  { %v4216_v18 = vpop.f32.mrf.mxu1  ;;  %v4435_v33 = vmax.f32 %v4419_v57, %v4427_v58 }
 0x71c   :  { %v4217_v34 = vadd.f32 %v4216_v18, %v4119_v21  ;;  %v4230_v48 = vmul.f32 0.2, %v4213_v2  ;;  %v5536_v18 = vpop.eup %5535  ;;  %v4237_v15 = vmax.f32 %v4211_v13, %v4229_v31 }
 0x71d   :  { %v4218_v43 = vpop.f32.mrf.mxu1  ;;  %v5538_v38 = vpop.eup %5537  ;;  %v4045_v13 = vmul.f32 %v5536_v18, %v6722_v9  ;;  %v4443_v12 = vmul.f32 1.4142135, %v4435_v33 }
 0x71e   :  { %v4219_v32 = vadd.f32 %v4218_v43, %v4119_v21  ;;  %v4231_v5 = vmul.f32 0.2, %v4217_v34  ;;  %v3973_v21 = vadd.f32 %v3972_v25, %v3900_v54  ;;  %v4238_v11 = vmax.f32 %v4213_v2, %v4230_v48 }
 0x71f   :  { %v4222_v62 = vpop.f32.mrf.mxu1  ;;  %v4236_v54 = vmax.f32 %v4207_v46, %v4228_v60  ;;  %v4245_v56 = vmul.f32 1.4142135, %v4237_v15  ;;  %v4390_v60 = vpop.xlane.xlu1 %4389 }
 0x720   :  { %v4223_v53 = vadd.f32 %v4222_v62, %v4124_v36  ;;  %v4232_v19 = vmul.f32 0.2, %v4219_v32  ;;  %v4239_v28 = vmax.f32 %v4217_v34, %v4231_v5  ;;  %v4420_v25 = vadd.f32 %v4406_v22, %v3973_v21  ;;  %v5540_v21 = vpop.eup %5539 }
 0x721   :  { %v4224_v55 = vpop.f32.mrf.mxu1  ;;  %v4246_v62 = vmul.f32 1.4142135, %v4238_v11  ;;  %v4244_v14 = vmul.f32 1.4142135, %v4236_v54  ;;  %v5542_v31 = vpop.eup %5541  ;;  %v4391_v11 = vadd.f32 1e-08, %v4390_v60 }
 0x722   :  { %v4233_v39 = vmul.f32 0.2, %v4223_v53  ;;  %v4225_v10 = vadd.f32 %v4224_v55, %v4124_v36  ;;  %v4240_v27 = vmax.f32 %v4219_v32, %v4232_v19  ;;  %v3969_v36 = vadd.f32 %v7092_v35, %v3896_v50 }
 0x723   :  { %v4431_v32 = vmul.f32 0.2, %v4423_v44  ;;  %v4430_v50 = vmul.f32 0.2, %v4422_v16  ;;  %v4247_v34 = vmul.f32 1.4142135, %v4239_v28  ;;  %5545 = vrsqrt.f32 %v4391_v11 }
 0x724   :  { %v4234_v0 = vmul.f32 0.2, %v4225_v10  ;;  %v4241_v24 = vmax.f32 %v4223_v53, %v4233_v39  ;;  %v4248_v1 = vmul.f32 1.4142135, %v4240_v27  ;;  %v4418_v35 = vadd.f32 %v4401_v52, %v3969_v36 }
 0x725   :  { %v4428_v2 = vmul.f32 0.2, %v4420_v25  ;;  %v4440_v53 = vmax.f32 %v4424_v8, %v4432_v59  ;;  %v4439_v29 = vmax.f32 %v4423_v44, %v4431_v32  ;;  %v4438_v46 = vmax.f32 %v4422_v16, %v4430_v50  ;;  %v5544_v44 = vpop.eup %5543  ;;  %v4472_v16 = vpop.permute.xlu0 %4471 }
 0x726   :  { %v4242_v4 = vmax.f32 %v4225_v10, %v4234_v0  ;;  %v4249_v43 = vmul.f32 1.4142135, %v4241_v24  ;;  %v4426_v55 = vmul.f32 0.2, %v4418_v35  ;;  %v4243_v19 = vmul.f32 1.4142135, %v4235_v30 }
 0x727   :  { %v4449_v39 = vmul.f32 1.4142135, %v4441_v37  ;;  %v4437_v10 = vmax.f32 %v4421_v49, %v4429_v42  ;;  %v4436_v45 = vmax.f32 %v4420_v25, %v4428_v2  ;;  %v4448_v20 = vmul.f32 1.4142135, %v4440_v53 }
 0x728   :  { %v4250_v47 = vmul.f32 1.4142135, %v4242_v4  ;;  %v4447_v5 = vmul.f32 1.4142135, %v4439_v29  ;;  %v4434_v17 = vmax.f32 %v4418_v35, %v4426_v55  ;;  %v4446_v9 = vmul.f32 1.4142135, %v4438_v46  ;;  %v4255_v4 = vpop.permute.xlu1 %4254 }
 0x729   :  { %v4445_v61 = vmul.f32 1.4142135, %v4437_v10  ;;  %v4444_v40 = vmul.f32 1.4142135, %v4436_v45  ;;  %v4376_v0 = vmul.f32 %v5538_v38, %v6949_v26  ;;  %v4377_v8 = vmul.f32 %v5540_v21, %v7215_v7  ;;  %v4467_v28 = vpop.permute.xlu0 %4466 }
 0x72a   :  { %4284 = vmatprep.subr.mxu0 %v4250_v47  ;;  %v4442_v48 = vmul.f32 1.4142135, %v4434_v17  ;;  %v4378_v24 = vmul.f32 %v5542_v31, %v6874_v63  ;;  %v4379_v26 = vmul.f32 %v5544_v44, %v6890_v51 }
 0x72b   :  { %4285 = vmatpush1.msra.mxu0 %v4249_v43 }
 0x72c   :  { %4286 = vmatprep.subr.mxu0 %v4248_v1 }
 0x72d   :  { %4287 = vmatpush1.msra.mxu0 %v4247_v34  ;;  %v4462_v51 = vpop.permute.xlu0 %4461 }
 0x72e   :  { %4288 = vmatprep.subr.mxu0 %v4246_v62 }
 0x72f   :  { %4289 = vmatpush1.msra.mxu0 %v4245_v56 }
 0x730   :  { %4290 = vmatprep.subr.mxu0 %v4244_v14  ;;  %v5546_v33 = vpop.eup %5545 }
 0x731   :  { %4291 = vmatpush1.msra.mxu0 %v4243_v19  ;;  %v4457_v38 = vpop.permute.xlu0 %4456 }
 0x732   :  { %4955 = vmatmul.mubr.msk.f32.vlgmr.msra.gmra.mxu0 %vm92_vm1, %v4045_v13  ;;  %4510 = vmatprep.subr.mxu0 %v4449_v39 }
 0x733   :  { %4511 = vmatpush1.msra.mxu0 %v4448_v20  ;;  %4550 = vmatprep.mubr.f32.mxu0 %v7216_v41 }
 0x734   :  { %4512 = vmatprep.subr.mxu0 %v4447_v5 }
 0x735   :  { %4513 = vmatpush1.msra.mxu0 %v4446_v9 }
 0x736   :  { %4514 = vmatprep.subr.mxu0 %v4445_v61  ;;  %v7218_v61 = vld [vmem:[#allocation24_spill] sm:$0xff] }
 0x737   :  { %4515 = vmatpush1.msra.mxu0 %v4444_v40  ;;  %v4393_v40 = vmul.f32 %v5546_v33, %v7218_v61 }
 0x738   :  { %4516 = vmatprep.subr.mxu0 %v4443_v12 }
 0x739   :  { %4517 = vmatpush1.msra.mxu0 %v4442_v48  ;;  %v4603_v48 = vpop.permute.xlu0 %4602 }
 0x73a   :  { %4956 = vmatmul.mubr.msk.f32.vlgmr.msra.gmra.mxu0 %vm92_vm1, %v4376_v0 }
 0x73b   :  { %4556 = vmatprep.mubr.f32.mxu0 %v7216_v41 }
 0x73e   :  { %4957 = vmatmul.mubr.msk.f32.gmra.mxu0 %vm92_vm1, %v4377_v8 }
 0x73f   :  { %4562 = vmatprep.mubr.f32.mxu0 %v7216_v41 }
 0x742   :  { %4958 = vmatmul.mubr.msk.f32.gmra.mxu0 %vm92_vm1, %v4378_v24 }
 0x743   :  { %4568 = vmatprep.mubr.f32.mxu0 %v7216_v41 }
 0x746   :  { %4959 = vmatmul.mubr.msk.f32.gmra.mxu0 %vm92_vm1, %v4379_v26 }
 0x7f2   :  { %v4326_v27 = vpop.f32.mrf.mxu0 }
 0x7f3   :  { %v4327_v22 = vadd.f32 %v4326_v27, %v4255_v4 }
 0x7f4   :  { %v4328_v7 = vpop.f32.mrf.mxu0 }
 0x7f5   :  { %v4329_v36 = vadd.f32 %v4328_v7, %v4255_v4 }
 0x7f7   :  { %v4333_v6 = vcombine.low %v4327_v22, %v4329_v36 }
 0x7f9   :  { %4335 = vst [vmem:[%s7149_s18] sm:$0x77] %v4333_v6 }
 0x7fa   :  { %v4552_v63 = vpop.f32.mrf.mxu0 }
 0x7fb   :  { %v4553_v30 = vadd.f32 %v4552_v63, %v4457_v38 }
 0x7fc   :  { %v4554_v52 = vpop.f32.mrf.mxu0 }
 0x7fd   :  { %v4555_v54 = vadd.f32 %v4554_v52, %v4457_v38  ;;  %v4575_v14 = vmul.f32 0.2, %v4553_v30 }
 0x7fe   :  { %v4558_v41 = vpop.f32.mrf.mxu0 }
 0x7ff   :  { %v4559_v57 = vadd.f32 %v4558_v41, %v4462_v51  ;;  %v4576_v53 = vmul.f32 0.2, %v4555_v54  ;;  %v4583_v10 = vmax.f32 %v4553_v30, %v4575_v14 }
 0x800   :  { %v4560_v49 = vpop.f32.mrf.mxu0 }
 0x801   :  { %v4561_v15 = vadd.f32 %v4560_v49, %v4462_v51  ;;  %v4577_v42 = vmul.f32 0.2, %v4559_v57  ;;  %v4584_v3 = vmax.f32 %v4555_v54, %v4576_v53  ;;  %v4591_v9 = vmul.f32 1.4142135, %v4583_v10 }
 0x802   :  { %v4564_v23 = vpop.f32.mrf.mxu0 }
 0x803   :  { %v4565_v25 = vadd.f32 %v4564_v23, %v4467_v28  ;;  %v4578_v62 = vmul.f32 0.2, %v4561_v15  ;;  %v4585_v46 = vmax.f32 %v4559_v57, %v4577_v42  ;;  %v4592_v17 = vmul.f32 1.4142135, %v4584_v3 }
 0x804   :  { %v4566_v47 = vpop.f32.mrf.mxu0 }
 0x805   :  { %v4567_v18 = vadd.f32 %v4566_v47, %v4467_v28  ;;  %v4579_v34 = vmul.f32 0.2, %v4565_v25  ;;  %v4586_v13 = vmax.f32 %v4561_v15, %v4578_v62  ;;  %v4593_v5 = vmul.f32 1.4142135, %v4585_v46 }
 0x806   :  { %v4570_v59 = vpop.f32.mrf.mxu0 }
 0x807   :  { %v4571_v43 = vadd.f32 %v4570_v59, %v4472_v16  ;;  %v4580_v1 = vmul.f32 0.2, %v4567_v18  ;;  %v4587_v29 = vmax.f32 %v4565_v25, %v4579_v34  ;;  %v4594_v20 = vmul.f32 1.4142135, %v4586_v13 }
 0x808   :  { %v4572_v32 = vpop.f32.mrf.mxu0 }
 0x809   :  { %v4581_v35 = vmul.f32 0.2, %v4571_v43  ;;  %v4573_v50 = vadd.f32 %v4572_v32, %v4472_v16  ;;  %v4588_v56 = vmax.f32 %v4567_v18, %v4580_v1  ;;  %v4595_v45 = vmul.f32 1.4142135, %v4587_v29 }
 0x80b   :  { %v4582_v37 = vmul.f32 0.2, %v4573_v50  ;;  %v4589_v2 = vmax.f32 %v4571_v43, %v4581_v35  ;;  %v4596_v39 = vmul.f32 1.4142135, %v4588_v56 }
 0x80d   :  { %v4590_v58 = vmax.f32 %v4573_v50, %v4582_v37  ;;  %v4597_v19 = vmul.f32 1.4142135, %v4589_v2 }
 0x80f   :  { %v4598_v55 = vmul.f32 1.4142135, %v4590_v58 }
 0x811   :  { %4632 = vmatprep.subr.mxu1 %v4598_v55 }
 0x812   :  { %4633 = vmatpush1.msra.mxu1 %v4597_v19 }
 0x813   :  { %4634 = vmatprep.subr.mxu1 %v4596_v39 }
 0x814   :  { %4635 = vmatpush1.msra.mxu1 %v4595_v45 }
 0x815   :  { %4636 = vmatprep.subr.mxu1 %v4594_v20 }
 0x816   :  { %4637 = vmatpush1.msra.mxu1 %v4593_v5 }
 0x817   :  { %4638 = vmatprep.subr.mxu1 %v4592_v17 }
 0x818   :  { %4639 = vmatpush1.msra.mxu1 %v4591_v9 }
 0x819   :  { %4960 = vmatmul.mubr.msk.f32.vlgmr.msra.gmra.mxu1 %vm92_vm1, %v4393_v40 }
 0x8d9   :  { %v4674_v12 = vpop.f32.mrf.mxu1 }
 0x8da   :  { %v4675_v21 = vadd.f32 %v4674_v12, %v4603_v48 }
 0x8db   :  { %v4676_v0 = vpop.f32.mrf.mxu1 }
 0x8dc   :  { %v4677_v8 = vadd.f32 %v4676_v0, %v4603_v48 }
 0x8de   :  { %v4681_v31 = vcombine.low %v4675_v21, %v4677_v8 }
 0x8e0   :  { %4961 = vst [vmem:[%s7149_s18 + $0x8] sm:$0x77] %v4681_v31 }
 0x8e1   :  { %4689 = vsyncpa [#allocation4], 1 }
 0x8e2   :  { %4690 = vsyncpa [#allocation6], 1 }

</bundles_post_ra>
